<compile_context>
chip_gen: v6e
topology: v6e:2x2x1
jax: 0.10.0
libtpu: 0.0.40
codegen_flags: <defaults>
</compile_context>

<pallas_src>
import functools
import math

import jax
import jax.numpy as jnp
from jax.experimental import pallas as pl
from jax.experimental.pallas import tpu as pltpu


_VMEM_LIMIT = 48 * 1024 * 1024  # conservative: fits v7x (64 MiB) with headroom


def _round_up(x, m):
    return ((x + m - 1) // m) * m


def _choose_tile(n_rows, max_tile=512):
    """Pick (tile_rows, padded_rows): pad only to a multiple of 8, choose a
    tile that divides the padded row count, and keep >= 2 grid steps when
    possible so both v7x TensorCores get work."""
    np_ = _round_up(n_rows, 8)
    cap = min(max_tile, np_)
    if np_ >= 16:
        cap = min(cap, np_ // 2)          # >= 2 parallel grid steps
    cap = max(cap, 8)
    tm = 8
    t = 8
    while t <= cap:
        if np_ % t == 0:
            tm = t
        t += 8
    return tm, np_


def _gelu_f32(y):
    c = math.sqrt(2.0 / math.pi)
    return 0.5 * y * (1.0 + jnp.tanh(c * (y + 0.044715 * y * y * y)))


# ----------------------------------------------------------------------------
# Kernel 1: fused LayerNorm1 -> QKV projection (q, k, v as separate outputs)
# ----------------------------------------------------------------------------
def _ln_qkv_kernel(x_ref, scale_ref, shift_ref, w_ref, b_ref,
                   q_ref, k_ref, v_ref, *, eps, d_model):
    x = x_ref[...].astype(jnp.float32)                       # (TM, D), f32 stats
    mean = jnp.mean(x, axis=-1, keepdims=True)
    xc = x - mean
    var = jnp.mean(xc * xc, axis=-1, keepdims=True)          # two-pass, stable
    h = xc * jax.lax.rsqrt(var + eps)
    h = h * scale_ref[...] + shift_ref[...]

    # bf16 operands, fp32 accumulation on the MXU
    qkv = jnp.dot(h.astype(jnp.bfloat16), w_ref[...],
                  preferred_element_type=jnp.float32)
    qkv = qkv + b_ref[...]

    q_ref[...] = qkv[:, :d_model].astype(q_ref.dtype)
    k_ref[...] = qkv[:, d_model:2 * d_model].astype(k_ref.dtype)
    v_ref[...] = qkv[:, 2 * d_model:].astype(v_ref.dtype)


def ln_qkv(x, scale, shift, w_qkv, b_qkv, *, eps=1e-5, tile_rows=512):
    """q, k, v = LN(x) @ W_qkv + b_qkv, split into three (N, D) arrays."""
    N, D = x.shape
    tm, Np = _choose_tile(N, tile_rows)
    if Np != N:
        x = jnp.pad(x, ((0, Np - N), (0, 0)))

    kernel = functools.partial(_ln_qkv_kernel, eps=eps, d_model=D)
    q, k, v = pl.pallas_call(
        kernel,
        out_shape=tuple(jax.ShapeDtypeStruct((Np, D), x.dtype) for _ in range(3)),
        grid_spec=pltpu.PrefetchScalarGridSpec(
            num_scalar_prefetch=0,
            grid=(Np // tm,),
            in_specs=[
                pl.BlockSpec((tm, D), lambda i: (i, 0)),
                pl.BlockSpec((1, D), lambda i: (0, 0)),
                pl.BlockSpec((1, D), lambda i: (0, 0)),
                pl.BlockSpec((D, 3 * D), lambda i: (0, 0)),
                pl.BlockSpec((1, 3 * D), lambda i: (0, 0)),
            ],
            out_specs=[
                pl.BlockSpec((tm, D), lambda i: (i, 0)),
                pl.BlockSpec((tm, D), lambda i: (i, 0)),
                pl.BlockSpec((tm, D), lambda i: (i, 0)),
            ],
        ),
        compiler_params=pltpu.CompilerParams(
            dimension_semantics=("parallel",),
            vmem_limit_bytes=_VMEM_LIMIT,
        ),
    )(x, scale.reshape(1, D), shift.reshape(1, D), w_qkv, b_qkv.reshape(1, 3 * D))
    if Np != N:
        q, k, v = q[:N], k[:N], v[:N]
    return q, k, v


# ----------------------------------------------------------------------------
# Kernel 2: causal attention — all heads of one batch element per grid step
# ----------------------------------------------------------------------------
def _causal_attention_kernel(q_ref, k_ref, v_ref, o_ref, *, n_heads, scale):
    q = q_ref[0].astype(jnp.float32)                          # (S, D)
    k = k_ref[0].astype(jnp.float32)
    v = v_ref[0].astype(jnp.float32)
    S, D = q.shape
    Hd = D // n_heads

    row = jax.lax.broadcasted_iota(jnp.int32, (S, S), 0)
    col = jax.lax.broadcasted_iota(jnp.int32, (S, S), 1)
    causal = col <= row                                       # hoisted mask

    ctxs = []
    for h in range(n_heads):                                  # static head loop
        sl = slice(h * Hd, (h + 1) * Hd)
        qh = q[:, sl].astype(jnp.bfloat16)
        kh = k[:, sl].astype(jnp.bfloat16)
        vh = v[:, sl].astype(jnp.bfloat16)

        # scores[i, j] = <q_i, k_j> * scale  (contract over head_dim)
        s = jax.lax.dot_general(qh, kh, (((1,), (1,)), ((), ())),
                                preferred_element_type=jnp.float32) * scale
        s = jnp.where(causal, s, -jnp.inf)

        m = jnp.max(s, axis=-1, keepdims=True)                # softmax in f32
        p = jnp.exp(s - m)
        denom = jnp.sum(p, axis=-1, keepdims=True)
        p = p * pl.reciprocal(denom, approx=True)             # EUP, ~free

        ctxs.append(jnp.dot(p.astype(jnp.bfloat16), vh,
                            preferred_element_type=jnp.float32))

    # single lane-dense (S, D) store — heads concatenated along lanes matches
    # the reference transpose(0,2,1,3).reshape(B,S,D) layout exactly
    o_ref[0] = jnp.concatenate(ctxs, axis=-1).astype(o_ref.dtype)


def causal_attention(q, k, v, *, n_heads):
    """q, k, v: [B, S, D] (heads packed along D) -> context: [B, S, D]."""
    B, S, D = q.shape
    Hd = D // n_heads
    kernel = functools.partial(_causal_attention_kernel,
                               n_heads=n_heads, scale=1.0 / math.sqrt(Hd))
    return pl.pallas_call(
        kernel,
        out_shape=jax.ShapeDtypeStruct((B, S, D), q.dtype),
        grid_spec=pltpu.PrefetchScalarGridSpec(
            num_scalar_prefetch=0,
            grid=(B,),
            in_specs=[
                pl.BlockSpec((1, S, D), lambda b: (b, 0, 0)),
                pl.BlockSpec((1, S, D), lambda b: (b, 0, 0)),
                pl.BlockSpec((1, S, D), lambda b: (b, 0, 0)),
            ],
            out_specs=pl.BlockSpec((1, S, D), lambda b: (b, 0, 0)),
        ),
        compiler_params=pltpu.CompilerParams(
            dimension_semantics=("parallel",),
            vmem_limit_bytes=_VMEM_LIMIT,
        ),
    )(q, k, v)


# ----------------------------------------------------------------------------
# Kernel 3: out-proj + residual -> LN2 -> FF1 -> GELU -> FF2 -> residual
# ----------------------------------------------------------------------------
def _attn_out_mlp_kernel(ctx_ref, x_ref, wo_ref, bo_ref,
                         g2_ref, s2_ref, w1_ref, b1_ref, w2_ref, b2_ref,
                         o_ref, *, eps):
    x = x_ref[...].astype(jnp.float32)                        # residual 1

    # output projection + bias + residual (x1 never leaves VMEM)
    y = jnp.dot(ctx_ref[...].astype(jnp.bfloat16), wo_ref[...],
                preferred_element_type=jnp.float32)
    x1 = y + bo_ref[...] + x

    # LayerNorm2 (f32 statistics, two-pass)
    mean = jnp.mean(x1, axis=-1, keepdims=True)
    xc = x1 - mean
    var = jnp.mean(xc * xc, axis=-1, keepdims=True)
    h = xc * jax.lax.rsqrt(var + eps)
    h = h * g2_ref[...] + s2_ref[...]

    # FF up-projection + GELU (the (TM, 4D) hidden stays in vregs/VMEM)
    f = jnp.dot(h.astype(jnp.bfloat16), w1_ref[...],
                preferred_element_type=jnp.float32)
    f = _gelu_f32(f + b1_ref[...])

    # FF down-projection + bias + residual 2
    out = jnp.dot(f.astype(jnp.bfloat16), w2_ref[...],
                  preferred_element_type=jnp.float32)
    out = out + b2_ref[...] + x1
    o_ref[...] = out.astype(o_ref.dtype)


def attn_out_mlp(ctx, x, w_o, b_o, ln2_scale, ln2_shift,
                 w_ff1, b_ff1, w_ff2, b_ff2, *, eps=1e-5, tile_rows=512):
    N, D = ctx.shape
    Dff = w_ff1.shape[1]
    tm, Np = _choose_tile(N, tile_rows)
    if Np != N:
        ctx = jnp.pad(ctx, ((0, Np - N), (0, 0)))
        x = jnp.pad(x, ((0, Np - N), (0, 0)))

    kernel = functools.partial(_attn_out_mlp_kernel, eps=eps)
    out = pl.pallas_call(
        kernel,
        out_shape=jax.ShapeDtypeStruct((Np, D), x.dtype),
        grid_spec=pltpu.PrefetchScalarGridSpec(
            num_scalar_prefetch=0,
            grid=(Np // tm,),
            in_specs=[
                pl.BlockSpec((tm, D), lambda i: (i, 0)),      # ctx
                pl.BlockSpec((tm, D), lambda i: (i, 0)),      # x (residual)
                pl.BlockSpec((D, D), lambda i: (0, 0)),       # w_o (bf16)
                pl.BlockSpec((1, D), lambda i: (0, 0)),       # b_o
                pl.BlockSpec((1, D), lambda i: (0, 0)),       # ln2 scale
                pl.BlockSpec((1, D), lambda i: (0, 0)),       # ln2 shift
                pl.BlockSpec((D, Dff), lambda i: (0, 0)),     # w_ff1 (bf16)
                pl.BlockSpec((1, Dff), lambda i: (0, 0)),     # b_ff1
                pl.BlockSpec((Dff, D), lambda i: (0, 0)),     # w_ff2 (bf16)
                pl.BlockSpec((1, D), lambda i: (0, 0)),       # b_ff2
            ],
            out_specs=pl.BlockSpec((tm, D), lambda i: (i, 0)),
        ),
        compiler_params=pltpu.CompilerParams(
            dimension_semantics=("parallel",),
            vmem_limit_bytes=_VMEM_LIMIT,
        ),
    )(ctx, x, w_o, b_o.reshape(1, D), ln2_scale.reshape(1, D),
      ln2_shift.reshape(1, D), w_ff1, b_ff1.reshape(1, Dff), w_ff2,
      b_ff2.reshape(1, D))
    if Np != N:
        out = out[:N]
    return out


# ----------------------------------------------------------------------------
# Parameter prep (done once, outside the per-call path)
# ----------------------------------------------------------------------------
def prepare_params(p):
    """Concatenate QKV weights and pre-convert matmul weights to bf16."""
    return {
        "ln1_scale": p["ln1_scale"], "ln1_shift": p["ln1_shift"],
        "ln2_scale": p["ln2_scale"], "ln2_shift": p["ln2_shift"],
        "w_qkv": jnp.concatenate([p["w_q"], p["w_k"], p["w_v"]],
                                 axis=1).astype(jnp.bfloat16),
        "b_qkv": jnp.concatenate([p["b_q"], p["b_k"], p["b_v"]], axis=0),
        "w_o": p["w_o"].astype(jnp.bfloat16), "b_o": p["b_o"],
        "w_ff1": p["w_ff1"].astype(jnp.bfloat16), "b_ff1": p["b_ff1"],
        "w_ff2": p["w_ff2"].astype(jnp.bfloat16), "b_ff2": p["b_ff2"],
    }


# ----------------------------------------------------------------------------
# TransformerBlock forward (3 pallas_calls, no transpose round trips)
# ----------------------------------------------------------------------------
def transformer_block(x, kp, *, n_heads, eps=1e-5):
    B, S, D = x.shape
    N = B * S
    x2 = x.reshape(N, D)

    # LN1 fused into the QKV projection
    q, k, v = ln_qkv(x2, kp["ln1_scale"], kp["ln1_shift"],
                     kp["w_qkv"], kp["b_qkv"], eps=eps)

    # causal multi-head attention (heads handled in-kernel, no HBM transposes)
    ctx = causal_attention(q.reshape(B, S, D), k.reshape(B, S, D),
                           v.reshape(B, S, D), n_heads=n_heads)

    # out-proj + residual + LN2 + FF(GELU) + residual, fully fused
    out = attn_out_mlp(ctx.reshape(N, D), x2, kp["w_o"], kp["b_o"],
                       kp["ln2_scale"], kp["ln2_shift"],
                       kp["w_ff1"], kp["b_ff1"], kp["w_ff2"], kp["b_ff2"],
                       eps=eps)
    return out.reshape(B, S, D)


# ----------------------------------------------------------------------------
# Pure-JAX fp32 reference (same math as the PyTorch module, eval mode)
# ----------------------------------------------------------------------------
def _gelu_ref(x):
    c = jnp.sqrt(jnp.asarray(2.0 / jnp.pi, dtype=x.dtype))
    return 0.5 * x * (1.0 + jnp.tanh(c * (x + 0.044715 * x ** 3)))


def _layer_norm_ref(x, scale, shift, eps=1e-5):
    mean = jnp.mean(x, axis=-1, keepdims=True)
    var = jnp.mean((x - mean) ** 2, axis=-1, keepdims=True)
    return scale * (x - mean) / jnp.sqrt(var + eps) + shift


def transformer_block_ref(x, params, *, n_heads, eps=1e-5):
    B, S, D = x.shape
    H = n_heads
    Hd = D // H

    shortcut = x
    h = _layer_norm_ref(x, params["ln1_scale"], params["ln1_shift"], eps)
    q = h @ params["w_q"] + params["b_q"]
    k = h @ params["w_k"] + params["b_k"]
    v = h @ params["w_v"] + params["b_v"]
    q = q.reshape(B, S, H, Hd).transpose(0, 2, 1, 3)
    k = k.reshape(B, S, H, Hd).transpose(0, 2, 1, 3)
    v = v.reshape(B, S, H, Hd).transpose(0, 2, 1, 3)
    scores = jnp.einsum("bhqd,bhkd->bhqk", q, k) / jnp.sqrt(jnp.float32(Hd))
    mask = jnp.tril(jnp.ones((S, S), dtype=bool))
    scores = jnp.where(mask, scores, -jnp.inf)
    attn = jax.nn.softmax(scores, axis=-1)
    ctx = jnp.einsum("bhqk,bhkd->bhqd", attn, v)
    ctx = ctx.transpose(0, 2, 1, 3).reshape(B, S, D)
    x1 = ctx @ params["w_o"] + params["b_o"] + shortcut

    h2 = _layer_norm_ref(x1, params["ln2_scale"], params["ln2_shift"], eps)
    f = _gelu_ref(h2 @ params["w_ff1"] + params["b_ff1"])
    f = f @ params["w_ff2"] + params["b_ff2"]
    return f + x1


# ----------------------------------------------------------------------------
if __name__ == "__main__":
    key = jax.random.PRNGKey(0)
    batch, seq, emb_dim, n_heads = 2, 64, 128, 4   # lane-dense D (mult. of 128)
    D, Dff = emb_dim, 4 * emb_dim

    keys = jax.random.split(key, 10)
    x = jax.random.normal(keys[0], (batch, seq, emb_dim), dtype=jnp.float32)

    def init(k, shape):
        return 0.05 * jax.random.normal(k, shape, dtype=jnp.float32)

    params = {
        "ln1_scale": jnp.ones((D,), jnp.float32),
        "ln1_shift": jnp.zeros((D,), jnp.float32),
        "ln2_scale": jnp.ones((D,), jnp.float32),
        "ln2_shift": jnp.zeros((D,), jnp.float32),
        "w_q": init(keys[1], (D, D)),
        "w_k": init(keys[2], (D, D)),
        "w_v": init(keys[3], (D, D)),
        "b_q": jnp.zeros((D,), jnp.float32),   # qkv_bias = False
        "b_k": jnp.zeros((D,), jnp.float32),
        "b_v": jnp.zeros((D,), jnp.float32),
        "w_o": init(keys[4], (D, D)),
        "b_o": init(keys[5], (D,)),
        "w_ff1": init(keys[6], (D, Dff)),
        "b_ff1": init(keys[7], (Dff,)),
        "w_ff2": init(keys[8], (Dff, D)),
        "b_ff2": init(keys[9], (D,)),
    }

    kparams = prepare_params(params)           # hoisted QKV concat + bf16 cast
    fwd = jax.jit(functools.partial(transformer_block, n_heads=n_heads))

    y = jax.block_until_ready(fwd(x, kparams))

    y_ref = transformer_block_ref(x, params, n_heads=n_heads)
    assert y.shape == x.shape and y.dtype == x.dtype
    max_err = float(jnp.max(jnp.abs(y - y_ref)))
    # bf16 matmul operands with fp32 accumulation -> small quantization error
    assert jnp.allclose(y, y_ref, atol=2e-2, rtol=2e-2), max_err

    print("KERNEL_OK")
</pallas_src>

<mosaic_0001>
module attributes {stable_mosaic.version = 11 : i64} {
  func.func @_causal_attention_kernel(%arg0: i32, %arg1: memref<1x64x128xf32, #tpu.memory_space<vmem>>, %arg2: memref<1x64x128xf32, #tpu.memory_space<vmem>>, %arg3: memref<1x64x128xf32, #tpu.memory_space<vmem>>, %arg4: memref<1x64x128xf32, #tpu.memory_space<vmem>>) attributes {dimension_semantics = [#tpu.dimension_semantics<parallel>], iteration_bounds = array<i64: 2>, scalar_prefetch = 0 : i64, scratch_operands = 0 : i64, tpu.core_type = #tpu.core_type<tc>, window_params = [{transform_indices = @transform_0, window_bounds = array<i64: 1, 64, 128>}, {transform_indices = @transform_1, window_bounds = array<i64: 1, 64, 128>}, {transform_indices = @transform_2, window_bounds = array<i64: 1, 64, 128>}, {transform_indices = @transform_3, window_bounds = array<i64: 1, 64, 128>}]} {
    %c0 = arith.constant 0 : index
    %c0_0 = arith.constant 0 : index
    %c0_1 = arith.constant 0 : index
    %0 = vector.load %arg1[%c0, %c0_0, %c0_1] : memref<1x64x128xf32, #tpu.memory_space<vmem>>, vector<1x64x128xf32>
    %1 = vector.shape_cast %0 : vector<1x64x128xf32> to vector<64x128xf32>
    %c0_2 = arith.constant 0 : index
    %c0_3 = arith.constant 0 : index
    %c0_4 = arith.constant 0 : index
    %2 = vector.load %arg2[%c0_2, %c0_3, %c0_4] : memref<1x64x128xf32, #tpu.memory_space<vmem>>, vector<1x64x128xf32>
    %3 = vector.shape_cast %2 : vector<1x64x128xf32> to vector<64x128xf32>
    %c0_5 = arith.constant 0 : index
    %c0_6 = arith.constant 0 : index
    %c0_7 = arith.constant 0 : index
    %4 = vector.load %arg3[%c0_5, %c0_6, %c0_7] : memref<1x64x128xf32, #tpu.memory_space<vmem>>, vector<1x64x128xf32>
    %5 = vector.shape_cast %4 : vector<1x64x128xf32> to vector<64x128xf32>
    %6 = tpu.iota {dimensions = array<i32: 0>} : vector<64x64xi32>
    %7 = tpu.iota {dimensions = array<i32: 1>} : vector<64x64xi32>
    %8 = arith.cmpi sle, %7, %6 : vector<64x64xi32>
    %9 = vector.extract_strided_slice %1 {offsets = [0, 0], sizes = [64, 32], strides = [1, 1]} : vector<64x128xf32> to vector<64x32xf32>
    %10 = arith.truncf %9 : vector<64x32xf32> to vector<64x32xbf16>
    %11 = vector.extract_strided_slice %3 {offsets = [0, 0], sizes = [64, 32], strides = [1, 1]} : vector<64x128xf32> to vector<64x32xf32>
    %12 = arith.truncf %11 : vector<64x32xf32> to vector<64x32xbf16>
    %13 = vector.extract_strided_slice %5 {offsets = [0, 0], sizes = [64, 32], strides = [1, 1]} : vector<64x128xf32> to vector<64x32xf32>
    %14 = arith.truncf %13 : vector<64x32xf32> to vector<64x32xbf16>
    %cst = arith.constant dense<0.000000e+00> : vector<64x64xf32>
    %15 = tpu.matmul %10, %12, %cst {dimension_numbers = #tpu.dot_dimension_numbers<[1], [1], [0], [0], [0, 0, 1, 0], [], []>} : vector<64x32xbf16>, vector<64x32xbf16>, vector<64x64xf32> -> vector<64x64xf32>
    %cst_8 = arith.constant 0.176776692 : f32
    %16 = vector.broadcast %cst_8 : f32 to vector<64x64xf32>
    %17 = arith.mulf %15, %16 : vector<64x64xf32>
    %cst_9 = arith.constant 0xFF800000 : f32
    %18 = vector.broadcast %cst_9 : f32 to vector<64x64xf32>
    %19 = arith.select %8, %17, %18 : vector<64x64xi1>, vector<64x64xf32>
    %cst_10 = arith.constant dense<0xFF800000> : vector<64xf32>
    %20 = vector.multi_reduction <maximumf>, %19, %cst_10 [1] : vector<64x64xf32> to vector<64xf32>
    %21 = vector.shape_cast %20 : vector<64xf32> to vector<64x1xf32>
    %22 = vector.broadcast %21 : vector<64x1xf32> to vector<64x64xf32>
    %23 = arith.subf %19, %22 : vector<64x64xf32>
    %24 = math.exp %23 : vector<64x64xf32>
    %cst_11 = arith.constant dense<0.000000e+00> : vector<64xf32>
    %25 = vector.multi_reduction <add>, %24, %cst_11 [1] : vector<64x64xf32> to vector<64xf32>
    %26 = vector.shape_cast %25 : vector<64xf32> to vector<64x1xf32>
    %27 = tpu.reciprocal %26 {approx = true} : vector<64x1xf32> -> vector<64x1xf32>
    %28 = vector.broadcast %27 : vector<64x1xf32> to vector<64x64xf32>
    %29 = arith.mulf %24, %28 : vector<64x64xf32>
    %30 = arith.truncf %29 : vector<64x64xf32> to vector<64x64xbf16>
    %cst_12 = arith.constant dense<0.000000e+00> : vector<64x32xf32>
    %31 = tpu.matmul %30, %14, %cst_12 {dimension_numbers = #tpu.dot_dimension_numbers<[1], [0], [0], [1], [0, 0, 1, 1], [], []>} : vector<64x64xbf16>, vector<64x32xbf16>, vector<64x32xf32> -> vector<64x32xf32>
    %32 = vector.extract_strided_slice %1 {offsets = [0, 32], sizes = [64, 32], strides = [1, 1]} : vector<64x128xf32> to vector<64x32xf32>
    %33 = arith.truncf %32 : vector<64x32xf32> to vector<64x32xbf16>
    %34 = vector.extract_strided_slice %3 {offsets = [0, 32], sizes = [64, 32], strides = [1, 1]} : vector<64x128xf32> to vector<64x32xf32>
    %35 = arith.truncf %34 : vector<64x32xf32> to vector<64x32xbf16>
    %36 = vector.extract_strided_slice %5 {offsets = [0, 32], sizes = [64, 32], strides = [1, 1]} : vector<64x128xf32> to vector<64x32xf32>
    %37 = arith.truncf %36 : vector<64x32xf32> to vector<64x32xbf16>
    %cst_13 = arith.constant dense<0.000000e+00> : vector<64x64xf32>
    %38 = tpu.matmul %33, %35, %cst_13 {dimension_numbers = #tpu.dot_dimension_numbers<[1], [1], [0], [0], [0, 0, 1, 0], [], []>} : vector<64x32xbf16>, vector<64x32xbf16>, vector<64x64xf32> -> vector<64x64xf32>
    %cst_14 = arith.constant 0.176776692 : f32
    %39 = vector.broadcast %cst_14 : f32 to vector<64x64xf32>
    %40 = arith.mulf %38, %39 : vector<64x64xf32>
    %cst_15 = arith.constant 0xFF800000 : f32
    %41 = vector.broadcast %cst_15 : f32 to vector<64x64xf32>
    %42 = arith.select %8, %40, %41 : vector<64x64xi1>, vector<64x64xf32>
    %cst_16 = arith.constant dense<0xFF800000> : vector<64xf32>
    %43 = vector.multi_reduction <maximumf>, %42, %cst_16 [1] : vector<64x64xf32> to vector<64xf32>
    %44 = vector.shape_cast %43 : vector<64xf32> to vector<64x1xf32>
    %45 = vector.broadcast %44 : vector<64x1xf32> to vector<64x64xf32>
    %46 = arith.subf %42, %45 : vector<64x64xf32>
    %47 = math.exp %46 : vector<64x64xf32>
    %cst_17 = arith.constant dense<0.000000e+00> : vector<64xf32>
    %48 = vector.multi_reduction <add>, %47, %cst_17 [1] : vector<64x64xf32> to vector<64xf32>
    %49 = vector.shape_cast %48 : vector<64xf32> to vector<64x1xf32>
    %50 = tpu.reciprocal %49 {approx = true} : vector<64x1xf32> -> vector<64x1xf32>
    %51 = vector.broadcast %50 : vector<64x1xf32> to vector<64x64xf32>
    %52 = arith.mulf %47, %51 : vector<64x64xf32>
    %53 = arith.truncf %52 : vector<64x64xf32> to vector<64x64xbf16>
    %cst_18 = arith.constant dense<0.000000e+00> : vector<64x32xf32>
    %54 = tpu.matmul %53, %37, %cst_18 {dimension_numbers = #tpu.dot_dimension_numbers<[1], [0], [0], [1], [0, 0, 1, 1], [], []>} : vector<64x64xbf16>, vector<64x32xbf16>, vector<64x32xf32> -> vector<64x32xf32>
    %55 = vector.extract_strided_slice %1 {offsets = [0, 64], sizes = [64, 32], strides = [1, 1]} : vector<64x128xf32> to vector<64x32xf32>
    %56 = arith.truncf %55 : vector<64x32xf32> to vector<64x32xbf16>
    %57 = vector.extract_strided_slice %3 {offsets = [0, 64], sizes = [64, 32], strides = [1, 1]} : vector<64x128xf32> to vector<64x32xf32>
    %58 = arith.truncf %57 : vector<64x32xf32> to vector<64x32xbf16>
    %59 = vector.extract_strided_slice %5 {offsets = [0, 64], sizes = [64, 32], strides = [1, 1]} : vector<64x128xf32> to vector<64x32xf32>
    %60 = arith.truncf %59 : vector<64x32xf32> to vector<64x32xbf16>
    %cst_19 = arith.constant dense<0.000000e+00> : vector<64x64xf32>
    %61 = tpu.matmul %56, %58, %cst_19 {dimension_numbers = #tpu.dot_dimension_numbers<[1], [1], [0], [0], [0, 0, 1, 0], [], []>} : vector<64x32xbf16>, vector<64x32xbf16>, vector<64x64xf32> -> vector<64x64xf32>
    %cst_20 = arith.constant 0.176776692 : f32
    %62 = vector.broadcast %cst_20 : f32 to vector<64x64xf32>
    %63 = arith.mulf %61, %62 : vector<64x64xf32>
    %cst_21 = arith.constant 0xFF800000 : f32
    %64 = vector.broadcast %cst_21 : f32 to vector<64x64xf32>
    %65 = arith.select %8, %63, %64 : vector<64x64xi1>, vector<64x64xf32>
    %cst_22 = arith.constant dense<0xFF800000> : vector<64xf32>
    %66 = vector.multi_reduction <maximumf>, %65, %cst_22 [1] : vector<64x64xf32> to vector<64xf32>
    %67 = vector.shape_cast %66 : vector<64xf32> to vector<64x1xf32>
    %68 = vector.broadcast %67 : vector<64x1xf32> to vector<64x64xf32>
    %69 = arith.subf %65, %68 : vector<64x64xf32>
    %70 = math.exp %69 : vector<64x64xf32>
    %cst_23 = arith.constant dense<0.000000e+00> : vector<64xf32>
    %71 = vector.multi_reduction <add>, %70, %cst_23 [1] : vector<64x64xf32> to vector<64xf32>
    %72 = vector.shape_cast %71 : vector<64xf32> to vector<64x1xf32>
    %73 = tpu.reciprocal %72 {approx = true} : vector<64x1xf32> -> vector<64x1xf32>
    %74 = vector.broadcast %73 : vector<64x1xf32> to vector<64x64xf32>
    %75 = arith.mulf %70, %74 : vector<64x64xf32>
    %76 = arith.truncf %75 : vector<64x64xf32> to vector<64x64xbf16>
    %cst_24 = arith.constant dense<0.000000e+00> : vector<64x32xf32>
    %77 = tpu.matmul %76, %60, %cst_24 {dimension_numbers = #tpu.dot_dimension_numbers<[1], [0], [0], [1], [0, 0, 1, 1], [], []>} : vector<64x64xbf16>, vector<64x32xbf16>, vector<64x32xf32> -> vector<64x32xf32>
    %78 = vector.extract_strided_slice %1 {offsets = [0, 96], sizes = [64, 32], strides = [1, 1]} : vector<64x128xf32> to vector<64x32xf32>
    %79 = arith.truncf %78 : vector<64x32xf32> to vector<64x32xbf16>
    %80 = vector.extract_strided_slice %3 {offsets = [0, 96], sizes = [64, 32], strides = [1, 1]} : vector<64x128xf32> to vector<64x32xf32>
    %81 = arith.truncf %80 : vector<64x32xf32> to vector<64x32xbf16>
    %82 = vector.extract_strided_slice %5 {offsets = [0, 96], sizes = [64, 32], strides = [1, 1]} : vector<64x128xf32> to vector<64x32xf32>
    %83 = arith.truncf %82 : vector<64x32xf32> to vector<64x32xbf16>
    %cst_25 = arith.constant dense<0.000000e+00> : vector<64x64xf32>
    %84 = tpu.matmul %79, %81, %cst_25 {dimension_numbers = #tpu.dot_dimension_numbers<[1], [1], [0], [0], [0, 0, 1, 0], [], []>} : vector<64x32xbf16>, vector<64x32xbf16>, vector<64x64xf32> -> vector<64x64xf32>
    %cst_26 = arith.constant 0.176776692 : f32
    %85 = vector.broadcast %cst_26 : f32 to vector<64x64xf32>
    %86 = arith.mulf %84, %85 : vector<64x64xf32>
    %cst_27 = arith.constant 0xFF800000 : f32
    %87 = vector.broadcast %cst_27 : f32 to vector<64x64xf32>
    %88 = arith.select %8, %86, %87 : vector<64x64xi1>, vector<64x64xf32>
    %cst_28 = arith.constant dense<0xFF800000> : vector<64xf32>
    %89 = vector.multi_reduction <maximumf>, %88, %cst_28 [1] : vector<64x64xf32> to vector<64xf32>
    %90 = vector.shape_cast %89 : vector<64xf32> to vector<64x1xf32>
    %91 = vector.broadcast %90 : vector<64x1xf32> to vector<64x64xf32>
    %92 = arith.subf %88, %91 : vector<64x64xf32>
    %93 = math.exp %92 : vector<64x64xf32>
    %cst_29 = arith.constant dense<0.000000e+00> : vector<64xf32>
    %94 = vector.multi_reduction <add>, %93, %cst_29 [1] : vector<64x64xf32> to vector<64xf32>
    %95 = vector.shape_cast %94 : vector<64xf32> to vector<64x1xf32>
    %96 = tpu.reciprocal %95 {approx = true} : vector<64x1xf32> -> vector<64x1xf32>
    %97 = vector.broadcast %96 : vector<64x1xf32> to vector<64x64xf32>
    %98 = arith.mulf %93, %97 : vector<64x64xf32>
    %99 = arith.truncf %98 : vector<64x64xf32> to vector<64x64xbf16>
    %cst_30 = arith.constant dense<0.000000e+00> : vector<64x32xf32>
    %100 = tpu.matmul %99, %83, %cst_30 {dimension_numbers = #tpu.dot_dimension_numbers<[1], [0], [0], [1], [0, 0, 1, 1], [], []>} : vector<64x64xbf16>, vector<64x32xbf16>, vector<64x32xf32> -> vector<64x32xf32>
    %101 = tpu.concatenate %31, %54, %77, %100 in 1 : vector<64x32xf32>, vector<64x32xf32>, vector<64x32xf32>, vector<64x32xf32> -> vector<64x128xf32>
    %c0_31 = arith.constant 0 : index
    %c0_32 = arith.constant 0 : index
    %c0_33 = arith.constant 0 : index
    %102 = vector.load %arg4[%c0_31, %c0_32, %c0_33] : memref<1x64x128xf32, #tpu.memory_space<vmem>>, vector<1x64x128xf32>
    %103 = vector.shape_cast %102 : vector<1x64x128xf32> to vector<64x128xf32>
    %104 = vector.shape_cast %101 : vector<64x128xf32> to vector<1x64x128xf32>
    tpu.vector_store %arg4[%c0_31, %c0_32, %c0_33], %104 {strides = array<i32>} : memref<1x64x128xf32, #tpu.memory_space<vmem>>, vector<1x64x128xf32>,
    return
  }
  func.func @transform_0(%arg0: i32) -> (i32, i32, i32) {
    %c0_i32 = arith.constant 0 : i32
    %c0_i32_0 = arith.constant 0 : i32
    %c0_i32_1 = arith.constant 0 : i32
    return %arg0, %c0_i32, %c0_i32_0 : i32, i32, i32
  }
  func.func @transform_1(%arg0: i32) -> (i32, i32, i32) {
    %c0_i32 = arith.constant 0 : i32
    %c0_i32_0 = arith.constant 0 : i32
    %c0_i32_1 = arith.constant 0 : i32
    return %arg0, %c0_i32, %c0_i32_0 : i32, i32, i32
  }
  func.func @transform_2(%arg0: i32) -> (i32, i32, i32) {
    %c0_i32 = arith.constant 0 : i32
    %c0_i32_0 = arith.constant 0 : i32
    %c0_i32_1 = arith.constant 0 : i32
    return %arg0, %c0_i32, %c0_i32_0 : i32, i32, i32
  }
  func.func @transform_3(%arg0: i32) -> (i32, i32, i32) {
    %c0_i32 = arith.constant 0 : i32
    %c0_i32_0 = arith.constant 0 : i32
    %c0_i32_1 = arith.constant 0 : i32
    return %arg0, %c0_i32, %c0_i32_0 : i32, i32, i32
  }
}

module attributes {stable_mosaic.version = 11 : i64} {
  func.func @_attn_out_mlp_kernel(%arg0: i32, %arg1: memref<64x128xf32, #tpu.memory_space<vmem>>, %arg2: memref<64x128xf32, #tpu.memory_space<vmem>>, %arg3: memref<128x128xbf16, #tpu.memory_space<vmem>>, %arg4: memref<1x128xf32, #tpu.memory_space<vmem>>, %arg5: memref<1x128xf32, #tpu.memory_space<vmem>>, %arg6: memref<1x128xf32, #tpu.memory_space<vmem>>, %arg7: memref<128x512xbf16, #tpu.memory_space<vmem>>, %arg8: memref<1x512xf32, #tpu.memory_space<vmem>>, %arg9: memref<512x128xbf16, #tpu.memory_space<vmem>>, %arg10: memref<1x128xf32, #tpu.memory_space<vmem>>, %arg11: memref<64x128xf32, #tpu.memory_space<vmem>>) attributes {dimension_semantics = [#tpu.dimension_semantics<parallel>], iteration_bounds = array<i64: 2>, scalar_prefetch = 0 : i64, scratch_operands = 0 : i64, tpu.core_type = #tpu.core_type<tc>, window_params = [{transform_indices = @transform_0, window_bounds = array<i64: 64, 128>}, {transform_indices = @transform_1, window_bounds = array<i64: 64, 128>}, {pipeline_mode = #tpu.pipeline_mode<synchronous>, transform_indices = @transform_2, window_bounds = array<i64: 128, 128>}, {pipeline_mode = #tpu.pipeline_mode<synchronous>, transform_indices = @transform_3, window_bounds = array<i64: 1, 128>}, {pipeline_mode = #tpu.pipeline_mode<synchronous>, transform_indices = @transform_4, window_bounds = array<i64: 1, 128>}, {pipeline_mode = #tpu.pipeline_mode<synchronous>, transform_indices = @transform_5, window_bounds = array<i64: 1, 128>}, {pipeline_mode = #tpu.pipeline_mode<synchronous>, transform_indices = @transform_6, window_bounds = array<i64: 128, 512>}, {pipeline_mode = #tpu.pipeline_mode<synchronous>, transform_indices = @transform_7, window_bounds = array<i64: 1, 512>}, {pipeline_mode = #tpu.pipeline_mode<synchronous>, transform_indices = @transform_8, window_bounds = array<i64: 512, 128>}, {pipeline_mode = #tpu.pipeline_mode<synchronous>, transform_indices = @transform_9, window_bounds = array<i64: 1, 128>}, {transform_indices = @transform_10, window_bounds = array<i64: 64, 128>}]} {
    %c0 = arith.constant 0 : index
    %c0_0 = arith.constant 0 : index
    %0 = vector.load %arg2[%c0, %c0_0] : memref<64x128xf32, #tpu.memory_space<vmem>>, vector<64x128xf32>
    %c0_1 = arith.constant 0 : index
    %c0_2 = arith.constant 0 : index
    %1 = vector.load %arg1[%c0_1, %c0_2] : memref<64x128xf32, #tpu.memory_space<vmem>>, vector<64x128xf32>
    %2 = arith.truncf %1 : vector<64x128xf32> to vector<64x128xbf16>
    %c0_3 = arith.constant 0 : index
    %c0_4 = arith.constant 0 : index
    %3 = vector.load %arg3[%c0_3, %c0_4] : memref<128x128xbf16, #tpu.memory_space<vmem>>, vector<128x128xbf16>
    %cst = arith.constant dense<0.000000e+00> : vector<64x128xf32>
    %4 = tpu.matmul %2, %3, %cst {dimension_numbers = #tpu.dot_dimension_numbers<[1], [0], [0], [1], [0, 0, 1, 1], [], []>} : vector<64x128xbf16>, vector<128x128xbf16>, vector<64x128xf32> -> vector<64x128xf32>
    %c0_5 = arith.constant 0 : index
    %c0_6 = arith.constant 0 : index
    %5 = vector.load %arg4[%c0_5, %c0_6] : memref<1x128xf32, #tpu.memory_space<vmem>>, vector<1x128xf32>
    %6 = vector.broadcast %5 : vector<1x128xf32> to vector<64x128xf32>
    %7 = arith.addf %4, %6 : vector<64x128xf32>
    %8 = arith.addf %7, %0 : vector<64x128xf32>
    %cst_7 = arith.constant dense<0.000000e+00> : vector<64xf32>
    %9 = vector.multi_reduction <add>, %8, %cst_7 [1] : vector<64x128xf32> to vector<64xf32>
    %10 = vector.shape_cast %9 : vector<64xf32> to vector<64x1xf32>
    %cst_8 = arith.constant 1.280000e+02 : f32
    %11 = vector.broadcast %cst_8 : f32 to vector<64x1xf32>
    %12 = arith.divf %10, %11 : vector<64x1xf32>
    %13 = vector.broadcast %12 : vector<64x1xf32> to vector<64x128xf32>
    %14 = arith.subf %8, %13 : vector<64x128xf32>
    %15 = arith.mulf %14, %14 : vector<64x128xf32>
    %cst_9 = arith.constant dense<0.000000e+00> : vector<64xf32>
    %16 = vector.multi_reduction <add>, %15, %cst_9 [1] : vector<64x128xf32> to vector<64xf32>
    %17 = vector.shape_cast %16 : vector<64xf32> to vector<64x1xf32>
    %cst_10 = arith.constant 1.280000e+02 : f32
    %18 = vector.broadcast %cst_10 : f32 to vector<64x1xf32>
    %19 = arith.divf %17, %18 : vector<64x1xf32>
    %cst_11 = arith.constant 9.99999974E-6 : f32
    %20 = vector.broadcast %cst_11 : f32 to vector<64x1xf32>
    %21 = arith.addf %19, %20 : vector<64x1xf32>
    %22 = math.rsqrt %21 : vector<64x1xf32>
    %23 = vector.broadcast %22 : vector<64x1xf32> to vector<64x128xf32>
    %24 = arith.mulf %14, %23 : vector<64x128xf32>
    %c0_12 = arith.constant 0 : index
    %c0_13 = arith.constant 0 : index
    %25 = vector.load %arg5[%c0_12, %c0_13] : memref<1x128xf32, #tpu.memory_space<vmem>>, vector<1x128xf32>
    %26 = vector.broadcast %25 : vector<1x128xf32> to vector<64x128xf32>
    %27 = arith.mulf %24, %26 : vector<64x128xf32>
    %c0_14 = arith.constant 0 : index
    %c0_15 = arith.constant 0 : index
    %28 = vector.load %arg6[%c0_14, %c0_15] : memref<1x128xf32, #tpu.memory_space<vmem>>, vector<1x128xf32>
    %29 = vector.broadcast %28 : vector<1x128xf32> to vector<64x128xf32>
    %30 = arith.addf %27, %29 : vector<64x128xf32>
    %31 = arith.truncf %30 : vector<64x128xf32> to vector<64x128xbf16>
    %c0_16 = arith.constant 0 : index
    %c0_17 = arith.constant 0 : index
    %32 = vector.load %arg7[%c0_16, %c0_17] : memref<128x512xbf16, #tpu.memory_space<vmem>>, vector<128x512xbf16>
    %cst_18 = arith.constant dense<0.000000e+00> : vector<64x512xf32>
    %33 = tpu.matmul %31, %32, %cst_18 {dimension_numbers = #tpu.dot_dimension_numbers<[1], [0], [0], [1], [0, 0, 1, 1], [], []>} : vector<64x128xbf16>, vector<128x512xbf16>, vector<64x512xf32> -> vector<64x512xf32>
    %c0_19 = arith.constant 0 : index
    %c0_20 = arith.constant 0 : index
    %34 = vector.load %arg8[%c0_19, %c0_20] : memref<1x512xf32, #tpu.memory_space<vmem>>, vector<1x512xf32>
    %35 = vector.broadcast %34 : vector<1x512xf32> to vector<64x512xf32>
    %36 = arith.addf %33, %35 : vector<64x512xf32>
    %cst_21 = arith.constant 5.000000e-01 : f32
    %37 = vector.broadcast %cst_21 : f32 to vector<64x512xf32>
    %38 = arith.mulf %37, %36 : vector<64x512xf32>
    %cst_22 = arith.constant 4.471500e-02 : f32
    %39 = vector.broadcast %cst_22 : f32 to vector<64x512xf32>
    %40 = arith.mulf %39, %36 : vector<64x512xf32>
    %41 = arith.mulf %40, %36 : vector<64x512xf32>
    %42 = arith.mulf %41, %36 : vector<64x512xf32>
    %43 = arith.addf %36, %42 : vector<64x512xf32>
    %cst_23 = arith.constant 0.797884583 : f32
    %44 = vector.broadcast %cst_23 : f32 to vector<64x512xf32>
    %45 = arith.mulf %44, %43 : vector<64x512xf32>
    %46 = math.tanh %45 : vector<64x512xf32>
    %cst_24 = arith.constant 1.000000e+00 : f32
    %47 = vector.broadcast %cst_24 : f32 to vector<64x512xf32>
    %48 = arith.addf %47, %46 : vector<64x512xf32>
    %49 = arith.mulf %38, %48 : vector<64x512xf32>
    %50 = arith.truncf %49 : vector<64x512xf32> to vector<64x512xbf16>
    %c0_25 = arith.constant 0 : index
    %c0_26 = arith.constant 0 : index
    %51 = vector.load %arg9[%c0_25, %c0_26] : memref<512x128xbf16, #tpu.memory_space<vmem>>, vector<512x128xbf16>
    %cst_27 = arith.constant dense<0.000000e+00> : vector<64x128xf32>
    %52 = tpu.matmul %50, %51, %cst_27 {dimension_numbers = #tpu.dot_dimension_numbers<[1], [0], [0], [1], [0, 0, 1, 1], [], []>} : vector<64x512xbf16>, vector<512x128xbf16>, vector<64x128xf32> -> vector<64x128xf32>
    %c0_28 = arith.constant 0 : index
    %c0_29 = arith.constant 0 : index
    %53 = vector.load %arg10[%c0_28, %c0_29] : memref<1x128xf32, #tpu.memory_space<vmem>>, vector<1x128xf32>
    %54 = vector.broadcast %53 : vector<1x128xf32> to vector<64x128xf32>
    %55 = arith.addf %52, %54 : vector<64x128xf32>
    %56 = arith.addf %55, %8 : vector<64x128xf32>
    %c0_30 = arith.constant 0 : index
    %c0_31 = arith.constant 0 : index
    %57 = vector.load %arg11[%c0_30, %c0_31] : memref<64x128xf32, #tpu.memory_space<vmem>>, vector<64x128xf32>
    tpu.vector_store %arg11[%c0_30, %c0_31], %56 {strides = array<i32>} : memref<64x128xf32, #tpu.memory_space<vmem>>, vector<64x128xf32>,
    return
  }
  func.func @transform_0(%arg0: i32) -> (i32, i32) {
    %c0_i32 = arith.constant 0 : i32
    %c0_i32_0 = arith.constant 0 : i32
    return %arg0, %c0_i32 : i32, i32
  }
  func.func @transform_1(%arg0: i32) -> (i32, i32) {
    %c0_i32 = arith.constant 0 : i32
    %c0_i32_0 = arith.constant 0 : i32
    return %arg0, %c0_i32 : i32, i32
  }
  func.func @transform_2(%arg0: i32) -> (i32, i32) {
    %c0_i32 = arith.constant 0 : i32
    %c0_i32_0 = arith.constant 0 : i32
    %c0_i32_1 = arith.constant 0 : i32
    return %c0_i32, %c0_i32_0 : i32, i32
  }
  func.func @transform_3(%arg0: i32) -> (i32, i32) {
    %c0_i32 = arith.constant 0 : i32
    %c0_i32_0 = arith.constant 0 : i32
    %c0_i32_1 = arith.constant 0 : i32
    return %c0_i32, %c0_i32_0 : i32, i32
  }
  func.func @transform_4(%arg0: i32) -> (i32, i32) {
    %c0_i32 = arith.constant 0 : i32
    %c0_i32_0 = arith.constant 0 : i32
    %c0_i32_1 = arith.constant 0 : i32
    return %c0_i32, %c0_i32_0 : i32, i32
  }
  func.func @transform_5(%arg0: i32) -> (i32, i32) {
    %c0_i32 = arith.constant 0 : i32
    %c0_i32_0 = arith.constant 0 : i32
    %c0_i32_1 = arith.constant 0 : i32
    return %c0_i32, %c0_i32_0 : i32, i32
  }
  func.func @transform_6(%arg0: i32) -> (i32, i32) {
    %c0_i32 = arith.constant 0 : i32
    %c0_i32_0 = arith.constant 0 : i32
    %c0_i32_1 = arith.constant 0 : i32
    return %c0_i32, %c0_i32_0 : i32, i32
  }
  func.func @transform_7(%arg0: i32) -> (i32, i32) {
    %c0_i32 = arith.constant 0 : i32
    %c0_i32_0 = arith.constant 0 : i32
    %c0_i32_1 = arith.constant 0 : i32
    return %c0_i32, %c0_i32_0 : i32, i32
  }
  func.func @transform_8(%arg0: i32) -> (i32, i32) {
    %c0_i32 = arith.constant 0 : i32
    %c0_i32_0 = arith.constant 0 : i32
    %c0_i32_1 = arith.constant 0 : i32
    return %c0_i32, %c0_i32_0 : i32, i32
  }
  func.func @transform_9(%arg0: i32) -> (i32, i32) {
    %c0_i32 = arith.constant 0 : i32
    %c0_i32_0 = arith.constant 0 : i32
    %c0_i32_1 = arith.constant 0 : i32
    return %c0_i32, %c0_i32_0 : i32, i32
  }
  func.func @transform_10(%arg0: i32) -> (i32, i32) {
    %c0_i32 = arith.constant 0 : i32
    %c0_i32_0 = arith.constant 0 : i32
    return %arg0, %c0_i32 : i32, i32
  }
}

module attributes {stable_mosaic.version = 11 : i64} {
  func.func @_ln_qkv_kernel(%arg0: i32, %arg1: memref<64x128xf32, #tpu.memory_space<vmem>>, %arg2: memref<1x128xf32, #tpu.memory_space<vmem>>, %arg3: memref<1x128xf32, #tpu.memory_space<vmem>>, %arg4: memref<128x384xbf16, #tpu.memory_space<vmem>>, %arg5: memref<1x384xf32, #tpu.memory_space<vmem>>, %arg6: memref<64x128xf32, #tpu.memory_space<vmem>>, %arg7: memref<64x128xf32, #tpu.memory_space<vmem>>, %arg8: memref<64x128xf32, #tpu.memory_space<vmem>>) attributes {dimension_semantics = [#tpu.dimension_semantics<parallel>], iteration_bounds = array<i64: 2>, scalar_prefetch = 0 : i64, scratch_operands = 0 : i64, tpu.core_type = #tpu.core_type<tc>, window_params = [{transform_indices = @transform_0, window_bounds = array<i64: 64, 128>}, {pipeline_mode = #tpu.pipeline_mode<synchronous>, transform_indices = @transform_1, window_bounds = array<i64: 1, 128>}, {pipeline_mode = #tpu.pipeline_mode<synchronous>, transform_indices = @transform_2, window_bounds = array<i64: 1, 128>}, {pipeline_mode = #tpu.pipeline_mode<synchronous>, transform_indices = @transform_3, window_bounds = array<i64: 128, 384>}, {pipeline_mode = #tpu.pipeline_mode<synchronous>, transform_indices = @transform_4, window_bounds = array<i64: 1, 384>}, {transform_indices = @transform_5, window_bounds = array<i64: 64, 128>}, {transform_indices = @transform_6, window_bounds = array<i64: 64, 128>}, {transform_indices = @transform_7, window_bounds = array<i64: 64, 128>}]} {
    %c0 = arith.constant 0 : index
    %c0_0 = arith.constant 0 : index
    %0 = vector.load %arg1[%c0, %c0_0] : memref<64x128xf32, #tpu.memory_space<vmem>>, vector<64x128xf32>
    %cst = arith.constant dense<0.000000e+00> : vector<64xf32>
    %1 = vector.multi_reduction <add>, %0, %cst [1] : vector<64x128xf32> to vector<64xf32>
    %2 = vector.shape_cast %1 : vector<64xf32> to vector<64x1xf32>
    %cst_1 = arith.constant 1.280000e+02 : f32
    %3 = vector.broadcast %cst_1 : f32 to vector<64x1xf32>
    %4 = arith.divf %2, %3 : vector<64x1xf32>
    %5 = vector.broadcast %4 : vector<64x1xf32> to vector<64x128xf32>
    %6 = arith.subf %0, %5 : vector<64x128xf32>
    %7 = arith.mulf %6, %6 : vector<64x128xf32>
    %cst_2 = arith.constant dense<0.000000e+00> : vector<64xf32>
    %8 = vector.multi_reduction <add>, %7, %cst_2 [1] : vector<64x128xf32> to vector<64xf32>
    %9 = vector.shape_cast %8 : vector<64xf32> to vector<64x1xf32>
    %cst_3 = arith.constant 1.280000e+02 : f32
    %10 = vector.broadcast %cst_3 : f32 to vector<64x1xf32>
    %11 = arith.divf %9, %10 : vector<64x1xf32>
    %cst_4 = arith.constant 9.99999974E-6 : f32
    %12 = vector.broadcast %cst_4 : f32 to vector<64x1xf32>
    %13 = arith.addf %11, %12 : vector<64x1xf32>
    %14 = math.rsqrt %13 : vector<64x1xf32>
    %15 = vector.broadcast %14 : vector<64x1xf32> to vector<64x128xf32>
    %16 = arith.mulf %6, %15 : vector<64x128xf32>
    %c0_5 = arith.constant 0 : index
    %c0_6 = arith.constant 0 : index
    %17 = vector.load %arg2[%c0_5, %c0_6] : memref<1x128xf32, #tpu.memory_space<vmem>>, vector<1x128xf32>
    %18 = vector.broadcast %17 : vector<1x128xf32> to vector<64x128xf32>
    %19 = arith.mulf %16, %18 : vector<64x128xf32>
    %c0_7 = arith.constant 0 : index
    %c0_8 = arith.constant 0 : index
    %20 = vector.load %arg3[%c0_7, %c0_8] : memref<1x128xf32, #tpu.memory_space<vmem>>, vector<1x128xf32>
    %21 = vector.broadcast %20 : vector<1x128xf32> to vector<64x128xf32>
    %22 = arith.addf %19, %21 : vector<64x128xf32>
    %23 = arith.truncf %22 : vector<64x128xf32> to vector<64x128xbf16>
    %c0_9 = arith.constant 0 : index
    %c0_10 = arith.constant 0 : index
    %24 = vector.load %arg4[%c0_9, %c0_10] : memref<128x384xbf16, #tpu.memory_space<vmem>>, vector<128x384xbf16>
    %cst_11 = arith.constant dense<0.000000e+00> : vector<64x384xf32>
    %25 = tpu.matmul %23, %24, %cst_11 {dimension_numbers = #tpu.dot_dimension_numbers<[1], [0], [0], [1], [0, 0, 1, 1], [], []>} : vector<64x128xbf16>, vector<128x384xbf16>, vector<64x384xf32> -> vector<64x384xf32>
    %c0_12 = arith.constant 0 : index
    %c0_13 = arith.constant 0 : index
    %26 = vector.load %arg5[%c0_12, %c0_13] : memref<1x384xf32, #tpu.memory_space<vmem>>, vector<1x384xf32>
    %27 = vector.broadcast %26 : vector<1x384xf32> to vector<64x384xf32>
    %28 = arith.addf %25, %27 : vector<64x384xf32>
    %29 = vector.extract_strided_slice %28 {offsets = [0, 0], sizes = [64, 128], strides = [1, 1]} : vector<64x384xf32> to vector<64x128xf32>
    %c0_14 = arith.constant 0 : index
    %c0_15 = arith.constant 0 : index
    %30 = vector.load %arg6[%c0_14, %c0_15] : memref<64x128xf32, #tpu.memory_space<vmem>>, vector<64x128xf32>
    tpu.vector_store %arg6[%c0_14, %c0_15], %29 {strides = array<i32>} : memref<64x128xf32, #tpu.memory_space<vmem>>, vector<64x128xf32>,
    %31 = vector.extract_strided_slice %28 {offsets = [0, 128], sizes = [64, 128], strides = [1, 1]} : vector<64x384xf32> to vector<64x128xf32>
    %c0_16 = arith.constant 0 : index
    %c0_17 = arith.constant 0 : index
    %32 = vector.load %arg7[%c0_16, %c0_17] : memref<64x128xf32, #tpu.memory_space<vmem>>, vector<64x128xf32>
    tpu.vector_store %arg7[%c0_16, %c0_17], %31 {strides = array<i32>} : memref<64x128xf32, #tpu.memory_space<vmem>>, vector<64x128xf32>,
    %33 = vector.extract_strided_slice %28 {offsets = [0, 256], sizes = [64, 128], strides = [1, 1]} : vector<64x384xf32> to vector<64x128xf32>
    %c0_18 = arith.constant 0 : index
    %c0_19 = arith.constant 0 : index
    %34 = vector.load %arg8[%c0_18, %c0_19] : memref<64x128xf32, #tpu.memory_space<vmem>>, vector<64x128xf32>
    tpu.vector_store %arg8[%c0_18, %c0_19], %33 {strides = array<i32>} : memref<64x128xf32, #tpu.memory_space<vmem>>, vector<64x128xf32>,
    return
  }
  func.func @transform_0(%arg0: i32) -> (i32, i32) {
    %c0_i32 = arith.constant 0 : i32
    %c0_i32_0 = arith.constant 0 : i32
    return %arg0, %c0_i32 : i32, i32
  }
  func.func @transform_1(%arg0: i32) -> (i32, i32) {
    %c0_i32 = arith.constant 0 : i32
    %c0_i32_0 = arith.constant 0 : i32
    %c0_i32_1 = arith.constant 0 : i32
    return %c0_i32, %c0_i32_0 : i32, i32
  }
  func.func @transform_2(%arg0: i32) -> (i32, i32) {
    %c0_i32 = arith.constant 0 : i32
    %c0_i32_0 = arith.constant 0 : i32
    %c0_i32_1 = arith.constant 0 : i32
    return %c0_i32, %c0_i32_0 : i32, i32
  }
  func.func @transform_3(%arg0: i32) -> (i32, i32) {
    %c0_i32 = arith.constant 0 : i32
    %c0_i32_0 = arith.constant 0 : i32
    %c0_i32_1 = arith.constant 0 : i32
    return %c0_i32, %c0_i32_0 : i32, i32
  }
  func.func @transform_4(%arg0: i32) -> (i32, i32) {
    %c0_i32 = arith.constant 0 : i32
    %c0_i32_0 = arith.constant 0 : i32
    %c0_i32_1 = arith.constant 0 : i32
    return %c0_i32, %c0_i32_0 : i32, i32
  }
  func.func @transform_5(%arg0: i32) -> (i32, i32) {
    %c0_i32 = arith.constant 0 : i32
    %c0_i32_0 = arith.constant 0 : i32
    return %arg0, %c0_i32 : i32, i32
  }
  func.func @transform_6(%arg0: i32) -> (i32, i32) {
    %c0_i32 = arith.constant 0 : i32
    %c0_i32_0 = arith.constant 0 : i32
    return %arg0, %c0_i32 : i32, i32
  }
  func.func @transform_7(%arg0: i32) -> (i32, i32) {
    %c0_i32 = arith.constant 0 : i32
    %c0_i32_0 = arith.constant 0 : i32
    return %arg0, %c0_i32 : i32, i32
  }
}

</mosaic_0001>

<bundles_post_ra>
// kernel: transformer_block.3
= control target key start
LH: loop header
LB: loop body
LE: loop exit
PB: predicated region body
PF: predicated region fallthrough
CT: control target
= control target key end

     0   :  { %13 = vsyncpa [#allocation3], 0  ;;  %s1523_s0 = inlined_call_operand.hbm [shape: f32[128,128], index: 0, kind: input, shape index: {}]   ;;  %s1524_s1 = inlined_call_operand.vmem [shape: f32[1,128], index: 1, kind: input, shape index: {}]   ;;  %s1525_s2 = inlined_call_operand.vmem [shape: f32[1,128], index: 2, kind: input, shape index: {}]   ;;  %s1526_s3 = inlined_call_operand.hbm [shape: bf16[128,384], index: 3, kind: input, shape index: {}]   ;;  %s1527_s4 = inlined_call_operand.vmem [shape: f32[1,384], index: 4, kind: input, shape index: {}]   ;;  %s1528_s5 = inlined_call_operand.vmem [shape: f32[128,128], index: 5, kind: output, shape index: {0}]   ;;  %s1529_s6 = inlined_call_operand.vmem [shape: f32[128,128], index: 6, kind: output, shape index: {1}]   ;;  %s1530_s7 = inlined_call_operand.vmem [shape: f32[128,128], index: 7, kind: output, shape index: {2}]  }
   0x1   :  { %15 = vsyncpa [#allocation3 + $0x1], 0 }
   0x2   :  { %16 = vsyncpa [#allocation5], 0  ;;  %s1285_s24 = smov 0   ;;  %s1287_s25 = smov 0  }
   0x3   :  { %s1289_s26 = smov 0   ;;  %s1291_s27 = smov 0  }
   0x4 LB: > { %s959_s28 = sadd.s32 4294967295, %s1236_s27   ;;  %p42_p0 = scmp.ne.s32.totalorder %s1228_s25, %s1224_s24  ;;  %s1236_s27 = sphi %s1291_s27, %s1546_s27   ;;  %s1232_s26 = sphi %s1289_s26, %s1545_s26   ;;  %s1228_s25 = sphi %s1287_s25, %s1544_s25   ;;  %s1224_s24 = sphi %s1285_s24, %s1543_s24  }
   0x5   : > { %p1307_p1 = scmp.eq.s32.totalorder %s959_s28, 0  ;;  %p961_p2 = scmp.ge.s32.totalorder %s1236_s27, 1 }
   0x6   : > { %p215_p3 = scmp.lt.s32.totalorder %s1236_s27, 3  ;;  %s1238_s9 = smov [#allocation4]  }
   0x7   : > { %s1535_s29 = scalar_select %p1307_p1, 1, 0 }
   0x8   : > { %p1315_p4 = por %p1307_p1, %p42_p0  ;;  %p1319_p5 = pnand %p961_p2, %p215_p3 }
   0x9   : > { %s233_s10 = sshll.u32 %s1238_s9, 4  ;;  %s1332_s12 = sadd.s32 1, %s1236_s27   ;;  %s234_s10 = int_to_ptr.vmem [resolvable:$true] %s233_s10 }
   0xa   : > { %s1536_s30 = scalar_select %p1315_p4, 1, 0 }
   0xb   : > { %s1537_s8 = scalar_select %p1319_p5, 1, 0 }
   0xc   : > { %p1047_p6 = pneg %p1319_p5  ;;  %s29_s13 = sadd.s32 1, %s1232_s26 }
   0xd   : > { %s26_s14 = ssub.s32 %s1236_s27, %s1332_s12  ;;  %s1155_s15 = scalar_lea.vmem %s234_s10, 3072 }
   0xe   : > { %p1327_p7 = pnand %p1047_p6, %p1307_p1  ;;  %p1156_p9 = scmp.ne.s32.totalorder %s234_s10, %s1155_s15 }
   0xf   : > { %p1163_p12 = scmp.lt.s32.totalorder %s234_s10, %s234_s10  ;;  %p1164_p13 = scmp.lt.s32.totalorder %s1155_s15, %s1155_s15 }
  0x10   : > { %p1146_p8 = pneg %p1327_p7 }
  0x11   : > { %p1165_p0 = por %p1164_p13, %p1163_p12 }
  0x12   : > { %p1158_p10 = pnand %p1156_p9, %p1146_p8 }
  0x14   : > { %p1159_p11 = pneg %p1158_p10 }
  0x16   : > { %p1166_p2 = pnand %p1165_p0, %p1159_p11 }
  0x18   : > { %1169 = shalt.err (!%p1166_p2)
}
  0x19   : > { %s1239_s16 = smov 192   ;;  %s1240_s17 = smov 12  }
  0x1a   : > { %1050 = dma.hbm_to_vmem [thread:$0]  (!%p1327_p7), %s1526_s3, 3072, %s234_s10, [#allocation5], %s1239_s16, %s1239_s16, %s1240_s17  }
  0x1b   : > { %p27_p3 = scmp.eq.s32.totalorder %s26_s14, 0  ;;  %p36_p6 = scmp.ne.s32.totalorder %s1232_s26, %s1228_s25 }
  0x1c   : > { %p37_p8 = scmp.eq.s32.totalorder %s1236_s27, 0  ;;  %p1056_p9 = scmp.lt.s32.totalorder %s1236_s27, 2 }
  0x1d   : > { %s1349_s20 = scalar_select %p27_p3, %s1232_s26, %s29_s13  }
  0x1e   : > { %p38_p10 = por %p37_p8, %p36_p6  ;;  %s250_s21 = sand.u32 1, %s1232_s26  }
  0x1f   : > { %s964_s22 = sshll.u32 %s250_s21, 6  ;;  %s1004_s23 = sshll.u32 %s1236_s27, 10 }
  0x20   : > { %s1356_s15 = scalar_lea.hbm %s1523_s0, %s1004_s23  ;;  %s254_s11 = scalar_lea.vmem [#allocation2], %s964_s22 }
  0x21   : > { %s261_s10 = sshll.u32 %s254_s11, 4  ;;  %p1360_p7 = pnand %p1056_p9, %p38_p10  ;;  %s1358_s10 = int_to_ptr.vmem [resolvable:$true] %s261_s10 }
  0x22   : > { %s1364_s13 = scalar_lea.sflag [#allocation3], %s250_s21  ;;  %s1170_s16 = scalar_lea.hbm %s1356_s15, 1024 }
  0x23   : > { %p1171_p11 = scmp.ne.s32.totalorder %s1356_s15, %s1170_s16  ;;  %p1172_p12 = pneg %p1360_p7 }
  0x24   : > { %s1175_s19 = scalar_lea.hbm %s1523_s0, 2048  ;;  %p1176_p2 = scmp.lt.s32.totalorder %s1356_s15, %s1523_s0 }
  0x25   : > { %p1173_p13 = pnand %p1172_p12, %p1171_p11  ;;  %p1177_p3 = scmp.lt.s32.totalorder %s1175_s19, %s1170_s16 }
  0x27   : > { %p1174_p0 = pneg %p1173_p13  ;;  %p1178_p6 = por %p1177_p3, %p1176_p2 }
  0x29   : > { %p1179_p8 = pnand %p1178_p6, %p1174_p0 }
  0x2b   : > { %1182 = shalt.err (!%p1179_p8)
}
  0x2c   : > { %s1183_s21 = scalar_lea.vmem %s1358_s10, 1024  ;;  %s1241_s24 = smov [#allocation2]  }
  0x2d   : > { %p1184_p9 = scmp.ne.s32.totalorder %s1358_s10, %s1183_s21  ;;  %s1188_s9 = sshll.u32 %s1241_s24, 4  ;;  %s1189_s9 = int_to_ptr.vmem [resolvable:$false] %s1188_s9 }
  0x2e   : > { %s1190_s11 = scalar_lea.vmem %s1189_s9, 2048  ;;  %p1191_p13 = scmp.lt.s32.totalorder %s1358_s10, %s1189_s9 }
  0x2f   : > { %p1186_p10 = pnand %p1184_p9, %p1172_p12  ;;  %p1192_p1 = scmp.lt.s32.totalorder %s1190_s11, %s1183_s21 }
  0x31   : > { %p1187_p11 = pneg %p1186_p10  ;;  %p1193_p4 = por %p1192_p1, %p1191_p13 }
  0x33   : > { %p1194_p5 = pnand %p1193_p4, %p1187_p11 }
  0x35   : > { %1197 = shalt.err (!%p1194_p5)
}
  0x36   : > { %s1242_s16 = smov 128   ;;  %s1243_s17 = smov 8  }
  0x37   : > { %1054 = dma.hbm_to_vmem [thread:$0]  (!%p1360_p7), %s1356_s15, 1024, %s1358_s10, %s1364_s13, %s1242_s16, %s1242_s16, %s1243_s17  }
  0x38   : > { %p1540_p12 = scmp.ne.s32.totalorder %s1537_s8, 0 }
  0x39   : > { %s275_s18 = sand.u32 (!%p1540_p12), 1, %s1228_s25   ;;  %p1541_p1 = scmp.ne.s32.totalorder (!%p1540_p12), %s1536_s30, 0 }
  0x3a   : > { %273 = sbr.rel (%p1540_p12) target bundleno = 606 (0x25e), region = 40  ;;  %s968_s19 = sshll.u32 (!%p1540_p12), %s275_s18, 6 }
  0x3b   : > { %s276_s22 = scalar_lea.sflag (!%p1540_p12), [#allocation3], %s275_s18  ;;  %s279_s23 = scalar_lea.vmem (!%p1540_p12), [#allocation2], %s968_s19 }
  0x3f   : > { %1215 = dma.done.wait (%p1541_p1), %s276_s22, 1024  }
  0x40   : > { %1217 = vsyncadd (%p1541_p1), %s276_s22, 4294966272  ;;  %p1542_p4 = scmp.ne.s32.totalorder %s1535_s29, 0 }
  0x42   : > { %1219 = dma.done.wait (%p1542_p4), [#allocation5], 3072  }
  0x43   : > { %1221 = vsyncadd (%p1542_p4), [#allocation5], 4294964224  ;;  %v344_v0 = vld [vmem:[%s279_s23] sm:$0xff]  ;;  %v346_v1 = vld [vmem:[%s279_s23 + $0x10] sm:$0xff]  ;;  %v1244_v62 = vmov 0   ;;  %s970_s10 = sshll.u32 %s959_s28, 3 }
  0x44   : > { %352 = vadd.xlane.f32.xlu0 %v344_v0  ;;  %356 = vadd.xlane.f32.xlu1 %v346_v1  ;;  %v345_v2 = vld [vmem:[%s279_s23 + $0x8] sm:$0xff]  ;;  %v347_v3 = vld [vmem:[%s279_s23 + $0x18] sm:$0xff]  ;;  %v348_v4 = vld [vmem:[%s279_s23 + $0x20] sm:$0xff]  ;;  %p326_p5 = scmp.lt.s32.totalorder %s970_s10, 15 }
  0x45   : > { %v349_v5 = vld [vmem:[%s279_s23 + $0x28] sm:$0xff]  ;;  %v350_v6 = vld [vmem:[%s279_s23 + $0x30] sm:$0xff]  ;;  %v351_v7 = vld [vmem:[%s279_s23 + $0x38] sm:$0xff]  ;;  %684 = vmatprep.mubr.bf16.mxu0 %v1244_v62 }
  0x46   : > { %v1096_v8 = vld [vmem:[#allocation4 + $0xac] ss:$12 sps:$4 sm:$0xff]   ;;  %v1098_v9 = vld [vmem:[#allocation4 + $0xa8] ss:$12 sps:$4 sm:$0xff]   ;;  %v1101_v42 = vld [vmem:[#allocation4 + $0xb0] ss:$12 sps:$4 sm:$0xff]  }
  0x47   : > { %652 = vmatprep.subr.bf16.mxu0 %v1096_v8  ;;  %v1099_v41 = vld [vmem:[#allocation4 + $0x94] ss:$12 sps:$4 sm:$0xff]   ;;  %v1102_v43 = vld [vmem:[#allocation4 + $0x90] ss:$12 sps:$4 sm:$0xff]   ;;  %1017 = vmatprep.subr.bf16.mxu1 %v1101_v42  ;;  %v1105_v46 = vld [vmem:[#allocation4 + $0x98] ss:$12 sps:$4 sm:$0xff]  }
  0x48   : > { %354 = vadd.xlane.f32.xlu0 %v345_v2  ;;  %358 = vadd.xlane.f32.xlu1 %v347_v3  ;;  %v1103_v45 = vld [vmem:[#allocation4 + $0x7c] ss:$12 sps:$4 sm:$0xff]   ;;  %v1106_v47 = vld [vmem:[#allocation4 + $0x78] ss:$12 sps:$4 sm:$0xff]   ;;  %v1109_v49 = vld [vmem:[#allocation4 + $0x80] ss:$12 sps:$4 sm:$0xff]  }
  0x49   : > { %653 = vmatpush1.bf16.msra.mxu0 %v1098_v9  ;;  %1018 = vmatpush3.bf16.msra.mxu1 %v1101_v42  ;;  %v1107_v48 = vld [vmem:[#allocation4 + $0x64] ss:$12 sps:$4 sm:$0xff]   ;;  %v1110_v50 = vld [vmem:[#allocation4 + $0x60] ss:$12 sps:$4 sm:$0xff]   ;;  %v1113_v52 = vld [vmem:[#allocation4 + $0x68] ss:$12 sps:$4 sm:$0xff]  }
  0x4a   : > { %654 = vmatprep.subr.bf16.mxu0 %v1099_v41  ;;  %1019 = vmatprep.subr.bf16.mxu1 %v1105_v46  ;;  %v1111_v51 = vld [vmem:[#allocation4 + $0x4c] ss:$12 sps:$4 sm:$0xff]   ;;  %v1114_v53 = vld [vmem:[#allocation4 + $0x48] ss:$12 sps:$4 sm:$0xff]   ;;  %v1117_v55 = vld [vmem:[#allocation4 + $0x50] ss:$12 sps:$4 sm:$0xff]  }
  0x4b   : > { %v1115_v54 = vld [vmem:[#allocation4 + $0x34] ss:$12 sps:$4 sm:$0xff]   ;;  %v1118_v56 = vld [vmem:[#allocation4 + $0x30] ss:$12 sps:$4 sm:$0xff]   ;;  %v1121_v58 = vld [vmem:[#allocation4 + $0x38] ss:$12 sps:$4 sm:$0xff]  }
  0x4c   : > { %360 = vadd.xlane.f32.xlu0 %v348_v4  ;;  %362 = vadd.xlane.f32.xlu1 %v349_v5  ;;  %v1119_v57 = vld [vmem:[#allocation4 + $0x1c] ss:$12 sps:$4 sm:$0xff]   ;;  %v1122_v59 = vld [vmem:[#allocation4 + $0x18] ss:$12 sps:$4 sm:$0xff]   ;;  %v1125_v61 = vld [vmem:[#allocation4 + $0x20] ss:$12 sps:$4 sm:$0xff]  }
  0x4d   : > { %655 = vmatpush1.bf16.msra.mxu0 %v1102_v43  ;;  %1020 = vmatpush3.bf16.msra.mxu1 %v1105_v46  ;;  %v1123_v60 = vld [vmem:[#allocation4 + $0x4] ss:$12 sps:$4 sm:$0xff]   ;;  %v1126_v63 = vld [vmem:[#allocation4] ss:$12 sps:$4 sm:$0xff]   ;;  %s1548_s10 = smov (!%p326_p5, %s970_s10), 15 }
  0x4e   : > { %656 = vmatprep.subr.bf16.mxu0 %v1103_v45  ;;  %1021 = vmatprep.subr.bf16.mxu1 %v1109_v49  ;;  %s971_s21 = sshll.u32 %s1548_s10, 3 }
  0x4f   : > { %s1458_s27 = scalar_lea.vmem %s1528_s5, %s971_s21  ;;  %s1464_s16 = scalar_lea.vmem %s1529_s6, %s971_s21 }
  0x50   : > { %364 = vadd.xlane.f32.xlu0 %v350_v6  ;;  %366 = vadd.xlane.f32.xlu1 %v351_v7  ;;  %s1471_s19 = scalar_lea.vmem %s1530_s7, %s971_s21 }
  0x51   : > { %657 = vmatpush1.bf16.msra.mxu0 %v1106_v47  ;;  %1022 = vmatpush3.bf16.msra.mxu1 %v1109_v49 }
  0x52   : > { %658 = vmatprep.subr.bf16.mxu0 %v1107_v48  ;;  %1023 = vmatprep.subr.bf16.mxu1 %v1113_v52 }
  0x55   : > { %659 = vmatpush1.bf16.msra.mxu0 %v1110_v50  ;;  %1024 = vmatpush3.bf16.msra.mxu1 %v1113_v52 }
  0x56   : > { %660 = vmatprep.subr.bf16.mxu0 %v1111_v51  ;;  %1025 = vmatprep.subr.bf16.mxu1 %v1117_v55 }
  0x59   : > { %661 = vmatpush1.bf16.msra.mxu0 %v1114_v53  ;;  %1026 = vmatpush3.bf16.msra.mxu1 %v1117_v55 }
  0x5a   : > { %662 = vmatprep.subr.bf16.mxu0 %v1115_v54  ;;  %1027 = vmatprep.subr.bf16.mxu1 %v1121_v58 }
  0x5d   : > { %663 = vmatpush1.bf16.msra.mxu0 %v1118_v56  ;;  %1028 = vmatpush3.bf16.msra.mxu1 %v1121_v58 }
  0x5e   : > { %664 = vmatprep.subr.bf16.mxu0 %v1119_v57  ;;  %1029 = vmatprep.subr.bf16.mxu1 %v1125_v61 }
  0x61   : > { %665 = vmatpush1.bf16.msra.mxu0 %v1122_v59  ;;  %1030 = vmatpush3.bf16.msra.mxu1 %v1125_v61 }
  0x62   : > { %666 = vmatprep.subr.bf16.mxu0 %v1123_v60 }
  0x65   : > { %667 = vmatpush1.bf16.msra.mxu0 %v1126_v63 }
  0xcd   : > { %v353_v10 = vpop.xlane.xlu0 %352  ;;  %v357_v11 = vpop.xlane.xlu1 %356 }
  0xce   : > { %v369_v12 = vmul.f32 0.0078125, %v353_v10  ;;  %v371_v13 = vmul.f32 0.0078125, %v357_v11 }
  0xd0   : > { %v1396_v14 = vsub.f32 %v344_v0, %v369_v12  ;;  %v1398_v15 = vsub.f32 %v346_v1, %v371_v13  ;;  %v1127_v0 = vld [vmem:[#allocation4 + $0x8] ss:$12 sps:$4 sm:$0xff]  }
  0xd1   : > { %v355_v16 = vpop.xlane.xlu0 %354  ;;  %v359_v17 = vpop.xlane.xlu1 %358  ;;  %1031 = vmatprep.subr.bf16.mxu1 %v1127_v0 }
  0xd2   : > { %v370_v18 = vmul.f32 0.0078125, %v355_v16  ;;  %v385_v19 = vmul.f32 %v1396_v14, %v1396_v14  ;;  %v372_v20 = vmul.f32 0.0078125, %v359_v17  ;;  %v387_v23 = vmul.f32 %v1398_v15, %v1398_v15  ;;  %1032 = vmatpush3.bf16.msra.mxu1 %v1127_v0 }
  0xd4   : > { %v1402_v21 = vsub.f32 %v345_v2, %v370_v18  ;;  %393 = vadd.xlane.f32.xlu0 %v385_v19  ;;  %v1404_v22 = vsub.f32 %v347_v3, %v372_v20 }
  0xd5   : > { %v361_v24 = vpop.xlane.xlu0 %360  ;;  %v363_v25 = vpop.xlane.xlu1 %362 }
  0xd6   : > { %v373_v26 = vmul.f32 0.0078125, %v361_v24  ;;  %v386_v27 = vmul.f32 %v1402_v21, %v1402_v21  ;;  %v374_v28 = vmul.f32 0.0078125, %v363_v25  ;;  %v388_v31 = vmul.f32 %v1404_v22, %v1404_v22 }
  0xd8   : > { %v1410_v29 = vsub.f32 %v348_v4, %v373_v26  ;;  %397 = vadd.xlane.f32.xlu0 %v387_v23  ;;  %395 = vadd.xlane.f32.xlu1 %v386_v27  ;;  %v1412_v30 = vsub.f32 %v349_v5, %v374_v28 }
  0xd9   : > { %v365_v32 = vpop.xlane.xlu0 %364  ;;  %v367_v33 = vpop.xlane.xlu1 %366 }
  0xda   : > { %v375_v34 = vmul.f32 0.0078125, %v365_v32  ;;  %v389_v35 = vmul.f32 %v1410_v29, %v1410_v29  ;;  %v376_v36 = vmul.f32 0.0078125, %v367_v33  ;;  %v390_v39 = vmul.f32 %v1412_v30, %v1412_v30  ;;  %v976_v33 = vld [vmem:[%s1524_s1] ss:$0 sm:$0xff] }
  0xdc   : > { %v1418_v37 = vsub.f32 %v350_v6, %v375_v34  ;;  %399 = vadd.xlane.f32.xlu1 %v388_v31  ;;  %401 = vadd.xlane.f32.xlu0 %v389_v35  ;;  %v1420_v38 = vsub.f32 %v351_v7, %v376_v36 }
  0xde   : > { %v391_v40 = vmul.f32 %v1418_v37, %v1418_v37  ;;  %v392_v44 = vmul.f32 %v1420_v38, %v1420_v38 }
  0xe0   : > { %403 = vadd.xlane.f32.xlu1 %v390_v39  ;;  %405 = vadd.xlane.f32.xlu0 %v391_v40  ;;  %v977_v40 = vld [vmem:[%s1525_s2] ss:$0 sm:$0xff] }
  0xe4   : > { %407 = vadd.xlane.f32.xlu1 %v392_v44 }
 0x15d   : > { %v394_v1 = vpop.xlane.xlu0 %393 }
 0x15e   : > { %v409_v2 = vmul.f32 0.0078125, %v394_v1 }
 0x160   : > { %v417_v3 = vadd.f32 1e-05, %v409_v2 }
 0x161   : > { %v396_v4 = vpop.xlane.xlu1 %395  ;;  %v398_v5 = vpop.xlane.xlu0 %397 }
 0x162   : > { %1128 = vrsqrt.f32 %v417_v3  ;;  %v410_v6 = vmul.f32 0.0078125, %v396_v4  ;;  %v411_v7 = vmul.f32 0.0078125, %v398_v5  ;;  %v507_v3 = vld [vmem:[%s1527_s4] sm:$0x7] }
 0x164   : > { %v418_v8 = vadd.f32 1e-05, %v410_v6  ;;  %v419_v9 = vadd.f32 1e-05, %v411_v7 }
 0x165   : > { %v400_v10 = vpop.xlane.xlu1 %399  ;;  %v402_v11 = vpop.xlane.xlu0 %401 }
 0x166   : > { %1130 = vrsqrt.f32 %v418_v8  ;;  %v412_v12 = vmul.f32 0.0078125, %v400_v10  ;;  %v413_v13 = vmul.f32 0.0078125, %v402_v11 }
 0x167   : > { %1132 = vrsqrt.f32 %v419_v9 }
 0x168   : > { %v420_v16 = vadd.f32 1e-05, %v412_v12  ;;  %v421_v17 = vadd.f32 1e-05, %v413_v13 }
 0x169   : > { %v404_v18 = vpop.xlane.xlu1 %403  ;;  %v406_v19 = vpop.xlane.xlu0 %405 }
 0x16a   : > { %1134 = vrsqrt.f32 %v420_v16  ;;  %v414_v20 = vmul.f32 0.0078125, %v404_v18  ;;  %v415_v23 = vmul.f32 0.0078125, %v406_v19 }
 0x16b   : > { %1136 = vrsqrt.f32 %v421_v17 }
 0x16c   : > { %v422_v24 = vadd.f32 1e-05, %v414_v20  ;;  %v423_v25 = vadd.f32 1e-05, %v415_v23 }
 0x16d   : > { %v408_v26 = vpop.xlane.xlu1 %407 }
 0x16e   : > { %1138 = vrsqrt.f32 %v422_v24  ;;  %v416_v27 = vmul.f32 0.0078125, %v408_v26 }
 0x16f   : > { %v1129_v28 = vpop.eup %1128  ;;  %1140 = vrsqrt.f32 %v423_v25 }
 0x170   : > { %v424_v31 = vadd.f32 1e-05, %v416_v27  ;;  %v433_v32 = vmul.f32 %v1129_v28, %v1396_v14 }
 0x172   : > { %1142 = vrsqrt.f32 %v424_v31  ;;  %v448_v39 = vmul.f32 %v976_v33, %v433_v32 }
 0x173   : > { %v1131_v34 = vpop.eup %1130 }
 0x174   : > { %v1133_v35 = vpop.eup %1132  ;;  %v434_v36 = vmul.f32 %v1131_v34, %v1402_v21  ;;  %v463_v45 = vadd.f32 %v977_v40, %v448_v39 }
 0x175   : > { %v435_v41 = vmul.f32 %v1133_v35, %v1398_v15 }
 0x176   : > { %v449_v42 = vmul.f32 %v976_v33, %v434_v36 }
 0x177   : > { %v1135_v43 = vpop.eup %1134  ;;  %v450_v44 = vmul.f32 %v976_v33, %v435_v41 }
 0x178   : > { %v1137_v14 = vpop.eup %1136  ;;  %v464_v46 = vadd.f32 %v977_v40, %v449_v42  ;;  %v436_v47 = vmul.f32 %v1135_v43, %v1404_v22 }
 0x179   : > { %v437_v48 = vmul.f32 %v1137_v14, %v1410_v29  ;;  %v465_v51 = vadd.f32 %v977_v40, %v450_v44 }
 0x17a   : > { %v471_v49 = vpack.c.bf16 %v464_v46, %v463_v45  ;;  %v451_v50 = vmul.f32 %v976_v33, %v436_v47 }
 0x17b   : > { %v1139_v21 = vpop.eup %1138  ;;  %v452_v54 = vmul.f32 %v976_v33, %v437_v48 }
 0x17c   : > { %v1141_v52 = vpop.eup %1140  ;;  %685 = vmatmul.mubr.bf16.vlgmr.msra.gmra.mxu0 %v471_v49  ;;  %1033 = vmatprep.mubr.bf16.mxu1 %v471_v49  ;;  %v466_v53 = vadd.f32 %v977_v40, %v451_v50  ;;  %v438_v15 = vmul.f32 %v1139_v21, %v1412_v30 }
 0x17d   : > { %694 = vmatprep.mubr.bf16.mxu0 %v1244_v62  ;;  %v439_v55 = vmul.f32 %v1141_v52, %v1418_v37  ;;  %v467_v29 = vadd.f32 %v977_v40, %v452_v54  ;;  %v509_v37 = vlaneseq }
 0x17e   : > { %v472_v56 = vpack.c.bf16 %v466_v53, %v465_v51  ;;  %v453_v57 = vmul.f32 %v976_v33, %v438_v15 }
 0x17f   : > { %v1143_v22 = vpop.eup %1142  ;;  %v454_v60 = vmul.f32 %v976_v33, %v439_v55 }
 0x180   : > { %1034 = vmatmul.mubr.bf16.vlgmr.msra.gmra.mxu1 %v472_v56  ;;  %v468_v58 = vadd.f32 %v977_v40, %v453_v57  ;;  %v440_v59 = vmul.f32 %v1143_v22, %v1420_v38  ;;  %v510_v38 = vshrl.u32 %v509_v37, 7 }
 0x181   : > { %v469_v30 = vadd.f32 %v977_v40, %v454_v60 }
 0x182   : > { %v473_v61 = vpack.c.bf16 %v468_v58, %v467_v29  ;;  %v455_v63 = vmul.f32 %v976_v33, %v440_v59  ;;  %v511_v2 = vsub.s32 0, %v510_v38  ;;  %v515_v4 = vsub.s32 1, %v510_v38 }
 0x183   : > { %v519_v6 = vsub.s32 2, %v510_v38 }
 0x184   : > { %695 = vmatmul.mubr.bf16.gmra.mxu0 %v472_v56  ;;  %1037 = vmatprep.mubr.bf16.mxu1 %v473_v61  ;;  %v470_v0 = vadd.f32 %v977_v40, %v455_v63  ;;  %v1451_v5 = vrot.slane %v507_v3, %v511_v2  ;;  %v1453_v7 = vrot.slane %v507_v3, %v515_v4 }
 0x185   : > { %704 = vmatprep.mubr.bf16.mxu0 %v1244_v62  ;;  %v520_v9 = vrot.slane %v507_v3, %v519_v6 }
 0x186   : > { %v474_v1 = vpack.c.bf16 %v470_v0, %v469_v30 }
 0x188   : > { %1038 = vmatmul.mubr.bf16.gmra.mxu1 %v474_v1 }
 0x18c   : > { %705 = vmatmul.mubr.bf16.gmra.mxu0 %v473_v61 }
 0x18d   : > { %714 = vmatprep.mubr.bf16.mxu0 %v1244_v62 }
 0x194   : > { %715 = vmatmul.mubr.bf16.gmra.mxu0 %v474_v1 }
 0x23c   : > { %v686_v62 = vpop.f32.mrf.mxu0 }
 0x23d   : > { %v687_v8 = vadd.f32 %v686_v62, %v1451_v5 }
 0x23e   : > { %v688_v10 = vpop.f32.mrf.mxu0 }
 0x23f   : > { %790 = vst [vmem:[%s1458_s27] sm:$0xff] %v687_v8  ;;  %v689_v11 = vadd.f32 %v688_v10, %v1453_v7 }
 0x240   : > { %v690_v12 = vpop.f32.mrf.mxu0  ;;  %v1035_v13 = vpop.f32.mrf.mxu1 }
 0x241   : > { %798 = vst [vmem:[%s1464_s16] sm:$0xff] %v689_v11  ;;  %v691_v16 = vadd.f32 %v690_v12, %v1451_v5  ;;  %v768_v17 = vadd.f32 %v1035_v13, %v520_v9 }
 0x242   : > { %v692_v18 = vpop.f32.mrf.mxu0  ;;  %v759_v19 = vpop.f32.mrf.mxu1 }
 0x243   : > { %791 = vst [vmem:[%s1458_s27 + $0x8] sm:$0xff] %v691_v16  ;;  %808 = vst [vmem:[%s1471_s19 + $0x10] sm:$0xff] %v768_v17  ;;  %v693_v20 = vadd.f32 %v692_v18, %v1453_v7  ;;  %v760_v23 = vadd.f32 %v759_v19, %v520_v9 }
 0x244   : > { %v696_v24 = vpop.f32.mrf.mxu0  ;;  %v1036_v25 = vpop.f32.mrf.mxu1 }
 0x245   : > { %799 = vst [vmem:[%s1464_s16 + $0x8] sm:$0xff] %v693_v20  ;;  %806 = vst [vmem:[%s1471_s19] sm:$0xff] %v760_v23  ;;  %v697_v26 = vadd.f32 %v696_v24, %v1451_v5  ;;  %v771_v27 = vadd.f32 %v1036_v25, %v520_v9 }
 0x246   : > { %v698_v28 = vpop.f32.mrf.mxu0  ;;  %v762_v31 = vpop.f32.mrf.mxu1 }
 0x247   : > { %792 = vst [vmem:[%s1458_s27 + $0x10] sm:$0xff] %v697_v26  ;;  %809 = vst [vmem:[%s1471_s19 + $0x18] sm:$0xff] %v771_v27  ;;  %v699_v32 = vadd.f32 %v698_v28, %v1453_v7  ;;  %v763_v33 = vadd.f32 %v762_v31, %v520_v9 }
 0x248   : > { %v700_v34 = vpop.f32.mrf.mxu0  ;;  %v1039_v35 = vpop.f32.mrf.mxu1 }
 0x249   : > { %800 = vst [vmem:[%s1464_s16 + $0x10] sm:$0xff] %v699_v32  ;;  %807 = vst [vmem:[%s1471_s19 + $0x8] sm:$0xff] %v763_v33  ;;  %v701_v36 = vadd.f32 %v700_v34, %v1451_v5  ;;  %v784_v39 = vadd.f32 %v1039_v35, %v520_v9 }
 0x24a   : > { %v702_v40 = vpop.f32.mrf.mxu0  ;;  %v775_v41 = vpop.f32.mrf.mxu1 }
 0x24b   : > { %793 = vst [vmem:[%s1458_s27 + $0x18] sm:$0xff] %v701_v36  ;;  %812 = vst [vmem:[%s1471_s19 + $0x30] sm:$0xff] %v784_v39  ;;  %v703_v42 = vadd.f32 %v702_v40, %v1453_v7  ;;  %v776_v43 = vadd.f32 %v775_v41, %v520_v9 }
 0x24c   : > { %v706_v44 = vpop.f32.mrf.mxu0  ;;  %v1040_v14 = vpop.f32.mrf.mxu1 }
 0x24d   : > { %801 = vst [vmem:[%s1464_s16 + $0x18] sm:$0xff] %v703_v42  ;;  %810 = vst [vmem:[%s1471_s19 + $0x20] sm:$0xff] %v776_v43  ;;  %v707_v45 = vadd.f32 %v706_v44, %v1451_v5  ;;  %v787_v46 = vadd.f32 %v1040_v14, %v520_v9 }
 0x24e   : > { %v708_v47 = vpop.f32.mrf.mxu0  ;;  %v778_v48 = vpop.f32.mrf.mxu1 }
 0x24f   : > { %794 = vst [vmem:[%s1458_s27 + $0x20] sm:$0xff] %v707_v45  ;;  %813 = vst [vmem:[%s1471_s19 + $0x38] sm:$0xff] %v787_v46  ;;  %v709_v49 = vadd.f32 %v708_v47, %v1453_v7  ;;  %v779_v50 = vadd.f32 %v778_v48, %v520_v9 }
 0x250   : > { %v710_v21 = vpop.f32.mrf.mxu0 }
 0x251   : > { %802 = vst [vmem:[%s1464_s16 + $0x20] sm:$0xff] %v709_v49  ;;  %811 = vst [vmem:[%s1471_s19 + $0x28] sm:$0xff] %v779_v50  ;;  %v711_v51 = vadd.f32 %v710_v21, %v1451_v5 }
 0x252   : > { %v712_v52 = vpop.f32.mrf.mxu0 }
 0x253   : > { %795 = vst [vmem:[%s1458_s27 + $0x28] sm:$0xff] %v711_v51  ;;  %v713_v53 = vadd.f32 %v712_v52, %v1453_v7 }
 0x254   : > { %v716_v15 = vpop.f32.mrf.mxu0 }
 0x255   : > { %803 = vst [vmem:[%s1464_s16 + $0x28] sm:$0xff] %v713_v53  ;;  %v717_v54 = vadd.f32 %v716_v15, %v1451_v5 }
 0x256   : > { %v718_v55 = vpop.f32.mrf.mxu0 }
 0x257   : > { %796 = vst [vmem:[%s1458_s27 + $0x30] sm:$0xff] %v717_v54  ;;  %v719_v56 = vadd.f32 %v718_v55, %v1453_v7 }
 0x258   : > { %v720_v57 = vpop.f32.mrf.mxu0 }
 0x259   : > { %804 = vst [vmem:[%s1464_s16 + $0x30] sm:$0xff] %v719_v56  ;;  %v721_v22 = vadd.f32 %v720_v57, %v1451_v5 }
 0x25a   : > { %v722_v29 = vpop.f32.mrf.mxu0 }
 0x25b   : > { %797 = vst [vmem:[%s1458_s27 + $0x38] sm:$0xff] %v721_v22  ;;  %v723_v58 = vadd.f32 %v722_v29, %v1453_v7 }
 0x25d   : > { %805 = vst [vmem:[%s1464_s16 + $0x38] sm:$0xff] %v723_v58 }
 0x25e PF: > { %p19_p7 = scmp.ge.s32.totalorder %s1332_s12, 4   ;;  %s1543_s24 = smov %s1228_s25 }
 0x25f   : > { %s1544_s25 = smov %s1232_s26  ;;  %s1545_s26 = smov %s1349_s20 }
 0x260   : > { %s1546_s27 = smov %s1332_s12  ;;  %21 = sbr.rel (!%p19_p7) target bundleno = 4 (0x4), region = 108 }
 0x265   :  { %870 = vsyncpa [#allocation3], 1 }
 0x266   :  { %872 = vsyncpa [#allocation3 + $0x1], 1 }
 0x267   :  { %873 = vsyncpa [#allocation5], 1 }

// kernel: transformer_block.4
= control target key start
LH: loop header
LB: loop body
LE: loop exit
PB: predicated region body
PF: predicated region fallthrough
CT: control target
= control target key end

     0   :  { %s2098_s12 = smov 0   ;;  %s2716_s0 = inlined_call_operand.vmem [shape: f32[2,64,128], index: 0, kind: input, shape index: {}]   ;;  %s2717_s1 = inlined_call_operand.vmem [shape: f32[2,64,128], index: 1, kind: input, shape index: {}]   ;;  %s2718_s2 = inlined_call_operand.vmem [shape: f32[2,64,128], index: 2, kind: input, shape index: {}]   ;;  %s2719_s3 = inlined_call_operand.vmem [shape: f32[2,64,128], index: 3, kind: output, shape index: {}]  }
   0x1 LB: > { %s1669_s13 = sadd.s32 4294967295, %s2073_s12   ;;  %p1673_p0 = scmp.ge.s32.totalorder %s2073_s12, 1  ;;  %s2073_s12 = sphi %s2098_s12, %s13_s12  }
   0x2   : > { %p157_p1 = scmp.lt.s32.totalorder %s2073_s12, 3 }
   0x4   : > { %p158_p2 = pnand %p1673_p0, %p157_p1 }
   0x5   : > { %p191_p3 = scmp.lt.s32.totalorder (!%p158_p2), %s1669_s13, 1  ;;  %s2075_s24 = smov (!%p158_p2), 96  }
   0x6   : > { %161 = sbr.rel (%p158_p2) target bundleno = 2657 (0xa61), region = 32  ;;  %s2076_s25 = smov (!%p158_p2), 64  }
   0x7   : > { %s2077_s26 = smov (!%p158_p2), 32  }
   0xb   : > { %s2721_s13 = smov (!%p191_p3, %s1669_s13), 1  ;;  %vm267_vm0 = vcmask 261120   ;;  %v236_v28 = vlaneseq  ;;  %vm373_vm2 = vcmask 523264   ;;  %vm1573_vm10 = vcmask 785408  }
   0xc   : > { %s2106_s14 = sshll.u32 %s2721_s13, 6 }
   0xd   : > { %s200_s17 = scalar_lea.vmem %s2717_s1, %s2106_s14  ;;  %s2116_s20 = scalar_lea.vmem %s2716_s0, %s2106_s14  ;;  %v2166_v29 = vshrl.u32 %v236_v28, 7  ;;  %v2171_v31 = vand.u32 127, %v236_v28 }
   0xe   : > { %v226_v0 = vld [vmem:[%s200_s17 + $0x30] sm:$0xff]  ;;  %v227_v1 = vld [vmem:[%s200_s17 + $0x38] sm:$0xff]  ;;  %v224_v2 = vld [vmem:[%s200_s17 + $0x20] sm:$0xff]  ;;  %s205_s23 = scalar_lea.vmem %s2718_s2, %s2106_s14  ;;  %s2673_s29 = scalar_lea.vmem %s2719_s3, %s2106_s14 }
   0xf   : > { %v2118_v3 = vpack.c.bf16 %v227_v1, %v226_v0  ;;  %v225_v4 = vld [vmem:[%s200_s17 + $0x28] sm:$0xff]  ;;  %v212_v6 = vld [vmem:[%s2116_s20] sm:$0xff]  ;;  %v222_v10 = vld [vmem:[%s200_s17 + $0x10] sm:$0xff]  ;;  %v2169_v30 = vadd.s32 16, %v2166_v29  ;;  %v2176_v33 = vadd.s32 24, %v2166_v29  ;;  %vm247_vm3 = vcmp.le.s32.totalorder %v2171_v31, %v2166_v29 }
  0x10   : > { %v2120_v5 = vpack.c.bf16 %v225_v4, %v224_v2  ;;  %v213_v8 = vld [vmem:[%s2116_s20 + $0x8] sm:$0xff]  ;;  %v223_v11 = vld [vmem:[%s200_s17 + $0x18] sm:$0xff]  ;;  %v220_v14 = vld [vmem:[%s200_s17] sm:$0xff]  ;;  %v2181_v36 = vadd.s32 8, %v2166_v29  ;;  %v2193_v43 = vadd.s32 32, %v2166_v29  ;;  %v2199_v46 = vadd.s32 48, %v2166_v29 }
  0x11   : > { %1912 = vmatprep.subr.msk.bf16.mxu0 %vm267_vm0, %v2118_v3  ;;  %v290_v7 = vsel %vm267_vm0, %v2118_v3, 0  ;;  %v2128_v9 = vpack.c.bf16 %v213_v8, %v212_v6  ;;  %v2136_v13 = vpack.c.bf16 %v223_v11, %v222_v10  ;;  %v221_v15 = vld [vmem:[%s200_s17 + $0x8] sm:$0xff]  ;;  %v214_v19 = vld [vmem:[%s2116_s20 + $0x10] sm:$0xff]  ;;  %v215_v20 = vld [vmem:[%s2116_s20 + $0x18] sm:$0xff]  ;;  %vm249_vm1 = vcmp.le.s32.totalorder %v2171_v31, %v2169_v30 }
  0x12   : > { %1785 = vmatpush3.bf16.xpose.msra.mxu0 %v290_v7  ;;  %v287_v12 = vsel %vm267_vm0, %v2120_v5, 0  ;;  %v2142_v17 = vpack.c.bf16 %v221_v15, %v220_v14  ;;  %v216_v21 = vld [vmem:[%s2116_s20 + $0x20] sm:$0xff]  ;;  %v217_v22 = vld [vmem:[%s2116_s20 + $0x28] sm:$0xff]  ;;  %v2152_v23 = vpack.c.bf16 %v215_v20, %v214_v19  ;;  %v218_v25 = vld [vmem:[%s2116_s20 + $0x30] sm:$0xff]  ;;  %vm250_vm4 = vcmp.le.s32.totalorder %v2171_v31, %v2176_v33 }
  0x13   : > { %1913 = vmatprep.subr.msk.bf16.mxu0 %vm267_vm0, %v2120_v5  ;;  %1792 = vmatprep.mubr.msk.bf16.mxu0 %vm267_vm0, %v2128_v9  ;;  %v284_v16 = vsel %vm267_vm0, %v2136_v13, 0  ;;  %v2154_v24 = vpack.c.bf16 %v217_v22, %v216_v21  ;;  %v219_v26 = vld [vmem:[%s2116_s20 + $0x38] sm:$0xff]  ;;  %vm248_vm5 = vcmp.le.s32.totalorder %v2171_v31, %v2181_v36  ;;  %vm251_vm6 = vcmp.le.s32.totalorder %v2171_v31, %v2193_v43 }
  0x14   : > { %v281_v18 = vsel %vm267_vm0, %v2142_v17, 0  ;;  %v2162_v27 = vpack.c.bf16 %v219_v26, %v218_v25  ;;  %vm253_vm7 = vcmp.le.s32.totalorder %v2171_v31, %v2199_v46  ;;  %v2214_v55 = vadd.s32 40, %v2166_v29 }
  0x15   : > { %v2217_v56 = vadd.s32 56, %v2166_v29 }
  0x16   : > { %vm252_vm8 = vcmp.le.s32.totalorder %v2171_v31, %v2214_v55 }
  0x17   : > { %vm254_vm9 = vcmp.le.s32.totalorder %v2171_v31, %v2217_v56 }
  0x1a   : > { %1787 = vmatpush3.bf16.xpose.msra.mxu0 %v287_v12 }
  0x1b   : > { %1914 = vmatprep.subr.msk.bf16.mxu0 %vm267_vm0, %v2136_v13 }
  0x22   : > { %1789 = vmatpush3.bf16.xpose.msra.mxu0 %v284_v16 }
  0x23   : > { %1915 = vmatprep.subr.msk.bf16.mxu0 %vm267_vm0, %v2142_v17 }
  0x2a   : > { %1791 = vmatpush3.bf16.xpose.msra.mxu0 %v281_v18 }
  0x31   : > { %1793 = vmatmul.mubr.msk.bf16.vlgmr.msra.gmra.mxu0 %vm267_vm0, %v2152_v23 }
  0x32   : > { %1796 = vmatprep.mubr.msk.bf16.mxu0 %vm267_vm0, %v2154_v24 }
  0x39   : > { %1797 = vmatmul.mubr.msk.bf16.gmra.mxu0 %vm267_vm0, %v2162_v27 }
  0xf1   : > { %v1794_v32 = vpop.f32.mrf.mxu0 }
  0xf2   : > { %v359_v34 = vmul.f32 0.17677669, %v1794_v32 }
  0xf3   : > { %v326_v35 = vpop.f32.mrf.mxu0 }
  0xf4   : > { %v357_v37 = vmul.f32 0.17677669, %v326_v35  ;;  %v367_v38 = vsel %vm249_vm1, %v359_v34, -inf }
  0xf5   : > { %v1795_v39 = vpop.f32.mrf.mxu0  ;;  %v380_v40 = vsel %vm373_vm2, %v367_v38, -inf }
  0xf6   : > { %v360_v41 = vmul.f32 0.17677669, %v1795_v39  ;;  %381 = vmax.xlane.f32.xlu1 %v380_v40  ;;  %v365_v42 = vsel %vm247_vm3, %v357_v37, -inf }
  0xf7   : > { %v329_v44 = vpop.f32.mrf.mxu0  ;;  %v374_v45 = vsel %vm373_vm2, %v365_v42, -inf }
  0xf8   : > { %v358_v47 = vmul.f32 0.17677669, %v329_v44  ;;  %375 = vmax.xlane.f32.xlu0 %v374_v45  ;;  %v368_v48 = vsel %vm250_vm4, %v360_v41, -inf }
  0xf9   : > { %v1798_v49 = vpop.f32.mrf.mxu0  ;;  %v383_v50 = vsel %vm373_vm2, %v368_v48, -inf }
  0xfa   : > { %v363_v51 = vmul.f32 0.17677669, %v1798_v49  ;;  %384 = vmax.xlane.f32.xlu1 %v383_v50  ;;  %v366_v52 = vsel %vm248_vm5, %v358_v47, -inf }
  0xfb   : > { %v342_v53 = vpop.f32.mrf.mxu0  ;;  %v377_v54 = vsel %vm373_vm2, %v366_v52, -inf }
  0xfc   : > { %v361_v57 = vmul.f32 0.17677669, %v342_v53  ;;  %378 = vmax.xlane.f32.xlu0 %v377_v54  ;;  %v371_v61 = vsel %vm253_vm7, %v363_v51, -inf  ;;  %v234_v51 = vld [vmem:[%s205_s23 + $0x30] sm:$0xff]  ;;  %v232_v54 = vld [vmem:[%s205_s23 + $0x20] sm:$0xff] }
  0xfd   : > { %v1799_v58 = vpop.f32.mrf.mxu0  ;;  %v392_v1 = vsel %vm373_vm2, %v371_v61, -inf }
  0xfe   : > { %v364_v59 = vmul.f32 0.17677669, %v1799_v58  ;;  %v369_v60 = vsel %vm251_vm6, %v361_v57, -inf  ;;  %v233_v57 = vld [vmem:[%s205_s23 + $0x28] sm:$0xff] }
  0xff   : > { %v345_v62 = vpop.f32.mrf.mxu0  ;;  %v386_v63 = vsel %vm373_vm2, %v369_v60, -inf  ;;  %v2277_v58 = vpack.c.bf16 %v233_v57, %v232_v54 }
 0x100   : > { %v362_v0 = vmul.f32 0.17677669, %v345_v62  ;;  %387 = vmax.xlane.f32.xlu0 %v386_v63  ;;  %v2239_v4 = vsel %vm254_vm9, %v364_v59, -inf  ;;  %v230_v59 = vld [vmem:[%s205_s23 + $0x10] sm:$0xff]  ;;  %v228_v62 = vld [vmem:[%s205_s23] sm:$0xff]  ;;  %v229_v63 = vld [vmem:[%s205_s23 + $0x8] sm:$0xff] }
 0x101   : > { %v395_v7 = vsel %vm373_vm2, %v2239_v4, -inf }
 0x102   : > { %v2234_v2 = vsel %vm252_vm8, %v362_v0, -inf  ;;  %v2288_v0 = vpack.c.bf16 %v229_v63, %v228_v62 }
 0x103   : > { %v389_v6 = vsel %vm373_vm2, %v2234_v2, -inf }
 0x104   : > { %393 = vmax.xlane.f32.xlu0 %v392_v1  ;;  %390 = vmax.xlane.f32.xlu1 %v389_v6 }
 0x108   : > { %396 = vmax.xlane.f32.xlu1 %v395_v7 }
 0x17f   : > { %v382_v8 = vpop.xlane.xlu1 %381 }
 0x180   : > { %v400_v10 = vsub.f32 %v367_v38, %v382_v8 }
 0x181   : > { %v376_v11 = vpop.xlane.xlu0 %375 }
 0x182   : > { %v410_v12 = vmul.f32 1.442695, %v400_v10  ;;  %v398_v14 = vsub.f32 %v365_v42, %v376_v11 }
 0x183   : > { %v385_v15 = vpop.xlane.xlu1 %384 }
 0x184   : > { %1939 = vpow2.f32 %v410_v12  ;;  %v406_v16 = vmul.f32 1.442695, %v398_v14  ;;  %v401_v18 = vsub.f32 %v368_v48, %v385_v15 }
 0x185   : > { %v379_v19 = vpop.xlane.xlu0 %378 }
 0x186   : > { %1941 = vpow2.f32 %v406_v16  ;;  %v412_v20 = vmul.f32 1.442695, %v401_v18  ;;  %v399_v21 = vsub.f32 %v366_v52, %v379_v19  ;;  %v235_v52 = vld [vmem:[%s205_s23 + $0x38] sm:$0xff] }
 0x187   : > { %v2273_v53 = vpack.c.bf16 %v235_v52, %v234_v51 }
 0x188   : > { %1943 = vpow2.f32 %v412_v20  ;;  %v408_v22 = vmul.f32 1.442695, %v399_v21 }
 0x189   : > { %v388_v25 = vpop.xlane.xlu0 %387  ;;  %1800 = vmatprep.subr.bf16.mxu1 %v2273_v53 }
 0x18a   : > { %1945 = vpow2.f32 %v408_v22  ;;  %v402_v26 = vsub.f32 %v369_v60, %v388_v25  ;;  %1801 = vmatpush3.bf16.msra.mxu1 %v2273_v53  ;;  %v231_v60 = vld [vmem:[%s205_s23 + $0x18] sm:$0xff] }
 0x18b   : > { %1802 = vmatprep.subr.bf16.mxu1 %v2277_v58 }
 0x18c   : > { %v414_v34 = vmul.f32 1.442695, %v402_v26 }
 0x18d   : > { %v394_v28 = vpop.xlane.xlu0 %393  ;;  %v391_v1 = vpop.xlane.xlu1 %390 }
 0x18e   : > { %v404_v32 = vsub.f32 %v371_v61, %v394_v28  ;;  %1803 = vmatpush3.bf16.msra.mxu1 %v2277_v58  ;;  %v2283_v61 = vpack.c.bf16 %v231_v60, %v230_v59  ;;  %v403_v8 = vsub.f32 %v2234_v2, %v391_v1 }
 0x190   : > { %v418_v35 = vmul.f32 1.442695, %v404_v32  ;;  %1804 = vmatprep.subr.bf16.mxu1 %v2283_v61  ;;  %v416_v11 = vmul.f32 1.442695, %v403_v8 }
 0x191   : > { %v2245_v37 = vpop.eup %1939  ;;  %v397_v6 = vpop.xlane.xlu1 %396 }
 0x192   : > { %1947 = vpow2.f32 %v418_v35  ;;  %v428_v38 = vsel %vm373_vm2, %v2245_v37, 0.0  ;;  %1805 = vmatpush3.bf16.msra.mxu1 %v2283_v61  ;;  %v405_v7 = vsub.f32 %v2239_v4, %v397_v6 }
 0x193   : > { %v2249_v39 = vpop.eup %1941  ;;  %429 = vadd.xlane.f32.xlu0 %v428_v38  ;;  %1949 = vpow2.f32 %v414_v34  ;;  %1806 = vmatprep.subr.bf16.mxu1 %v2288_v0 }
 0x194   : > { %v422_v41 = vsel %vm373_vm2, %v2249_v39, 0.0  ;;  %v420_v10 = vmul.f32 1.442695, %v405_v7 }
 0x195   : > { %v2251_v40 = vpop.eup %1943 }
 0x196   : > { %v431_v42 = vsel %vm373_vm2, %v2251_v40, 0.0  ;;  %1807 = vmatpush3.bf16.msra.mxu1 %v2288_v0  ;;  %1951 = vpow2.f32 %v420_v10 }
 0x197   : > { %v2257_v44 = vpop.eup %1945  ;;  %423 = vadd.xlane.f32.xlu0 %v422_v41  ;;  %432 = vadd.xlane.f32.xlu1 %v431_v42  ;;  %1953 = vpow2.f32 %v416_v11 }
 0x198   : > { %v425_v45 = vsel %vm373_vm2, %v2257_v44, 0.0 }
 0x19b   : > { %426 = vadd.xlane.f32.xlu1 %v425_v45 }
 0x19f   : > { %v2261_v47 = vpop.eup %1947 }
 0x1a0   : > { %v440_v48 = vsel %vm373_vm2, %v2261_v47, 0.0  ;;  %v2265_v49 = vpop.eup %1949 }
 0x1a1   : > { %441 = vadd.xlane.f32.xlu0 %v440_v48  ;;  %v434_v50 = vsel %vm373_vm2, %v2265_v49, 0.0 }
 0x1a3   : > { %v1952_v12 = vpop.eup %1951 }
 0x1a4   : > { %v443_v14 = vsel %vm373_vm2, %v1952_v12, 0.0  ;;  %v1954_v15 = vpop.eup %1953 }
 0x1a5   : > { %435 = vadd.xlane.f32.xlu0 %v434_v50  ;;  %v437_v4 = vsel %vm373_vm2, %v1954_v15, 0.0 }
 0x1ac   : > { %563 = vrot.lane.b32.xlu1 %v2120_v5, %s2075_s24 }
 0x1b0   : > { %561 = vrot.lane.b32.xlu1 %v2136_v13, %s2075_s24 }
 0x1bb   : > { %565 = vrot.lane.b32.xlu0 %v2118_v3, %s2075_s24 }
 0x1bf   : > { %547 = vrot.lane.b32.xlu0 %v2128_v9, %s2075_s24 }
 0x1c3   : > { %551 = vrot.lane.b32.xlu0 %v2154_v24, %s2075_s24 }
 0x1d4   : > { %444 = vadd.xlane.f32.xlu1 %v443_v14 }
 0x1d8   : > { %438 = vadd.xlane.f32.xlu1 %v437_v4 }
 0x1e9   : > { %559 = vrot.lane.b32.xlu1 %v2142_v17, %s2075_s24 }
 0x1ed   : > { %549 = vrot.lane.b32.xlu1 %v2152_v23, %s2075_s24 }
 0x1f1   : > { %553 = vrot.lane.b32.xlu1 %v2162_v27, %s2075_s24 }
 0x21c   : > { %v430_v2 = vpop.xlane.xlu0 %429 }
 0x220   : > { %v424_v16 = vpop.xlane.xlu0 %423  ;;  %v433_v18 = vpop.xlane.xlu1 %432 }
 0x221   : > { %1955 = vrcp.f32 %v433_v18 }
 0x222   : > { %1957 = vrcp.f32 %v424_v16 }
 0x223   : > { %1959 = vrcp.f32 %v430_v2 }
 0x224   : > { %v427_v19 = vpop.xlane.xlu1 %426 }
 0x225   : > { %1961 = vrcp.f32 %v427_v19 }
 0x228   : > { %v564_v50 = vpop.permute.xlu1 %563 }
 0x22a   : > { %v442_v20 = vpop.xlane.xlu0 %441 }
 0x22e   : > { %v436_v21 = vpop.xlane.xlu0 %435  ;;  %v1956_v22 = vpop.eup %1955 }
 0x22f   : > { %v1958_v25 = vpop.eup %1957  ;;  %v457_v34 = vmul.f32 %v1956_v22, %v2251_v40  ;;  %v562_v40 = vpop.permute.xlu1 %561 }
 0x230   : > { %v1960_v26 = vpop.eup %1959  ;;  %v454_v35 = vmul.f32 %v1958_v25, %v2249_v39  ;;  %v586_v39 = vsel %vm267_vm0, %v564_v50, 0 }
 0x231   : > { %v456_v41 = vmul.f32 %v1960_v26, %v2245_v37  ;;  %v583_v37 = vsel %vm267_vm0, %v562_v40, 0 }
 0x232   : > { %v1962_v28 = vpop.eup %1961  ;;  %v566_v32 = vpop.permute.xlu0 %565 }
 0x233   : > { %v455_v38 = vmul.f32 %v1962_v28, %v2257_v44  ;;  %1916 = vmatprep.subr.msk.bf16.mxu1 %vm267_vm0, %v566_v32  ;;  %v463_v45 = vpack.c.bf16 %v457_v34, %v456_v41  ;;  %v589_v48 = vsel %vm267_vm0, %v566_v32, 0 }
 0x235   : > { %v462_v42 = vpack.c.bf16 %v455_v38, %v454_v35 }
 0x236   : > { %v548_v11 = vpop.permute.xlu0 %547 }
 0x237   : > { %1808 = vmatprep.mubr.msk.bf16.mxu1 %vm373_vm2, %v462_v42 }
 0x238   : > { %1809 = vmatmul.mubr.msk.bf16.vlgmr.msra.gmra.mxu1 %vm373_vm2, %v463_v45 }
 0x239   : > { %1817 = vmatpush3.bf16.xpose.msra.mxu1 %v589_v48 }
 0x23a   : > { %1917 = vmatprep.subr.msk.bf16.mxu1 %vm267_vm0, %v564_v50  ;;  %v552_v4 = vpop.permute.xlu0 %551 }
 0x241   : > { %1819 = vmatpush3.bf16.xpose.msra.mxu1 %v586_v39 }
 0x242   : > { %1918 = vmatprep.subr.msk.bf16.mxu1 %vm267_vm0, %v562_v40 }
 0x249   : > { %1821 = vmatpush3.bf16.xpose.msra.mxu1 %v583_v37 }
 0x25d   : > { %v445_v44 = vpop.xlane.xlu1 %444 }
 0x25e   : > { %1963 = vrcp.f32 %v445_v44 }
 0x25f   : > { %1965 = vrcp.f32 %v436_v21 }
 0x260   : > { %1967 = vrcp.f32 %v442_v20 }
 0x261   : > { %v439_v51 = vpop.xlane.xlu1 %438 }
 0x262   : > { %1969 = vrcp.f32 %v439_v51 }
 0x265   : > { %v560_v52 = vpop.permute.xlu1 %559 }
 0x266   : > { %1919 = vmatprep.subr.msk.bf16.mxu1 %vm267_vm0, %v560_v52  ;;  %v580_v54 = vsel %vm267_vm0, %v560_v52, 0 }
 0x267   : > { %1823 = vmatpush3.bf16.xpose.msra.mxu1 %v580_v54 }
 0x269   : > { %v550_v14 = vpop.permute.xlu1 %549 }
 0x26b   : > { %v1964_v57 = vpop.eup %1963 }
 0x26c   : > { %v1966_v59 = vpop.eup %1965  ;;  %v461_v63 = vmul.f32 %v1964_v57, %v1952_v12 }
 0x26d   : > { %v1968_v60 = vpop.eup %1967  ;;  %v458_v1 = vmul.f32 %v1966_v59, %v2265_v49  ;;  %v554_v12 = vpop.permute.xlu1 %553 }
 0x26e   : > { %v460_v7 = vmul.f32 %v1968_v60, %v2261_v47 }
 0x26f   : > { %v1970_v62 = vpop.eup %1969 }
 0x270   : > { %v459_v6 = vmul.f32 %v1970_v62, %v1954_v15  ;;  %v465_v10 = vpack.c.bf16 %v461_v63, %v460_v7 }
 0x272   : > { %v464_v8 = vpack.c.bf16 %v459_v6, %v458_v1 }
 0x274   : > { %1812 = vmatprep.mubr.msk.bf16.mxu1 %vm373_vm2, %v464_v8 }
 0x275   : > { %1813 = vmatmul.mubr.msk.bf16.gmra.mxu1 %vm373_vm2, %v465_v10 }
 0x276   : > { %1824 = vmatprep.mubr.msk.bf16.mxu1 %vm267_vm0, %v548_v11 }
 0x27d   : > { %1825 = vmatmul.mubr.msk.bf16.vlgmr.msra.gmra.mxu1 %vm267_vm0, %v550_v14 }
 0x27e   : > { %1828 = vmatprep.mubr.msk.bf16.mxu1 %vm267_vm0, %v552_v4 }
 0x285   : > { %1829 = vmatmul.mubr.msk.bf16.gmra.mxu1 %vm267_vm0, %v554_v12 }
 0x2f8   : > { %v2331_v49 = vpop.f32.mrf.mxu1 }
 0x2fa   : > { %v2333_v47 = vpop.f32.mrf.mxu1 }
 0x2fc   : > { %v2335_v15 = vpop.f32.mrf.mxu1 }
 0x2fe   : > { %v2337_v2 = vpop.f32.mrf.mxu1 }
 0x335   : > { %v2339_v16 = vpop.f32.mrf.mxu1 }
 0x337   : > { %v2341_v18 = vpop.f32.mrf.mxu1 }
 0x339   : > { %v2343_v19 = vpop.f32.mrf.mxu1 }
 0x33b   : > { %v2345_v20 = vpop.f32.mrf.mxu1 }
 0x33d   : > { %v1826_v21 = vpop.f32.mrf.mxu1 }
 0x33e   : > { %v658_v25 = vmul.f32 0.17677669, %v1826_v21 }
 0x33f   : > { %v625_v22 = vpop.f32.mrf.mxu1 }
 0x340   : > { %v656_v26 = vmul.f32 0.17677669, %v625_v22  ;;  %v666_v42 = vsel %vm249_vm1, %v658_v25, -inf }
 0x341   : > { %v1827_v28 = vpop.f32.mrf.mxu1  ;;  %v678_v40 = vsel %vm373_vm2, %v666_v42, -inf }
 0x342   : > { %v664_v32 = vsel %vm247_vm3, %v656_v26, -inf  ;;  %v659_v38 = vmul.f32 0.17677669, %v1827_v28 }
 0x343   : > { %v628_v34 = vpop.f32.mrf.mxu1  ;;  %v672_v35 = vsel %vm373_vm2, %v664_v32, -inf }
 0x344   : > { %v657_v41 = vmul.f32 0.17677669, %v628_v34  ;;  %673 = vmax.xlane.f32.xlu0 %v672_v35  ;;  %v667_v44 = vsel %vm250_vm4, %v659_v38, -inf }
 0x345   : > { %v1830_v45 = vpop.f32.mrf.mxu1  ;;  %v681_v59 = vsel %vm373_vm2, %v667_v44, -inf }
 0x346   : > { %v662_v48 = vmul.f32 0.17677669, %v1830_v45  ;;  %v665_v50 = vsel %vm248_vm5, %v657_v41, -inf }
 0x347   : > { %v641_v39 = vpop.f32.mrf.mxu1  ;;  %v675_v37 = vsel %vm373_vm2, %v665_v50, -inf }
 0x348   : > { %679 = vmax.xlane.f32.xlu0 %v678_v40  ;;  %676 = vmax.xlane.f32.xlu1 %v675_v37  ;;  %v660_v52 = vmul.f32 0.17677669, %v641_v39  ;;  %v670_v57 = vsel %vm253_vm7, %v662_v48, -inf }
 0x349   : > { %v1831_v51 = vpop.f32.mrf.mxu1  ;;  %v690_v6 = vsel %vm373_vm2, %v670_v57, -inf }
 0x34a   : > { %v663_v54 = vmul.f32 0.17677669, %v1831_v51  ;;  %v668_v8 = vsel %vm251_vm6, %v660_v52, -inf }
 0x34b   : > { %v644_v60 = vpop.f32.mrf.mxu1  ;;  %v684_v11 = vsel %vm373_vm2, %v668_v8, -inf }
 0x34c   : > { %682 = vmax.xlane.f32.xlu0 %v681_v59  ;;  %v661_v62 = vmul.f32 0.17677669, %v644_v60  ;;  %v671_v63 = vsel %vm254_vm9, %v663_v54, -inf }
 0x34d   : > { %v693_v1 = vsel %vm373_vm2, %v671_v63, -inf }
 0x34e   : > { %694 = vmax.xlane.f32.xlu1 %v693_v1  ;;  %v669_v7 = vsel %vm252_vm8, %v661_v62, -inf }
 0x34f   : > { %v687_v10 = vsel %vm373_vm2, %v669_v7, -inf }
 0x350   : > { %691 = vmax.xlane.f32.xlu0 %v690_v6 }
 0x352   : > { %688 = vmax.xlane.f32.xlu1 %v687_v10 }
 0x354   : > { %685 = vmax.xlane.f32.xlu0 %v684_v11 }
 0x363   : > { %772 = vrot.lane.b32.xlu1 %v2277_v58, %s2075_s24 }
 0x367   : > { %770 = vrot.lane.b32.xlu1 %v2283_v61, %s2075_s24 }
 0x36a   : > { %774 = vrot.lane.b32.xlu0 %v2273_v53, %s2075_s24 }
 0x36b   : > { %768 = vrot.lane.b32.xlu1 %v2288_v0, %s2075_s24 }
 0x3cd   : > { %v674_v14 = vpop.xlane.xlu0 %673 }
 0x3ce   : > { %v696_v4 = vsub.f32 %v664_v32, %v674_v14 }
 0x3d0   : > { %v704_v25 = vmul.f32 1.442695, %v696_v4 }
 0x3d1   : > { %v680_v12 = vpop.xlane.xlu0 %679  ;;  %v677_v21 = vpop.xlane.xlu1 %676 }
 0x3d2   : > { %v698_v22 = vsub.f32 %v666_v42, %v680_v12  ;;  %v697_v28 = vsub.f32 %v665_v50, %v677_v21 }
 0x3d4   : > { %v708_v26 = vmul.f32 1.442695, %v698_v22  ;;  %v706_v41 = vmul.f32 1.442695, %v697_v28 }
 0x3d5   : > { %v683_v34 = vpop.xlane.xlu0 %682 }
 0x3d6   : > { %1971 = vpow2.f32 %v708_v26  ;;  %v699_v35 = vsub.f32 %v667_v44, %v683_v34 }
 0x3d7   : > { %v695_v38 = vpop.xlane.xlu1 %694  ;;  %1973 = vpow2.f32 %v704_v25 }
 0x3d8   : > { %v710_v45 = vmul.f32 1.442695, %v699_v35  ;;  %v703_v48 = vsub.f32 %v671_v63, %v695_v38 }
 0x3d9   : > { %v692_v39 = vpop.xlane.xlu0 %691 }
 0x3da   : > { %1975 = vpow2.f32 %v710_v45  ;;  %v702_v40 = vsub.f32 %v670_v57, %v692_v39  ;;  %v718_v32 = vmul.f32 1.442695, %v703_v48 }
 0x3db   : > { %v689_v37 = vpop.xlane.xlu1 %688  ;;  %1977 = vpow2.f32 %v706_v41 }
 0x3dc   : > { %v716_v51 = vmul.f32 1.442695, %v702_v40  ;;  %v701_v52 = vsub.f32 %v669_v7, %v689_v37 }
 0x3dd   : > { %v686_v42 = vpop.xlane.xlu0 %685 }
 0x3de   : > { %1979 = vpow2.f32 %v716_v51  ;;  %v700_v54 = vsub.f32 %v668_v8, %v686_v42  ;;  %v714_v59 = vmul.f32 1.442695, %v701_v52 }
 0x3df   : > { %v773_v50 = vpop.permute.xlu1 %772  ;;  %1981 = vpow2.f32 %v718_v32 }
 0x3e0   : > { %v712_v44 = vmul.f32 1.442695, %v700_v54 }
 0x3e1   : > { %v775_v60 = vpop.permute.xlu0 %774 }
 0x3e2   : > { %1983 = vpow2.f32 %v712_v44  ;;  %1832 = vmatprep.subr.bf16.mxu0 %v775_v60 }
 0x3e3   : > { %v2387_v62 = vpop.eup %1971  ;;  %1833 = vmatpush3.bf16.msra.mxu0 %v775_v60  ;;  %v771_v63 = vpop.permute.xlu1 %770  ;;  %1985 = vpow2.f32 %v714_v59 }
 0x3e4   : > { %v726_v57 = vsel %vm373_vm2, %v2387_v62, 0.0  ;;  %1834 = vmatprep.subr.bf16.mxu0 %v773_v50  ;;  %v1974_v1 = vpop.eup %1973 }
 0x3e5   : > { %727 = vadd.xlane.f32.xlu0 %v726_v57  ;;  %v720_v7 = vsel %vm373_vm2, %v1974_v1, 0.0 }
 0x3e7   : > { %v1976_v6 = vpop.eup %1975  ;;  %1835 = vmatpush3.bf16.msra.mxu0 %v773_v50  ;;  %v769_v11 = vpop.permute.xlu1 %768 }
 0x3e8   : > { %v729_v8 = vsel %vm373_vm2, %v1976_v6, 0.0  ;;  %1836 = vmatprep.subr.bf16.mxu0 %v771_v63  ;;  %v1978_v10 = vpop.eup %1977 }
 0x3e9   : > { %721 = vadd.xlane.f32.xlu0 %v720_v7  ;;  %730 = vadd.xlane.f32.xlu1 %v729_v8  ;;  %v723_v12 = vsel %vm373_vm2, %v1978_v10, 0.0 }
 0x3eb   : > { %v2393_v14 = vpop.eup %1979  ;;  %1837 = vmatpush3.bf16.msra.mxu0 %v771_v63 }
 0x3ec   : > { %v738_v4 = vsel %vm373_vm2, %v2393_v14, 0.0  ;;  %1838 = vmatprep.subr.bf16.mxu0 %v769_v11  ;;  %v1982_v21 = vpop.eup %1981 }
 0x3ed   : > { %739 = vadd.xlane.f32.xlu0 %v738_v4  ;;  %724 = vadd.xlane.f32.xlu1 %v723_v12  ;;  %v741_v26 = vsel %vm373_vm2, %v1982_v21, 0.0 }
 0x3ef   : > { %v1984_v22 = vpop.eup %1983  ;;  %1839 = vmatpush3.bf16.msra.mxu0 %v769_v11 }
 0x3f0   : > { %v732_v25 = vsel %vm373_vm2, %v1984_v22, 0.0  ;;  %v1986_v28 = vpop.eup %1985 }
 0x3f1   : > { %733 = vadd.xlane.f32.xlu1 %v732_v25  ;;  %742 = vadd.xlane.f32.xlu0 %v741_v26  ;;  %v735_v34 = vsel %vm373_vm2, %v1986_v28, 0.0 }
 0x3f5   : > { %736 = vadd.xlane.f32.xlu0 %v735_v34 }
 0x402   : > { %869 = vrot.lane.b32.xlu1 %v2120_v5, %s2076_s25 }
 0x406   : > { %867 = vrot.lane.b32.xlu1 %v2136_v13, %s2076_s25 }
 0x40a   : > { %865 = vrot.lane.b32.xlu1 %v2142_v17, %s2076_s25 }
 0x40b   : > { %871 = vrot.lane.b32.xlu0 %v2118_v3, %s2076_s25 }
 0x40e   : > { %859 = vrot.lane.b32.xlu1 %v2152_v23, %s2076_s25 }
 0x40f   : > { %857 = vrot.lane.b32.xlu0 %v2128_v9, %s2076_s25 }
 0x412   : > { %863 = vrot.lane.b32.xlu1 %v2162_v27, %s2076_s25 }
 0x413   : > { %861 = vrot.lane.b32.xlu0 %v2154_v24, %s2076_s25 }
 0x46e   : > { %v728_v35 = vpop.xlane.xlu0 %727 }
 0x472   : > { %v722_v38 = vpop.xlane.xlu0 %721  ;;  %v731_v41 = vpop.xlane.xlu1 %730 }
 0x473   : > { %1987 = vrcp.f32 %v731_v41 }
 0x474   : > { %1989 = vrcp.f32 %v722_v38 }
 0x475   : > { %1991 = vrcp.f32 %v728_v35 }
 0x476   : > { %v740_v45 = vpop.xlane.xlu0 %739  ;;  %v725_v48 = vpop.xlane.xlu1 %724 }
 0x477   : > { %1993 = vrcp.f32 %v725_v48 }
 0x47a   : > { %v743_v39 = vpop.xlane.xlu0 %742  ;;  %v734_v40 = vpop.xlane.xlu1 %733 }
 0x47b   : > { %1995 = vrcp.f32 %v743_v39 }
 0x47c   : > { %1997 = vrcp.f32 %v734_v40 }
 0x47d   : > { %1999 = vrcp.f32 %v740_v45 }
 0x47e   : > { %v737_v37 = vpop.xlane.xlu0 %736  ;;  %v870_v4 = vpop.permute.xlu1 %869 }
 0x47f   : > { %2001 = vrcp.f32 %v737_v37  ;;  %v892_v34 = vsel %vm267_vm0, %v870_v4, 0 }
 0x480   : > { %v1988_v32 = vpop.eup %1987 }
 0x481   : > { %v1990_v52 = vpop.eup %1989  ;;  %v755_v50 = vmul.f32 %v1988_v32, %v1976_v6 }
 0x482   : > { %v872_v51 = vpop.permute.xlu0 %871  ;;  %v1992_v42 = vpop.eup %1991  ;;  %v752_v59 = vmul.f32 %v1990_v52, %v1974_v1 }
 0x483   : > { %1920 = vmatprep.subr.msk.bf16.mxu0 %vm267_vm0, %v872_v51  ;;  %v754_v60 = vmul.f32 %v1992_v42, %v2387_v62  ;;  %v895_v8 = vsel %vm267_vm0, %v872_v51, 0  ;;  %v868_v41 = vpop.permute.xlu1 %867 }
 0x484   : > { %v1994_v54 = vpop.eup %1993 }
 0x485   : > { %v753_v44 = vmul.f32 %v1994_v54, %v1978_v10  ;;  %v761_v7 = vpack.c.bf16 %v755_v50, %v754_v60 }
 0x486   : > { %v858_v38 = vpop.permute.xlu0 %857 }
 0x487   : > { %v760_v63 = vpack.c.bf16 %v753_v44, %v752_v59 }
 0x488   : > { %v1996_v57 = vpop.eup %1995 }
 0x489   : > { %v1998_v11 = vpop.eup %1997  ;;  %1840 = vmatprep.mubr.msk.bf16.mxu0 %vm373_vm2, %v760_v63  ;;  %v759_v1 = vmul.f32 %v1996_v57, %v1982_v21  ;;  %v866_v21 = vpop.permute.xlu1 %865 }
 0x48a   : > { %v2000_v12 = vpop.eup %1999  ;;  %1841 = vmatmul.mubr.msk.bf16.vlgmr.msra.gmra.mxu0 %vm373_vm2, %v761_v7  ;;  %v756_v26 = vmul.f32 %v1998_v11, %v1984_v22  ;;  %v889_v22 = vsel %vm267_vm0, %v868_v41, 0  ;;  %v862_v45 = vpop.permute.xlu0 %861 }
 0x48b   : > { %1849 = vmatpush3.bf16.xpose.msra.mxu0 %v895_v8  ;;  %v758_v10 = vmul.f32 %v2000_v12, %v2393_v14  ;;  %v886_v14 = vsel %vm267_vm0, %v866_v21, 0 }
 0x48c   : > { %v2002_v25 = vpop.eup %2001  ;;  %1921 = vmatprep.subr.msk.bf16.mxu0 %vm267_vm0, %v870_v4 }
 0x48d   : > { %v757_v6 = vmul.f32 %v2002_v25, %v1986_v28  ;;  %v763_v35 = vpack.c.bf16 %v759_v1, %v758_v10  ;;  %v860_v28 = vpop.permute.xlu1 %859 }
 0x48f   : > { %v762_v62 = vpack.c.bf16 %v757_v6, %v756_v26 }
 0x491   : > { %1844 = vmatprep.mubr.msk.bf16.mxu0 %vm373_vm2, %v762_v62  ;;  %v864_v48 = vpop.permute.xlu1 %863 }
 0x492   : > { %1845 = vmatmul.mubr.msk.bf16.gmra.mxu0 %vm373_vm2, %v763_v35 }
 0x493   : > { %1851 = vmatpush3.bf16.xpose.msra.mxu0 %v892_v34  ;;  %1856 = vmatprep.mubr.msk.bf16.mxu0 %vm267_vm0, %v858_v38 }
 0x494   : > { %1922 = vmatprep.subr.msk.bf16.mxu0 %vm267_vm0, %v868_v41 }
 0x49b   : > { %1853 = vmatpush3.bf16.xpose.msra.mxu0 %v889_v22 }
 0x49c   : > { %1923 = vmatprep.subr.msk.bf16.mxu0 %vm267_vm0, %v866_v21 }
 0x4a3   : > { %1855 = vmatpush3.bf16.xpose.msra.mxu0 %v886_v14 }
 0x4aa   : > { %1857 = vmatmul.mubr.msk.bf16.vlgmr.msra.gmra.mxu0 %vm267_vm0, %v860_v28 }
 0x4ab   : > { %1860 = vmatprep.mubr.msk.bf16.mxu0 %vm267_vm0, %v862_v45 }
 0x4b2   : > { %1861 = vmatmul.mubr.msk.bf16.gmra.mxu0 %vm267_vm0, %v864_v48 }
 0x54a   : > { %v2435_v39 = vpop.f32.mrf.mxu0 }
 0x54c   : > { %v2437_v40 = vpop.f32.mrf.mxu0 }
 0x54e   : > { %v2439_v37 = vpop.f32.mrf.mxu0 }
 0x550   : > { %v2441_v32 = vpop.f32.mrf.mxu0 }
 0x552   : > { %v2443_v51 = vpop.f32.mrf.mxu0 }
 0x554   : > { %v2445_v52 = vpop.f32.mrf.mxu0 }
 0x556   : > { %v2447_v42 = vpop.f32.mrf.mxu0 }
 0x558   : > { %v2449_v54 = vpop.f32.mrf.mxu0 }
 0x56a   : > { %v1858_v50 = vpop.f32.mrf.mxu0 }
 0x56b   : > { %v964_v44 = vmul.f32 0.17677669, %v1858_v50 }
 0x56c   : > { %v931_v59 = vpop.f32.mrf.mxu0 }
 0x56d   : > { %v962_v60 = vmul.f32 0.17677669, %v931_v59  ;;  %v972_v12 = vsel %vm249_vm1, %v964_v44, -inf }
 0x56e   : > { %v1859_v63 = vpop.f32.mrf.mxu0  ;;  %v984_v62 = vsel %vm373_vm2, %v972_v12, -inf }
 0x56f   : > { %v970_v57 = vsel %vm247_vm3, %v962_v60, -inf  ;;  %v965_v11 = vmul.f32 0.17677669, %v1859_v63 }
 0x570   : > { %v934_v7 = vpop.f32.mrf.mxu0  ;;  %v978_v8 = vsel %vm373_vm2, %v970_v57, -inf }
 0x571   : > { %v963_v4 = vmul.f32 0.17677669, %v934_v7  ;;  %979 = vmax.xlane.f32.xlu0 %v978_v8  ;;  %v973_v34 = vsel %vm250_vm4, %v965_v11, -inf }
 0x572   : > { %v1862_v25 = vpop.f32.mrf.mxu0  ;;  %v987_v21 = vsel %vm373_vm2, %v973_v34, -inf }
 0x573   : > { %v968_v26 = vmul.f32 0.17677669, %v1862_v25  ;;  %v971_v6 = vsel %vm248_vm5, %v963_v4, -inf }
 0x574   : > { %v947_v1 = vpop.f32.mrf.mxu0  ;;  %v981_v10 = vsel %vm373_vm2, %v971_v6, -inf }
 0x575   : > { %985 = vmax.xlane.f32.xlu0 %v984_v62  ;;  %982 = vmax.xlane.f32.xlu1 %v981_v10  ;;  %v966_v38 = vmul.f32 0.17677669, %v947_v1  ;;  %v976_v22 = vsel %vm253_vm7, %v968_v26, -inf }
 0x576   : > { %v1863_v35 = vpop.f32.mrf.mxu0  ;;  %v996_v50 = vsel %vm373_vm2, %v976_v22, -inf }
 0x577   : > { %v969_v41 = vmul.f32 0.17677669, %v1863_v35  ;;  %v974_v44 = vsel %vm251_vm6, %v966_v38, -inf }
 0x578   : > { %v950_v14 = vpop.f32.mrf.mxu0  ;;  %v990_v63 = vsel %vm373_vm2, %v974_v44, -inf }
 0x579   : > { %988 = vmax.xlane.f32.xlu0 %v987_v21  ;;  %v967_v28 = vmul.f32 0.17677669, %v950_v14  ;;  %v977_v45 = vsel %vm254_vm9, %v969_v41, -inf }
 0x57a   : > { %v999_v48 = vsel %vm373_vm2, %v977_v45, -inf }
 0x57b   : > { %1000 = vmax.xlane.f32.xlu1 %v999_v48  ;;  %v975_v59 = vsel %vm252_vm8, %v967_v28, -inf }
 0x57c   : > { %v993_v60 = vsel %vm373_vm2, %v975_v59, -inf }
 0x57d   : > { %997 = vmax.xlane.f32.xlu0 %v996_v50 }
 0x57f   : > { %994 = vmax.xlane.f32.xlu1 %v993_v60 }
 0x581   : > { %991 = vmax.xlane.f32.xlu0 %v990_v63 }
 0x590   : > { %1074 = vrot.lane.b32.xlu1 %v2277_v58, %s2076_s25 }
 0x594   : > { %1072 = vrot.lane.b32.xlu1 %v2283_v61, %s2076_s25 }
 0x597   : > { %1076 = vrot.lane.b32.xlu0 %v2273_v53, %s2076_s25 }
 0x598   : > { %1070 = vrot.lane.b32.xlu1 %v2288_v0, %s2076_s25 }
 0x5fa   : > { %v980_v7 = vpop.xlane.xlu0 %979 }
 0x5fb   : > { %v1002_v8 = vsub.f32 %v970_v57, %v980_v7 }
 0x5fd   : > { %v1010_v26 = vmul.f32 1.442695, %v1002_v8 }
 0x5fe   : > { %v986_v11 = vpop.xlane.xlu0 %985  ;;  %v983_v4 = vpop.xlane.xlu1 %982 }
 0x5ff   : > { %v1004_v25 = vsub.f32 %v972_v12, %v986_v11  ;;  %v1003_v62 = vsub.f32 %v971_v6, %v983_v4 }
 0x601   : > { %v1014_v1 = vmul.f32 1.442695, %v1004_v25  ;;  %v1012_v41 = vmul.f32 1.442695, %v1003_v62 }
 0x602   : > { %v989_v10 = vpop.xlane.xlu0 %988 }
 0x603   : > { %2003 = vpow2.f32 %v1014_v1  ;;  %v1005_v35 = vsub.f32 %v973_v34, %v989_v10 }
 0x604   : > { %v1001_v38 = vpop.xlane.xlu1 %1000  ;;  %2005 = vpow2.f32 %v1010_v26 }
 0x605   : > { %v1016_v21 = vmul.f32 1.442695, %v1005_v35  ;;  %v1009_v14 = vsub.f32 %v977_v45, %v1001_v38 }
 0x606   : > { %v998_v28 = vpop.xlane.xlu0 %997 }
 0x607   : > { %2007 = vpow2.f32 %v1016_v21  ;;  %v1008_v48 = vsub.f32 %v976_v22, %v998_v28  ;;  %v1024_v57 = vmul.f32 1.442695, %v1009_v14 }
 0x608   : > { %v995_v50 = vpop.xlane.xlu1 %994  ;;  %2009 = vpow2.f32 %v1012_v41 }
 0x609   : > { %v1022_v60 = vmul.f32 1.442695, %v1008_v48  ;;  %v1007_v63 = vsub.f32 %v975_v59, %v995_v50 }
 0x60a   : > { %v992_v12 = vpop.xlane.xlu0 %991 }
 0x60b   : > { %2011 = vpow2.f32 %v1022_v60  ;;  %v1006_v7 = vsub.f32 %v974_v44, %v992_v12  ;;  %v1020_v8 = vmul.f32 1.442695, %v1007_v63 }
 0x60c   : > { %v1075_v6 = vpop.permute.xlu1 %1074  ;;  %2013 = vpow2.f32 %v1024_v57 }
 0x60d   : > { %v1018_v34 = vmul.f32 1.442695, %v1006_v7 }
 0x60e   : > { %v1077_v11 = vpop.permute.xlu0 %1076 }
 0x60f   : > { %2015 = vpow2.f32 %v1018_v34  ;;  %1864 = vmatprep.subr.bf16.mxu1 %v1077_v11 }
 0x610   : > { %v2491_v4 = vpop.eup %2003  ;;  %1865 = vmatpush3.bf16.msra.mxu1 %v1077_v11  ;;  %v1073_v45 = vpop.permute.xlu1 %1072  ;;  %2017 = vpow2.f32 %v1020_v8 }
 0x611   : > { %v1032_v22 = vsel %vm373_vm2, %v2491_v4, 0.0  ;;  %1866 = vmatprep.subr.bf16.mxu1 %v1075_v6  ;;  %v2006_v59 = vpop.eup %2005 }
 0x612   : > { %1033 = vadd.xlane.f32.xlu0 %v1032_v22  ;;  %v1026_v44 = vsel %vm373_vm2, %v2006_v59, 0.0 }
 0x614   : > { %v2008_v25 = vpop.eup %2007  ;;  %1867 = vmatpush3.bf16.msra.mxu1 %v1075_v6  ;;  %v1071_v62 = vpop.permute.xlu1 %1070 }
 0x615   : > { %v1035_v26 = vsel %vm373_vm2, %v2008_v25, 0.0  ;;  %1868 = vmatprep.subr.bf16.mxu1 %v1073_v45  ;;  %v2010_v1 = vpop.eup %2009 }
 0x616   : > { %1027 = vadd.xlane.f32.xlu0 %v1026_v44  ;;  %1036 = vadd.xlane.f32.xlu1 %v1035_v26  ;;  %v1029_v38 = vsel %vm373_vm2, %v2010_v1, 0.0 }
 0x618   : > { %v2497_v10 = vpop.eup %2011  ;;  %1869 = vmatpush3.bf16.msra.mxu1 %v1073_v45 }
 0x619   : > { %v1044_v35 = vsel %vm373_vm2, %v2497_v10, 0.0  ;;  %1870 = vmatprep.subr.bf16.mxu1 %v1071_v62  ;;  %v2014_v41 = vpop.eup %2013 }
 0x61a   : > { %1045 = vadd.xlane.f32.xlu0 %v1044_v35  ;;  %1030 = vadd.xlane.f32.xlu1 %v1029_v38  ;;  %v1047_v28 = vsel %vm373_vm2, %v2014_v41, 0.0 }
 0x61c   : > { %v2016_v21 = vpop.eup %2015  ;;  %1871 = vmatpush3.bf16.msra.mxu1 %v1071_v62 }
 0x61d   : > { %v1038_v14 = vsel %vm373_vm2, %v2016_v21, 0.0  ;;  %v2018_v48 = vpop.eup %2017 }
 0x61e   : > { %1039 = vadd.xlane.f32.xlu1 %v1038_v14  ;;  %1048 = vadd.xlane.f32.xlu0 %v1047_v28  ;;  %v1041_v50 = vsel %vm373_vm2, %v2018_v48, 0.0 }
 0x622   : > { %1042 = vadd.xlane.f32.xlu0 %v1041_v50 }
 0x62f   : > { %1171 = vrot.lane.b32.xlu1 %v2120_v5, %s2077_s26 }
 0x633   : > { %1169 = vrot.lane.b32.xlu1 %v2136_v13, %s2077_s26 }
 0x637   : > { %1167 = vrot.lane.b32.xlu1 %v2142_v17, %s2077_s26 }
 0x638   : > { %1173 = vrot.lane.b32.xlu0 %v2118_v3, %s2077_s26 }
 0x63b   : > { %1161 = vrot.lane.b32.xlu1 %v2152_v23, %s2077_s26 }
 0x63c   : > { %1159 = vrot.lane.b32.xlu0 %v2128_v9, %s2077_s26 }
 0x63f   : > { %1165 = vrot.lane.b32.xlu1 %v2162_v27, %s2077_s26 }
 0x640   : > { %1163 = vrot.lane.b32.xlu0 %v2154_v24, %s2077_s26 }
 0x69b   : > { %v1034_v5 = vpop.xlane.xlu0 %1033 }
 0x69f   : > { %v1028_v13 = vpop.xlane.xlu0 %1027  ;;  %v1037_v57 = vpop.xlane.xlu1 %1036 }
 0x6a0   : > { %2019 = vrcp.f32 %v1037_v57 }
 0x6a1   : > { %2021 = vrcp.f32 %v1028_v13 }
 0x6a2   : > { %2023 = vrcp.f32 %v1034_v5 }
 0x6a3   : > { %v1046_v17 = vpop.xlane.xlu0 %1045  ;;  %v1031_v60 = vpop.xlane.xlu1 %1030 }
 0x6a4   : > { %2025 = vrcp.f32 %v1031_v60 }
 0x6a7   : > { %v1049_v3 = vpop.xlane.xlu0 %1048  ;;  %v1040_v23 = vpop.xlane.xlu1 %1039 }
 0x6a8   : > { %2027 = vrcp.f32 %v1049_v3 }
 0x6a9   : > { %2029 = vrcp.f32 %v1040_v23 }
 0x6aa   : > { %2031 = vrcp.f32 %v1046_v17 }
 0x6ab   : > { %v1043_v9 = vpop.xlane.xlu0 %1042  ;;  %v1172_v35 = vpop.permute.xlu1 %1171 }
 0x6ac   : > { %2033 = vrcp.f32 %v1043_v9  ;;  %v1194_v50 = vsel %vm267_vm0, %v1172_v35, 0 }
 0x6ad   : > { %v2020_v27 = vpop.eup %2019 }
 0x6ae   : > { %v2022_v12 = vpop.eup %2021  ;;  %v1061_v6 = vmul.f32 %v2020_v27, %v2008_v25 }
 0x6af   : > { %v1174_v63 = vpop.permute.xlu0 %1173  ;;  %v2024_v24 = vpop.eup %2023  ;;  %v1058_v8 = vmul.f32 %v2022_v12, %v2006_v59 }
 0x6b0   : > { %1924 = vmatprep.subr.msk.bf16.mxu1 %vm267_vm0, %v1174_v63  ;;  %v1060_v11 = vmul.f32 %v2024_v24, %v2491_v4  ;;  %v1197_v26 = vsel %vm267_vm0, %v1174_v63, 0  ;;  %v1170_v57 = vpop.permute.xlu1 %1169 }
 0x6b1   : > { %v2026_v7 = vpop.eup %2025 }
 0x6b2   : > { %v1059_v34 = vmul.f32 %v2026_v7, %v2010_v1  ;;  %v1067_v44 = vpack.c.bf16 %v1061_v6, %v1060_v11 }
 0x6b3   : > { %v1160_v13 = vpop.permute.xlu0 %1159 }
 0x6b4   : > { %v1066_v45 = vpack.c.bf16 %v1059_v34, %v1058_v8 }
 0x6b5   : > { %v2028_v22 = vpop.eup %2027 }
 0x6b6   : > { %v2030_v62 = vpop.eup %2029  ;;  %1872 = vmatprep.mubr.msk.bf16.mxu1 %vm373_vm2, %v1066_v45  ;;  %v1065_v59 = vmul.f32 %v2028_v22, %v2014_v41  ;;  %v1168_v41 = vpop.permute.xlu1 %1167 }
 0x6b7   : > { %v2032_v38 = vpop.eup %2031  ;;  %1873 = vmatmul.mubr.msk.bf16.vlgmr.msra.gmra.mxu1 %vm373_vm2, %v1067_v44  ;;  %v1062_v28 = vmul.f32 %v2030_v62, %v2016_v21  ;;  %v1191_v21 = vsel %vm267_vm0, %v1170_v57, 0  ;;  %v1164_v17 = vpop.permute.xlu0 %1163 }
 0x6b8   : > { %1881 = vmatpush3.bf16.xpose.msra.mxu1 %v1197_v26  ;;  %v1064_v1 = vmul.f32 %v2032_v38, %v2497_v10  ;;  %v1188_v10 = vsel %vm267_vm0, %v1168_v41, 0 }
 0x6b9   : > { %v2034_v14 = vpop.eup %2033  ;;  %1925 = vmatprep.subr.msk.bf16.mxu1 %vm267_vm0, %v1172_v35 }
 0x6ba   : > { %v1063_v25 = vmul.f32 %v2034_v14, %v2018_v48  ;;  %v1069_v5 = vpack.c.bf16 %v1065_v59, %v1064_v1  ;;  %v1162_v48 = vpop.permute.xlu1 %1161 }
 0x6bc   : > { %v1068_v4 = vpack.c.bf16 %v1063_v25, %v1062_v28 }
 0x6be   : > { %1876 = vmatprep.mubr.msk.bf16.mxu1 %vm373_vm2, %v1068_v4  ;;  %v1166_v60 = vpop.permute.xlu1 %1165 }
 0x6bf   : > { %1877 = vmatmul.mubr.msk.bf16.gmra.mxu1 %vm373_vm2, %v1069_v5 }
 0x6c0   : > { %1883 = vmatpush3.bf16.xpose.msra.mxu1 %v1194_v50  ;;  %1888 = vmatprep.mubr.msk.bf16.mxu1 %vm267_vm0, %v1160_v13 }
 0x6c1   : > { %1926 = vmatprep.subr.msk.bf16.mxu1 %vm267_vm0, %v1170_v57 }
 0x6c8   : > { %1885 = vmatpush3.bf16.xpose.msra.mxu1 %v1191_v21 }
 0x6c9   : > { %1927 = vmatprep.subr.msk.bf16.mxu1 %vm267_vm0, %v1168_v41 }
 0x6d0   : > { %1887 = vmatpush3.bf16.xpose.msra.mxu1 %v1188_v10 }
 0x6d7   : > { %1889 = vmatmul.mubr.msk.bf16.vlgmr.msra.gmra.mxu1 %vm267_vm0, %v1162_v48 }
 0x6d8   : > { %1892 = vmatprep.mubr.msk.bf16.mxu1 %vm267_vm0, %v1164_v17 }
 0x6df   : > { %1893 = vmatmul.mubr.msk.bf16.gmra.mxu1 %vm267_vm0, %v1166_v60 }
 0x777   : > { %v2539_v3 = vpop.f32.mrf.mxu1 }
 0x779   : > { %v2541_v23 = vpop.f32.mrf.mxu1 }
 0x77b   : > { %v2543_v9 = vpop.f32.mrf.mxu1 }
 0x77d   : > { %v2545_v27 = vpop.f32.mrf.mxu1 }
 0x77f   : > { %v2547_v63 = vpop.f32.mrf.mxu1 }
 0x781   : > { %v2549_v12 = vpop.f32.mrf.mxu1 }
 0x783   : > { %v2551_v24 = vpop.f32.mrf.mxu1 }
 0x785   : > { %v2553_v7 = vpop.f32.mrf.mxu1 }
 0x797   : > { %v1890_v6 = vpop.f32.mrf.mxu1 }
 0x798   : > { %v1266_v34 = vmul.f32 0.17677669, %v1890_v6 }
 0x799   : > { %v1233_v8 = vpop.f32.mrf.mxu1 }
 0x79a   : > { %v1264_v11 = vmul.f32 0.17677669, %v1233_v8  ;;  %v1274_v38 = vsel %vm249_vm1, %v1266_v34, -inf }
 0x79b   : > { %v1891_v45 = vpop.f32.mrf.mxu1  ;;  %v1286_v59 = vsel %vm373_vm2, %v1274_v38, -inf }
 0x79c   : > { %v1272_v22 = vsel %vm247_vm3, %v1264_v11, -inf  ;;  %v1267_v62 = vmul.f32 0.17677669, %v1891_v45 }
 0x79d   : > { %v1236_v44 = vpop.f32.mrf.mxu1  ;;  %v1280_v26 = vsel %vm373_vm2, %v1272_v22, -inf }
 0x79e   : > { %v1265_v35 = vmul.f32 0.17677669, %v1236_v44  ;;  %1281 = vmax.xlane.f32.xlu0 %v1280_v26  ;;  %v1275_v1 = vsel %vm250_vm4, %v1267_v62, -inf }
 0x79f   : > { %v1894_v14 = vpop.f32.mrf.mxu1  ;;  %v1289_v57 = vsel %vm373_vm2, %v1275_v1, -inf }
 0x7a0   : > { %v1273_v28 = vsel %vm248_vm5, %v1265_v35, -inf  ;;  %v1270_v30 = vmul.f32 0.17677669, %v1894_v14 }
 0x7a1   : > { %v1249_v25 = vpop.f32.mrf.mxu1  ;;  %v1283_v29 = vsel %vm373_vm2, %v1273_v28, -inf }
 0x7a2   : > { %v1268_v4 = vmul.f32 0.17677669, %v1249_v25  ;;  %1287 = vmax.xlane.f32.xlu0 %v1286_v59  ;;  %1284 = vmax.xlane.f32.xlu1 %v1283_v29  ;;  %v1278_v33 = vsel %vm253_vm7, %v1270_v30, -inf }
 0x7a3   : > { %v1895_v50 = vpop.f32.mrf.mxu1  ;;  %v1298_v17 = vsel %vm373_vm2, %v1278_v33, -inf }
 0x7a4   : > { %v1271_v5 = vmul.f32 0.17677669, %v1895_v50  ;;  %v1276_v36 = vsel %vm251_vm6, %v1268_v4, -inf }
 0x7a5   : > { %v1252_v13 = vpop.f32.mrf.mxu1  ;;  %v1292_v41 = vsel %vm373_vm2, %v1276_v36, -inf }
 0x7a6   : > { %v1269_v21 = vmul.f32 0.17677669, %v1252_v13  ;;  %1290 = vmax.xlane.f32.xlu0 %v1289_v57  ;;  %v1279_v43 = vsel %vm254_vm9, %v1271_v5, -inf }
 0x7a7   : > { %v1301_v60 = vsel %vm373_vm2, %v1279_v43, -inf }
 0x7a8   : > { %v1277_v10 = vsel %vm252_vm8, %v1269_v21, -inf }
 0x7a9   : > { %v1295_v48 = vsel %vm373_vm2, %v1277_v10, -inf }
 0x7aa   : > { %1293 = vmax.xlane.f32.xlu0 %v1292_v41  ;;  %1296 = vmax.xlane.f32.xlu1 %v1295_v48 }
 0x7ae   : > { %1299 = vmax.xlane.f32.xlu0 %v1298_v17  ;;  %1302 = vmax.xlane.f32.xlu1 %v1301_v60 }
 0x827   : > { %v1282_v55 = vpop.xlane.xlu0 %1281 }
 0x828   : > { %v1304_v6 = vsub.f32 %v1272_v22, %v1282_v55 }
 0x82a   : > { %v1312_v11 = vmul.f32 1.442695, %v1304_v6 }
 0x82b   : > { %v1288_v8 = vpop.xlane.xlu0 %1287  ;;  %v1285_v34 = vpop.xlane.xlu1 %1284 }
 0x82c   : > { %v1306_v46 = vsub.f32 %v1274_v38, %v1288_v8  ;;  %v1305_v44 = vsub.f32 %v1273_v28, %v1285_v34 }
 0x82e   : > { %v1316_v45 = vmul.f32 1.442695, %v1306_v46  ;;  %v1314_v26 = vmul.f32 1.442695, %v1305_v44 }
 0x82f   : > { %v1291_v31 = vpop.xlane.xlu0 %1290 }
 0x830   : > { %2035 = vpow2.f32 %v1316_v45  ;;  %v1307_v56 = vsub.f32 %v1275_v1, %v1291_v31 }
 0x831   : > { %2037 = vpow2.f32 %v1312_v11 }
 0x832   : > { %v1318_v62 = vmul.f32 1.442695, %v1307_v56 }
 0x833   : > { %v1294_v35 = vpop.xlane.xlu0 %1293 }
 0x834   : > { %2039 = vpow2.f32 %v1318_v62  ;;  %v1308_v14 = vsub.f32 %v1276_v36, %v1294_v35 }
 0x835   : > { %2041 = vpow2.f32 %v1314_v26 }
 0x836   : > { %v1320_v29 = vmul.f32 1.442695, %v1308_v14 }
 0x837   : > { %v1300_v25 = vpop.xlane.xlu0 %1299 }
 0x838   : > { %v1310_v59 = vsub.f32 %v1278_v33, %v1300_v25  ;;  %v1297_v33 = vpop.xlane.xlu1 %1296 }
 0x839   : > { %v1309_v60 = vsub.f32 %v1277_v10, %v1297_v33 }
 0x83a   : > { %v1324_v22 = vmul.f32 1.442695, %v1310_v59 }
 0x83b   : > { %v1322_v6 = vmul.f32 1.442695, %v1309_v60 }
 0x83c   : > { %2043 = vpow2.f32 %v1324_v22  ;;  %v1303_v48 = vpop.xlane.xlu1 %1302 }
 0x83d   : > { %v2587_v4 = vpop.eup %2035  ;;  %2045 = vpow2.f32 %v1320_v29  ;;  %v1311_v17 = vsub.f32 %v1279_v43, %v1303_v48 }
 0x83e   : > { %v1334_v38 = vsel %vm373_vm2, %v2587_v4, 0.0  ;;  %v2591_v28 = vpop.eup %2037 }
 0x83f   : > { %1335 = vadd.xlane.f32.xlu0 %v1334_v38  ;;  %v1328_v50 = vsel %vm373_vm2, %v2591_v28, 0.0  ;;  %v1326_v55 = vmul.f32 1.442695, %v1311_v17 }
 0x841   : > { %v2593_v1 = vpop.eup %2039  ;;  %2047 = vpow2.f32 %v1326_v55 }
 0x842   : > { %v1337_v30 = vsel %vm373_vm2, %v2593_v1, 0.0  ;;  %v2042_v5 = vpop.eup %2041  ;;  %2049 = vpow2.f32 %v1322_v6 }
 0x843   : > { %1329 = vadd.xlane.f32.xlu0 %v1328_v50  ;;  %1338 = vadd.xlane.f32.xlu1 %v1337_v30  ;;  %v1331_v36 = vsel %vm373_vm2, %v2042_v5, 0.0 }
 0x847   : > { %1332 = vadd.xlane.f32.xlu1 %v1331_v36 }
 0x849   : > { %v2600_v13 = vpop.eup %2043 }
 0x84a   : > { %v1346_v57 = vsel %vm373_vm2, %v2600_v13, 0.0  ;;  %v2604_v21 = vpop.eup %2045 }
 0x84b   : > { %1347 = vadd.xlane.f32.xlu0 %v1346_v57  ;;  %v1340_v41 = vsel %vm373_vm2, %v2604_v21, 0.0 }
 0x84f   : > { %1341 = vadd.xlane.f32.xlu0 %v1340_v41 }
 0x858   : > { %1376 = vrot.lane.b32.xlu1 %v2277_v58, %s2077_s26 }
 0x85c   : > { %1374 = vrot.lane.b32.xlu1 %v2283_v61, %s2077_s26 }
 0x865   : > { %1378 = vrot.lane.b32.xlu0 %v2273_v53, %s2077_s26  ;;  %v2048_v53 = vpop.eup %2047 }
 0x866   : > { %v1349_v58 = vsel %vm373_vm2, %v2048_v53, 0.0  ;;  %v2050_v61 = vpop.eup %2049 }
 0x869   : > { %1469 = vrot.lane.b32.xlu0 %v2437_v40, %s2077_s26 }
 0x86d   : > { %1473 = vrot.lane.b32.xlu0 %v2435_v39, %s2077_s26  ;;  %v1343_v39 = vsel %vm373_vm2, %v2050_v61, 0.0 }
 0x871   : > { %1477 = vrot.lane.b32.xlu0 %v2445_v52, %s2077_s26 }
 0x875   : > { %1481 = vrot.lane.b32.xlu0 %v2443_v51, %s2077_s26 }
 0x879   : > { %1501 = vrot.lane.b32.xlu0 %v2541_v23, %s2076_s25 }
 0x87d   : > { %1505 = vrot.lane.b32.xlu0 %v2539_v3, %s2076_s25 }
 0x880   : > { %1350 = vadd.xlane.f32.xlu1 %v1349_v58 }
 0x881   : > { %1509 = vrot.lane.b32.xlu0 %v2549_v12, %s2076_s25 }
 0x884   : > { %1344 = vadd.xlane.f32.xlu1 %v1343_v39 }
 0x885   : > { %1513 = vrot.lane.b32.xlu0 %v2547_v63, %s2076_s25 }
 0x895   : > { %1372 = vrot.lane.b32.xlu1 %v2288_v0, %s2077_s26 }
 0x899   : > { %1471 = vrot.lane.b32.xlu1 %v2441_v32, %s2077_s26 }
 0x89d   : > { %1475 = vrot.lane.b32.xlu1 %v2439_v37, %s2077_s26 }
 0x8a1   : > { %1479 = vrot.lane.b32.xlu1 %v2449_v54, %s2077_s26 }
 0x8a5   : > { %1483 = vrot.lane.b32.xlu1 %v2447_v42, %s2077_s26 }
 0x8a9   : > { %1503 = vrot.lane.b32.xlu1 %v2545_v27, %s2076_s25 }
 0x8ad   : > { %1507 = vrot.lane.b32.xlu1 %v2543_v9, %s2076_s25 }
 0x8b1   : > { %1511 = vrot.lane.b32.xlu1 %v2553_v7, %s2076_s25 }
 0x8b5   : > { %1515 = vrot.lane.b32.xlu1 %v2551_v24, %s2076_s25 }
 0x8c8   : > { %v1336_v0 = vpop.xlane.xlu0 %1335 }
 0x8cc   : > { %v1330_v40 = vpop.xlane.xlu0 %1329  ;;  %v1339_v37 = vpop.xlane.xlu1 %1338 }
 0x8cd   : > { %2051 = vrcp.f32 %v1330_v40 }
 0x8d0   : > { %v1333_v32 = vpop.xlane.xlu1 %1332 }
 0x8d1   : > { %2053 = vrcp.f32 %v1333_v32 }
 0x8d2   : > { %2055 = vrcp.f32 %v1339_v37 }
 0x8d3   : > { %2057 = vrcp.f32 %v1336_v0 }
 0x8d4   : > { %v1348_v51 = vpop.xlane.xlu0 %1347  ;;  %v1377_v54 = vpop.permute.xlu1 %1376 }
 0x8d8   : > { %v1342_v52 = vpop.xlane.xlu0 %1341  ;;  %v1375_v12 = vpop.permute.xlu1 %1374 }
 0x8da   : > { %v2052_v42 = vpop.eup %2051 }
 0x8db   : > { %v1360_v9 = vmul.f32 %v2052_v42, %v2591_v28 }
 0x8dc   : > { %v1379_v3 = vpop.permute.xlu0 %1378 }
 0x8dd   : > { %1896 = vmatprep.subr.bf16.mxu0 %v1379_v3 }
 0x8de   : > { %v2054_v23 = vpop.eup %2053  ;;  %1897 = vmatpush3.bf16.msra.mxu0 %v1379_v3 }
 0x8df   : > { %1898 = vmatprep.subr.bf16.mxu0 %v1377_v54  ;;  %v1361_v27 = vmul.f32 %v2054_v23, %v2042_v5  ;;  %v2056_v7 = vpop.eup %2055 }
 0x8e0   : > { %v2058_v43 = vpop.eup %2057  ;;  %v1363_v8 = vmul.f32 %v2056_v7, %v2593_v1  ;;  %v1470_v5 = vpop.permute.xlu0 %1469 }
 0x8e1   : > { %v1368_v63 = vpack.c.bf16 %v1361_v27, %v1360_v9  ;;  %v1362_v46 = vmul.f32 %v2058_v43, %v2587_v4 }
 0x8e2   : > { %1899 = vmatpush3.bf16.msra.mxu0 %v1377_v54 }
 0x8e3   : > { %1900 = vmatprep.subr.bf16.mxu0 %v1375_v12  ;;  %1904 = vmatprep.mubr.msk.bf16.mxu0 %vm373_vm2, %v1368_v63  ;;  %v1369_v11 = vpack.c.bf16 %v1363_v8, %v1362_v46 }
 0x8e6   : > { %1901 = vmatpush3.bf16.msra.mxu0 %v1375_v12 }
 0x909   : > { %v1351_v24 = vpop.xlane.xlu1 %1350 }
 0x90a   : > { %2059 = vrcp.f32 %v1351_v24 }
 0x90b   : > { %2061 = vrcp.f32 %v1342_v52 }
 0x90c   : > { %2063 = vrcp.f32 %v1348_v51  ;;  %v1557_v51 = vsel %vm267_vm0, %v2333_v47, %v1470_v5 }
 0x90d   : > { %v1345_v10 = vpop.xlane.xlu1 %1344 }
 0x90e   : > { %2065 = vrcp.f32 %v1345_v10 }
 0x911   : > { %v1373_v34 = vpop.permute.xlu1 %1372 }
 0x912   : > { %1902 = vmatprep.subr.bf16.mxu0 %v1373_v34 }
 0x913   : > { %1903 = vmatpush3.bf16.msra.mxu0 %v1373_v34 }
 0x915   : > { %v1472_v36 = vpop.permute.xlu1 %1471 }
 0x916   : > { %1905 = vmatmul.mubr.msk.bf16.vlgmr.msra.gmra.mxu0 %vm373_vm2, %v1369_v11  ;;  %v1558_v27 = vsel %vm267_vm0, %v2337_v2, %v1472_v36 }
 0x917   : > { %v2060_v45 = vpop.eup %2059 }
 0x918   : > { %v2062_v44 = vpop.eup %2061  ;;  %v1367_v26 = vmul.f32 %v2060_v45, %v2048_v53 }
 0x919   : > { %v2064_v31 = vpop.eup %2063  ;;  %v1364_v62 = vmul.f32 %v2062_v44, %v2604_v21  ;;  %v1476_v57 = vpop.permute.xlu1 %1475 }
 0x91a   : > { %v1366_v14 = vmul.f32 %v2064_v31, %v2600_v13  ;;  %v1474_v13 = vpop.permute.xlu0 %1473 }
 0x91b   : > { %v2066_v56 = vpop.eup %2065  ;;  %v1559_v39 = vsel %vm267_vm0, %v2331_v49, %v1474_v13  ;;  %v1560_v49 = vsel %vm267_vm0, %v2335_v15, %v1476_v57 }
 0x91c   : > { %v1365_v35 = vmul.f32 %v2066_v56, %v2050_v61  ;;  %v1371_v59 = vpack.c.bf16 %v1367_v26, %v1366_v14 }
 0x91d   : > { %v1480_v41 = vpop.permute.xlu1 %1479 }
 0x91e   : > { %v1370_v25 = vpack.c.bf16 %v1365_v35, %v1364_v62  ;;  %v1478_v21 = vpop.permute.xlu0 %1477  ;;  %v1562_v43 = vsel %vm267_vm0, %v2345_v20, %v1480_v41 }
 0x91f   : > { %v1561_v12 = vsel %vm267_vm0, %v2341_v18, %v1478_v21 }
 0x920   : > { %1908 = vmatprep.mubr.msk.bf16.mxu0 %vm373_vm2, %v1370_v25 }
 0x921   : > { %1909 = vmatmul.mubr.msk.bf16.gmra.mxu0 %vm373_vm2, %v1371_v59  ;;  %v1484_v48 = vpop.permute.xlu1 %1483 }
 0x922   : > { %v1482_v33 = vpop.permute.xlu0 %1481  ;;  %v1564_v44 = vsel %vm267_vm0, %v2343_v19, %v1484_v48 }
 0x923   : > { %v1563_v2 = vsel %vm267_vm0, %v2339_v16, %v1482_v33 }
 0x925   : > { %v1504_v60 = vpop.permute.xlu1 %1503 }
 0x926   : > { %v1502_v17 = vpop.permute.xlu0 %1501  ;;  %v1566_v47 = vsel %vm373_vm2, %v1558_v27, %v1504_v60 }
 0x927   : > { %v1565_v52 = vsel %vm373_vm2, %v1557_v51, %v1502_v17 }
 0x929   : > { %v1508_v6 = vpop.permute.xlu1 %1507 }
 0x92a   : > { %v1506_v55 = vpop.permute.xlu0 %1505  ;;  %v1568_v42 = vsel %vm373_vm2, %v1560_v49, %v1508_v6 }
 0x92b   : > { %v1567_v0 = vsel %vm373_vm2, %v1559_v39, %v1506_v55 }
 0x92d   : > { %v1512_v58 = vpop.permute.xlu1 %1511 }
 0x92e   : > { %v1510_v53 = vpop.permute.xlu0 %1509  ;;  %v1570_v34 = vsel %vm373_vm2, %v1562_v43, %v1512_v58 }
 0x92f   : > { %v1569_v24 = vsel %vm373_vm2, %v1561_v12, %v1510_v53 }
 0x931   : > { %v1516_v40 = vpop.permute.xlu1 %1515 }
 0x932   : > { %v1514_v61 = vpop.permute.xlu0 %1513  ;;  %v1572_v16 = vsel %vm373_vm2, %v1564_v44, %v1516_v40 }
 0x933   : > { %v1571_v8 = vsel %vm373_vm2, %v1563_v2, %v1514_v61 }
 0x9d6   : > { %v1906_v29 = vpop.f32.mrf.mxu0 }
 0x9d7   : > { %1537 = vrot.lane.b32.xlu0 %v1906_v29, %s2075_s24 }
 0x9d8   : > { %v1430_v22 = vpop.f32.mrf.mxu0 }
 0x9da   : > { %v1907_v4 = vpop.f32.mrf.mxu0 }
 0x9db   : > { %1533 = vrot.lane.b32.xlu0 %v1430_v22, %s2075_s24  ;;  %1539 = vrot.lane.b32.xlu1 %v1907_v4, %s2075_s24 }
 0x9dc   : > { %v1433_v38 = vpop.f32.mrf.mxu0 }
 0x9df   : > { %1535 = vrot.lane.b32.xlu1 %v1433_v38, %s2075_s24 }
 0x9e1   : > { %v1910_v28 = vpop.f32.mrf.mxu0 }
 0x9e3   : > { %v1446_v1 = vpop.f32.mrf.mxu0 }
 0x9e4   : > { %1541 = vrot.lane.b32.xlu0 %v1446_v1, %s2075_s24 }
 0x9e5   : > { %v1911_v50 = vpop.f32.mrf.mxu0 }
 0x9e7   : > { %v1449_v30 = vpop.f32.mrf.mxu0 }
 0x9e8   : > { %1545 = vrot.lane.b32.xlu0 %v1910_v28, %s2075_s24  ;;  %1543 = vrot.lane.b32.xlu1 %v1449_v30, %s2075_s24 }
 0x9ec   : > { %1547 = vrot.lane.b32.xlu1 %v1911_v50, %s2075_s24 }
 0xa49   : > { %v1538_v37 = vpop.permute.xlu0 %1537 }
 0xa4a   : > { %v1576_v32 = vsel %vm1573_vm10, %v1567_v0, %v1538_v37 }
 0xa4b   : > { %1584 = vst [vmem:[%s2673_s29 + $0x10] sm:$0xff] %v1576_v32 }
 0xa4d   : > { %v1534_v54 = vpop.permute.xlu0 %1533  ;;  %v1540_v3 = vpop.permute.xlu1 %1539 }
 0xa4e   : > { %v1574_v23 = vsel %vm1573_vm10, %v1565_v52, %v1534_v54  ;;  %v1577_v9 = vsel %vm1573_vm10, %v1568_v42, %v1540_v3 }
 0xa4f   : > { %1582 = vst [vmem:[%s2673_s29] sm:$0xff] %v1574_v23  ;;  %1585 = vst [vmem:[%s2673_s29 + $0x18] sm:$0xff] %v1577_v9 }
 0xa51   : > { %v1536_v63 = vpop.permute.xlu1 %1535 }
 0xa52   : > { %v1575_v15 = vsel %vm1573_vm10, %v1566_v47, %v1536_v63 }
 0xa53   : > { %1583 = vst [vmem:[%s2673_s29 + $0x8] sm:$0xff] %v1575_v15 }
 0xa56   : > { %v1542_v7 = vpop.permute.xlu0 %1541 }
 0xa57   : > { %v1578_v10 = vsel %vm1573_vm10, %v1569_v24, %v1542_v7 }
 0xa58   : > { %1586 = vst [vmem:[%s2673_s29 + $0x20] sm:$0xff] %v1578_v10 }
 0xa5a   : > { %v1546_v46 = vpop.permute.xlu0 %1545  ;;  %v1544_v11 = vpop.permute.xlu1 %1543 }
 0xa5b   : > { %v1580_v18 = vsel %vm1573_vm10, %v1571_v8, %v1546_v46  ;;  %v1579_v45 = vsel %vm1573_vm10, %v1570_v34, %v1544_v11 }
 0xa5c   : > { %1588 = vst [vmem:[%s2673_s29 + $0x30] sm:$0xff] %v1580_v18  ;;  %1587 = vst [vmem:[%s2673_s29 + $0x28] sm:$0xff] %v1579_v45 }
 0xa5e   : > { %v1548_v31 = vpop.permute.xlu1 %1547 }
 0xa5f   : > { %v1581_v20 = vsel %vm1573_vm10, %v1572_v16, %v1548_v31 }
 0xa60   : > { %1589 = vst [vmem:[%s2673_s29 + $0x38] sm:$0xff] %v1581_v20 }
 0xa61 PF: > { %s13_s12 = sadd.s32 1, %s2073_s12  }
 0xa62   : > { %p10_p4 = scmp.ge.s32.totalorder %s13_s12, 4  }
 0xa64   :  { %12 = sbr.rel (!%p10_p4) target bundleno = 1 (0x1), region = 68 }

// kernel: transformer_block.5
= control target key start
LH: loop header
LB: loop body
LE: loop exit
PB: predicated region body
PF: predicated region fallthrough
CT: control target
= control target key end

     0   :  { %15 = vsyncpa [#allocation3], 0  ;;  %s3258_s0 = inlined_call_operand.vmem [shape: f32[128,128], index: 0, kind: input, shape index: {}]   ;;  %s3259_s1 = inlined_call_operand.vmem [shape: f32[128,128], index: 1, kind: input, shape index: {}]   ;;  %s3260_s2 = inlined_call_operand.vmem [shape: bf16[128,128], index: 2, kind: input, shape index: {}]   ;;  %s3261_s3 = inlined_call_operand.vmem [shape: f32[1,128], index: 3, kind: input, shape index: {}]   ;;  %s3262_s4 = inlined_call_operand.vmem [shape: f32[1,128], index: 4, kind: input, shape index: {}]   ;;  %s3263_s5 = inlined_call_operand.vmem [shape: f32[1,128], index: 5, kind: input, shape index: {}]   ;;  %s3264_s6 = inlined_call_operand.vmem [shape: bf16[128,512], index: 6, kind: input, shape index: {}]   ;;  %s3265_s7 = inlined_call_operand.vmem [shape: f32[1,512], index: 7, kind: input, shape index: {}]   ;;  %s3266_s8 = inlined_call_operand.vmem [shape: bf16[512,128], index: 8, kind: input, shape index: {}]   ;;  %s3267_s9 = inlined_call_operand.vmem [shape: f32[1,128], index: 9, kind: input, shape index: {}]   ;;  %s3268_s10 = inlined_call_operand.hbm [shape: f32[128,128], index: 10, kind: output, shape index: {}]  }
   0x1   :  { %17 = vsyncpa [#allocation3 + $0x1], 0  ;;  %s2386_s13 = smov 0   ;;  %s2388_s14 = smov 0  }
   0x2   :  { %s2390_s15 = smov 0   ;;  %s2392_s16 = smov 0  }
   0x3 LB: > { %s2407_s17 = sadd.s32 4294967295, %s2325_s16   ;;  %s1832_s18 = sadd.s32 4294967294, %s2325_s16   ;;  %s2325_s16 = sphi %s2392_s16, %s3369_s16   ;;  %s2321_s15 = sphi %s2390_s15, %s3368_s15   ;;  %s2317_s14 = sphi %s2388_s14, %s3367_s14   ;;  %s2313_s13 = sphi %s2386_s13, %s3366_s13  }
   0x4   : > { %s2411_s19 = sadd.s32 1, %s2325_s16   ;;  %s250_s20 = sadd.s32 1, %s2321_s15 }
   0x5   : > { %s247_s21 = ssub.s32 %s2325_s16, %s2411_s19  ;;  %p260_p0 = scmp.ne.s32.totalorder %s2321_s15, %s2317_s14 }
   0x6   : > { %p248_p1 = scmp.eq.s32.totalorder %s247_s21, 0  ;;  %p261_p2 = scmp.eq.s32.totalorder %s2407_s17, 1 }
   0x7   : > { %p266_p3 = scmp.ne.s32.totalorder %s2317_s14, %s2313_s13  ;;  %p267_p4 = scmp.eq.s32.totalorder %s1832_s18, 1 }
   0x8   : > { %s2422_s22 = scalar_select %p248_p1, %s2321_s15, %s250_s20  }
   0x9   : > { %p2424_p5 = por %p261_p2, %p260_p0  ;;  %p2428_p6 = por %p267_p4, %p266_p3 }
   0xa   : > { %p1835_p7 = scmp.ge.s32.totalorder %s2325_s16, 1  ;;  %p327_p8 = scmp.lt.s32.totalorder %s2325_s16, 3 }
   0xc   : > { %p328_p9 = pnand %p1835_p7, %p327_p8 }
   0xe   : > { %331 = sbr.rel (%p328_p9) target bundleno = 1079 (0x437), region = 60 }
  0x13   : > { %v2097_v0 = vld [vmem:[%s3260_s2 + $0x38] sm:$0xff]   ;;  %s1837_s27 = sshll.u32 %s2407_s17, 3  ;;  %v2098_v1 = vld [vmem:[%s3260_s2 + $0x30] sm:$0xff]   ;;  %v2099_v2 = vld [vmem:[%s3260_s2 + $0x28] sm:$0xff]   ;;  %s367_s25 = sand.u32 1, %s2317_s14  }
  0x14   : > { %p371_p10 = scmp.lt.s32.totalorder %s1837_s27, 15  ;;  %2015 = vmatprep.subr.bf16.mxu0 %v2097_v0  ;;  %v2100_v3 = vld [vmem:[%s3260_s2 + $0x20] sm:$0xff]   ;;  %v2101_v7 = vld [vmem:[%s3260_s2 + $0x18] sm:$0xff]   ;;  %v2102_v8 = vld [vmem:[%s3260_s2 + $0x10] sm:$0xff]   ;;  %s1836_s26 = sshll.u32 %s367_s25, 6 }
  0x15   : > { %2016 = vmatpush3.bf16.msra.mxu0 %v2097_v0  ;;  %v2103_v9 = vld [vmem:[%s3260_s2 + $0x8] sm:$0xff]   ;;  %v2104_v10 = vld [vmem:[%s3260_s2] sm:$0xff]   ;;  %s3184_s28 = scalar_lea.vmem [#allocation2], %s1836_s26  ;;  %s1922_s29 = sshll.u32 %s2407_s17, 10 }
  0x16   : > { %s3371_s27 = smov (!%p371_p10, %s1837_s27), 15  ;;  %2017 = vmatprep.subr.bf16.mxu0 %v2098_v1  ;;  %v1841_v20 = vld [vmem:[%s3261_s3] ss:$0 sm:$0xff]  ;;  %v2105_v53 = vld [vmem:[%s3264_s6 + $0xe4] ss:$16 sps:$4 sm:$0xff]  }
  0x17   : > { %s1838_s12 = sshll.u32 %s3371_s27, 3  ;;  %v2107_v54 = vld [vmem:[%s3264_s6 + $0xe8] ss:$16 sps:$4 sm:$0xff]   ;;  %v2109_v55 = vld [vmem:[%s3264_s6 + $0xec] ss:$16 sps:$4 sm:$0xff]   ;;  %885 = vmatprep.subr.bf16.mxu1 %v2105_v53  ;;  %s3210_s27 = scalar_lea.hbm %s3268_s10, %s1922_s29 }
  0x18   : > { %s374_s21 = scalar_lea.vmem %s3258_s0, %s1838_s12  ;;  %s2472_s30 = scalar_lea.vmem %s3259_s1, %s1838_s12  ;;  %v2110_v56 = vld [vmem:[%s3264_s6 + $0xe0] ss:$16 sps:$4 sm:$0xff]   ;;  %v2141_v53 = vld [vmem:[%s3264_s6 + $0x24] ss:$16 sps:$4 sm:$0xff]  }
  0x19   : > { %2018 = vmatpush3.bf16.msra.mxu0 %v2098_v1  ;;  %v392_v4 = vld [vmem:[%s374_s21] sm:$0xff]  ;;  %v393_v5 = vld [vmem:[%s374_s21 + $0x8] sm:$0xff]  ;;  %v394_v11 = vld [vmem:[%s374_s21 + $0x10] sm:$0xff]  ;;  %886 = vmatpush1.bf16.msra.mxu1 %v2110_v56  ;;  %s3218_s12 = scalar_lea.sflag [#allocation3], %s367_s25 }
  0x1a   : > { %2019 = vmatprep.subr.bf16.mxu0 %v2099_v2  ;;  %v400_v6 = vpack.c.bf16 %v393_v5, %v392_v4  ;;  %v395_v12 = vld [vmem:[%s374_s21 + $0x18] sm:$0xff]  ;;  %v396_v13 = vld [vmem:[%s374_s21 + $0x20] sm:$0xff]  ;;  %v397_v14 = vld [vmem:[%s374_s21 + $0x28] sm:$0xff] }
  0x1b   : > { %v401_v15 = vpack.c.bf16 %v395_v12, %v394_v11  ;;  %v402_v16 = vpack.c.bf16 %v397_v14, %v396_v13  ;;  %v398_v17 = vld [vmem:[%s374_s21 + $0x30] sm:$0xff]  ;;  %v399_v18 = vld [vmem:[%s374_s21 + $0x38] sm:$0xff]  ;;  %v384_v24 = vld [vmem:[%s2472_s30] sm:$0xff]  ;;  %s2328_s21 = smov [#allocation2]  }
  0x1c   : > { %2031 = vmatprep.mubr.bf16.mxu0 %v400_v6  ;;  %v403_v19 = vpack.c.bf16 %v399_v18, %v398_v17  ;;  %v386_v21 = vld [vmem:[%s2472_s30 + $0x10] sm:$0xff]  ;;  %v387_v28 = vld [vmem:[%s2472_s30 + $0x18] sm:$0xff]  ;;  %v385_v32 = vld [vmem:[%s2472_s30 + $0x8] sm:$0xff]  ;;  %s2269_s20 = sshll.u32 %s2328_s21, 4  ;;  %s2270_s20 = int_to_ptr.vmem [resolvable:$false] %s2269_s20 }
  0x1d   : > { %2020 = vmatpush3.bf16.msra.mxu0 %v2099_v2  ;;  %v388_v38 = vld [vmem:[%s2472_s30 + $0x20] sm:$0xff]  ;;  %v390_v42 = vld [vmem:[%s2472_s30 + $0x30] sm:$0xff]  ;;  %v389_v45 = vld [vmem:[%s2472_s30 + $0x28] sm:$0xff]  ;;  %s2271_s26 = scalar_lea.vmem %s2270_s20, 2048 }
  0x1e   : > { %2021 = vmatprep.subr.bf16.mxu0 %v2100_v3  ;;  %v391_v51 = vld [vmem:[%s2472_s30 + $0x38] sm:$0xff]  ;;  %v2146_v56 = vld [vmem:[%s3264_s6 + $0x20] ss:$16 sps:$4 sm:$0xff]   ;;  %s1758_s30 = sshll.u32 %s3184_s28, 4  ;;  %s3212_s30 = int_to_ptr.vmem [resolvable:$true] %s1758_s30 }
  0x1f   : > { %s2265_s17 = scalar_lea.vmem %s3212_s30, 1024  ;;  %p2272_p0 = scmp.lt.s32.totalorder %s3212_s30, %s2270_s20 }
  0x20   : > { %p2266_p11 = scmp.ne.s32.totalorder %s3212_s30, %s2265_s17  ;;  %p2273_p1 = scmp.lt.s32.totalorder %s2271_s26, %s2265_s17 }
  0x21   : > { %2022 = vmatpush3.bf16.msra.mxu0 %v2100_v3 }
  0x22   : > { %2023 = vmatprep.subr.bf16.mxu0 %v2101_v7  ;;  %p2267_p12 = pnand %p2266_p11, %p2424_p5  ;;  %p2274_p2 = por %p2273_p1, %p2272_p0 }
  0x24   : > { %p2268_p13 = pneg %p2267_p12 }
  0x25   : > { %2024 = vmatpush3.bf16.msra.mxu0 %v2101_v7 }
  0x26   : > { %2025 = vmatprep.subr.bf16.mxu0 %v2102_v8  ;;  %p2275_p3 = pnand %p2274_p2, %p2268_p13 }
  0x29   : > { %2026 = vmatpush3.bf16.msra.mxu0 %v2102_v8 }
  0x2a   : > { %2027 = vmatprep.subr.bf16.mxu0 %v2103_v9 }
  0x2d   : > { %2028 = vmatpush3.bf16.msra.mxu0 %v2103_v9 }
  0x2e   : > { %2029 = vmatprep.subr.bf16.mxu0 %v2104_v10 }
  0x31   : > { %2030 = vmatpush3.bf16.msra.mxu0 %v2104_v10 }
  0x32   : > { %958 = vmatprep.subr.bf16.mxu0 %v2109_v55  ;;  %v2145_v55 = vld [vmem:[%s3264_s6 + $0x2c] ss:$16 sps:$4 sm:$0xff]  }
  0x34   : > { %2032 = vmatmul.mubr.bf16.vlgmr.msra.gmra.mxu0 %v401_v15 }
  0x35   : > { %2035 = vmatprep.mubr.bf16.mxu0 %v402_v16  ;;  %959 = vmatpush1.bf16.msra.mxu0 %v2107_v54  ;;  %v2143_v54 = vld [vmem:[%s3264_s6 + $0x28] ss:$16 sps:$4 sm:$0xff]  }
  0x3c   : > { %2036 = vmatmul.mubr.bf16.gmra.mxu0 %v403_v19 }
  0xf4   : > { %v2033_v22 = vpop.f32.mrf.mxu0 }
  0xf5   : > { %v518_v23 = vadd.f32 %v2033_v22, %v1841_v20 }
  0xf6   : > { %v509_v25 = vpop.f32.mrf.mxu0 }
  0xf7   : > { %v2479_v26 = vadd.f32 %v518_v23, %v386_v21  ;;  %v510_v27 = vadd.f32 %v1841_v20, %v509_v25  ;;  %v2111_v23 = vld [vmem:[%s3264_s6 + $0xc4] ss:$16 sps:$4 sm:$0xff]   ;;  %v2113_v25 = vld [vmem:[%s3264_s6 + $0xc8] ss:$16 sps:$4 sm:$0xff]  }
  0xf8   : > { %v2034_v29 = vpop.f32.mrf.mxu0  ;;  %887 = vmatprep.subr.bf16.mxu1 %v2111_v23 }
  0xf9   : > { %3300 = vst [vmem:[#allocation5_spill] sm:$0xff] %v2479_v26  ;;  %v2482_v30 = vadd.f32 %v510_v27, %v384_v24  ;;  %v521_v31 = vadd.f32 %v2034_v29, %v1841_v20  ;;  %552 = vadd.xlane.f32.xlu1 %v2479_v26  ;;  %v2115_v24 = vld [vmem:[%s3264_s6 + $0xcc] ss:$16 sps:$4 sm:$0xff]   ;;  %v2116_v27 = vld [vmem:[%s3264_s6 + $0xc0] ss:$16 sps:$4 sm:$0xff]  }
  0xfa   : > { %v512_v33 = vpop.f32.mrf.mxu0  ;;  %960 = vmatprep.subr.bf16.mxu0 %v2115_v24  ;;  %888 = vmatpush1.bf16.msra.mxu1 %v2116_v27 }
  0xfb   : > { %3301 = vst [vmem:[#allocation6_spill] sm:$0xff] %v2482_v30  ;;  %v2486_v34 = vadd.f32 %v521_v31, %v387_v28  ;;  %v513_v35 = vadd.f32 %v1841_v20, %v512_v33  ;;  %548 = vadd.xlane.f32.xlu0 %v2482_v30  ;;  %961 = vmatpush1.bf16.msra.mxu0 %v2113_v25  ;;  %v2117_v31 = vld [vmem:[%s3264_s6 + $0xa4] ss:$16 sps:$4 sm:$0xff]   ;;  %v2119_v33 = vld [vmem:[%s3264_s6 + $0xa8] ss:$16 sps:$4 sm:$0xff]  }
  0xfc   : > { %v2037_v36 = vpop.f32.mrf.mxu0  ;;  %889 = vmatprep.subr.bf16.mxu1 %v2117_v31 }
  0xfd   : > { %3302 = vst [vmem:[#allocation7_spill] sm:$0xff] %v2486_v34  ;;  %v2489_v37 = vadd.f32 %v513_v35, %v385_v32  ;;  %554 = vadd.xlane.f32.xlu1 %v2486_v34  ;;  %v534_v40 = vadd.f32 %v2037_v36, %v1841_v20  ;;  %v2121_v32 = vld [vmem:[%s3264_s6 + $0xac] ss:$16 sps:$4 sm:$0xff]   ;;  %v2122_v35 = vld [vmem:[%s3264_s6 + $0xa0] ss:$16 sps:$4 sm:$0xff]  }
  0xfe   : > { %v525_v39 = vpop.f32.mrf.mxu0  ;;  %962 = vmatprep.subr.bf16.mxu0 %v2121_v32  ;;  %890 = vmatpush1.bf16.msra.mxu1 %v2122_v35  ;;  %v2123_v36 = vld [vmem:[%s3264_s6 + $0x84] ss:$16 sps:$4 sm:$0xff]   ;;  %v1850_v32 = vld [vmem:[%s3262_s4] ss:$0 sm:$0xff] }
  0xff   : > { %3303 = vst [vmem:[#allocation8_spill] sm:$0xff] %v2489_v37  ;;  %v526_v41 = vadd.f32 %v1841_v20, %v525_v39  ;;  %550 = vadd.xlane.f32.xlu0 %v2489_v37  ;;  %v2498_v47 = vadd.f32 %v534_v40, %v390_v42  ;;  %963 = vmatpush1.bf16.msra.mxu0 %v2119_v33  ;;  %v2125_v39 = vld [vmem:[%s3264_s6 + $0x88] ss:$16 sps:$4 sm:$0xff]   ;;  %v2128_v40 = vld [vmem:[%s3264_s6 + $0x80] ss:$16 sps:$4 sm:$0xff]  }
 0x100   : > { %v2038_v43 = vpop.f32.mrf.mxu0  ;;  %891 = vmatprep.subr.bf16.mxu1 %v2123_v36  ;;  %v2133_v42 = vld [vmem:[%s3264_s6 + $0x6c] ss:$16 sps:$4 sm:$0xff]  }
 0x101   : > { %v2495_v44 = vadd.f32 %v526_v41, %v388_v38  ;;  %3305 = vst [vmem:[#allocation10_spill] sm:$0xff] %v2498_v47  ;;  %v537_v49 = vadd.f32 %v2038_v43, %v1841_v20  ;;  %v2127_v38 = vld [vmem:[%s3264_s6 + $0x8c] ss:$16 sps:$4 sm:$0xff]   ;;  %v2129_v41 = vld [vmem:[%s3264_s6 + $0x64] ss:$16 sps:$4 sm:$0xff]  }
 0x102   : > { %v528_v46 = vpop.f32.mrf.mxu0  ;;  %964 = vmatprep.subr.bf16.mxu0 %v2127_v38  ;;  %892 = vmatpush1.bf16.msra.mxu1 %v2128_v40  ;;  %v2131_v43 = vld [vmem:[%s3264_s6 + $0x68] ss:$16 sps:$4 sm:$0xff]  }
 0x103   : > { %3304 = vst [vmem:[#allocation9_spill] sm:$0xff] %v2495_v44  ;;  %v529_v48 = vadd.f32 %v1841_v20, %v528_v46  ;;  %556 = vadd.xlane.f32.xlu0 %v2495_v44  ;;  %v2506_v52 = vadd.f32 %v537_v49, %v391_v51  ;;  %965 = vmatpush1.bf16.msra.mxu0 %v2125_v39  ;;  %v2135_v46 = vld [vmem:[%s3264_s6 + $0x44] ss:$16 sps:$4 sm:$0xff]   ;;  %v2137_v49 = vld [vmem:[%s3264_s6 + $0x48] ss:$16 sps:$4 sm:$0xff]  }
 0x104   : > { %893 = vmatprep.subr.bf16.mxu1 %v2129_v41  ;;  %966 = vmatprep.subr.bf16.mxu0 %v2133_v42  ;;  %v2140_v51 = vld [vmem:[%s3264_s6 + $0x40] ss:$16 sps:$4 sm:$0xff]  }
 0x105   : > { %v2501_v50 = vadd.f32 %v529_v48, %v389_v45  ;;  %3307 = vst [vmem:[#allocation12_spill] sm:$0xff] %v2506_v52  ;;  %v2134_v45 = vld [vmem:[%s3264_s6 + $0x60] ss:$16 sps:$4 sm:$0xff]   ;;  %v2139_v48 = vld [vmem:[%s3264_s6 + $0x4c] ss:$16 sps:$4 sm:$0xff]  }
 0x106   : > { %894 = vmatpush1.bf16.msra.mxu1 %v2134_v45  ;;  %v1851_v41 = vld [vmem:[%s3263_s5] ss:$0 sm:$0xff] }
 0x107   : > { %3306 = vst [vmem:[#allocation11_spill] sm:$0xff] %v2501_v50  ;;  %558 = vadd.xlane.f32.xlu1 %v2501_v50  ;;  %560 = vadd.xlane.f32.xlu0 %v2498_v47 }
 0x108   : > { %967 = vmatpush1.bf16.msra.mxu0 %v2131_v43  ;;  %895 = vmatprep.subr.bf16.mxu1 %v2135_v46 }
 0x109   : > { %968 = vmatprep.subr.bf16.mxu0 %v2139_v48 }
 0x10a   : > { %896 = vmatpush1.bf16.msra.mxu1 %v2140_v51 }
 0x10b   : > { %562 = vadd.xlane.f32.xlu1 %v2506_v52  ;;  %897 = vmatprep.subr.bf16.mxu1 %v2141_v53 }
 0x10c   : > { %969 = vmatpush1.bf16.msra.mxu0 %v2137_v49 }
 0x10d   : > { %970 = vmatprep.subr.bf16.mxu0 %v2145_v55 }
 0x10e   : > { %898 = vmatpush1.bf16.msra.mxu1 %v2146_v56 }
 0x110   : > { %971 = vmatpush1.bf16.msra.mxu0 %v2143_v54 }
 0x182   : > { %v553_v57 = vpop.xlane.xlu1 %552 }
 0x183   : > { %v567_v59 = vmul.f32 0.0078125, %v553_v57  ;;  %v2147_v57 = vld [vmem:[%s3264_s6 + $0x4] ss:$16 sps:$4 sm:$0xff]  }
 0x184   : > { %v549_v58 = vpop.xlane.xlu0 %548  ;;  %899 = vmatprep.subr.bf16.mxu1 %v2147_v57 }
 0x185   : > { %v565_v60 = vmul.f32 0.0078125, %v549_v58  ;;  %v2525_v0 = vsub.f32 %v2479_v26, %v567_v59  ;;  %v2151_v58 = vld [vmem:[%s3264_s6 + $0xc] ss:$16 sps:$4 sm:$0xff]   ;;  %v2327_v59 = vmov 0  }
 0x186   : > { %v555_v61 = vpop.xlane.xlu1 %554  ;;  %917 = vmatprep.mubr.bf16.mxu1 %v2327_v59  ;;  %990 = vmatprep.mubr.bf16.mxu0 %v2327_v59 }
 0x187   : > { %v2522_v62 = vsub.f32 %v2482_v30, %v565_v60  ;;  %v568_v1 = vmul.f32 0.0078125, %v555_v61  ;;  %v583_v8 = vmul.f32 %v2525_v0, %v2525_v0  ;;  %v2149_v60 = vld [vmem:[%s3264_s6 + $0x8] ss:$16 sps:$4 sm:$0xff]   ;;  %v2152_v61 = vld [vmem:[%s3264_s6] ss:$16 sps:$4 sm:$0xff]   ;;  %972 = vmatprep.subr.bf16.mxu0 %v2151_v58 }
 0x188   : > { %v551_v63 = vpop.xlane.xlu0 %550  ;;  %900 = vmatpush1.bf16.msra.mxu1 %v2152_v61  ;;  %973 = vmatpush1.bf16.msra.mxu0 %v2149_v60 }
 0x189   : > { %v566_v2 = vmul.f32 0.0078125, %v551_v63  ;;  %v581_v3 = vmul.f32 %v2522_v62, %v2522_v62  ;;  %v2533_v6 = vsub.f32 %v2486_v34, %v568_v1 }
 0x18b   : > { %v2530_v4 = vsub.f32 %v2489_v37, %v566_v2  ;;  %589 = vadd.xlane.f32.xlu0 %v581_v3  ;;  %v584_v15 = vmul.f32 %v2533_v6, %v2533_v6 }
 0x18c   : > { %v557_v5 = vpop.xlane.xlu0 %556 }
 0x18d   : > { %v569_v7 = vmul.f32 0.0078125, %v557_v5  ;;  %v582_v9 = vmul.f32 %v2530_v4, %v2530_v4 }
 0x18f   : > { %v2540_v10 = vsub.f32 %v2495_v44, %v569_v7  ;;  %593 = vadd.xlane.f32.xlu0 %v583_v8  ;;  %591 = vadd.xlane.f32.xlu1 %v582_v9 }
 0x190   : > { %v559_v11 = vpop.xlane.xlu1 %558  ;;  %v561_v12 = vpop.xlane.xlu0 %560 }
 0x191   : > { %v570_v13 = vmul.f32 0.0078125, %v559_v11  ;;  %v571_v14 = vmul.f32 0.0078125, %v561_v12  ;;  %v585_v16 = vmul.f32 %v2540_v10, %v2540_v10 }
 0x193   : > { %v2547_v17 = vsub.f32 %v2501_v50, %v570_v13  ;;  %v2550_v18 = vsub.f32 %v2498_v47, %v571_v14  ;;  %595 = vadd.xlane.f32.xlu1 %v584_v15  ;;  %597 = vadd.xlane.f32.xlu0 %v585_v16 }
 0x194   : > { %v563_v19 = vpop.xlane.xlu1 %562 }
 0x195   : > { %v572_v20 = vmul.f32 0.0078125, %v563_v19  ;;  %v586_v21 = vmul.f32 %v2547_v17, %v2547_v17  ;;  %v587_v22 = vmul.f32 %v2550_v18, %v2550_v18 }
 0x197   : > { %v2569_v28 = vsub.f32 %v2506_v52, %v572_v20  ;;  %599 = vadd.xlane.f32.xlu1 %v586_v21  ;;  %601 = vadd.xlane.f32.xlu0 %v587_v22 }
 0x199   : > { %v588_v29 = vmul.f32 %v2569_v28, %v2569_v28 }
 0x19b   : > { %603 = vadd.xlane.f32.xlu1 %v588_v29 }
 0x214   : > { %v590_v63 = vpop.xlane.xlu0 %589 }
 0x215   : > { %v605_v1 = vmul.f32 0.0078125, %v590_v63 }
 0x217   : > { %v613_v2 = vadd.f32 1e-05, %v605_v1 }
 0x218   : > { %v592_v3 = vpop.xlane.xlu1 %591  ;;  %v594_v5 = vpop.xlane.xlu0 %593 }
 0x219   : > { %2185 = vrsqrt.f32 %v613_v2  ;;  %v606_v7 = vmul.f32 0.0078125, %v592_v3  ;;  %v607_v8 = vmul.f32 0.0078125, %v594_v5 }
 0x21b   : > { %v614_v9 = vadd.f32 1e-05, %v606_v7  ;;  %v615_v11 = vadd.f32 1e-05, %v607_v8 }
 0x21c   : > { %v596_v12 = vpop.xlane.xlu1 %595  ;;  %v598_v13 = vpop.xlane.xlu0 %597 }
 0x21d   : > { %2187 = vrsqrt.f32 %v614_v9  ;;  %v608_v14 = vmul.f32 0.0078125, %v596_v12  ;;  %v609_v16 = vmul.f32 0.0078125, %v598_v13  ;;  %v2154_v12 = vld [vmem:[%s3266_s8 + $0x38] sm:$0xff]   ;;  %v2157_v13 = vld [vmem:[%s3266_s8 + $0x70] sm:$0xff]  }
 0x21e   : > { %2189 = vrsqrt.f32 %v615_v11 }
 0x21f   : > { %v616_v15 = vadd.f32 1e-05, %v608_v14  ;;  %v617_v21 = vadd.f32 1e-05, %v609_v16  ;;  %v2688_v14 = vld [vmem:[%s3266_s8 + $0xf0] sm:$0xff]  }
 0x220   : > { %v600_v19 = vpop.xlane.xlu1 %599  ;;  %v602_v23 = vpop.xlane.xlu0 %601  ;;  %3309 = vst [vmem:[#allocation14_spill] sm:$0xff] %v2688_v14  ;;  %v2696_v16 = vld [vmem:[%s3266_s8 + $0xb0] sm:$0xff]  }
 0x221   : > { %2191 = vrsqrt.f32 %v616_v15  ;;  %v610_v20 = vmul.f32 0.0078125, %v600_v19  ;;  %v611_v29 = vmul.f32 0.0078125, %v602_v23  ;;  %v2158_v15 = vld [vmem:[%s3266_s8 + $0x30] sm:$0xff]   ;;  %3310 = vst [vmem:[#allocation15_spill] sm:$0xff] %v2696_v16  ;;  %v2161_v19 = vld [vmem:[%s3266_s8 + $0x68] sm:$0xff]   ;;  %v2165_v23 = vld [vmem:[%s3266_s8 + $0x60] sm:$0xff]  }
 0x223   : > { %v618_v22 = vadd.f32 1e-05, %v610_v20  ;;  %v619_v36 = vadd.f32 1e-05, %v611_v29  ;;  %v2706_v20 = vld [vmem:[%s3266_s8 + $0xe8] sm:$0xff]   ;;  %v2169_v29 = vld [vmem:[%s3266_s8 + $0x58] sm:$0xff]  }
 0x224   : > { %v604_v24 = vpop.xlane.xlu1 %603  ;;  %3311 = vst [vmem:[#allocation16_spill] sm:$0xff] %v2706_v20 }
 0x225   : > { %2193 = vrsqrt.f32 %v618_v22  ;;  %v612_v25 = vmul.f32 0.0078125, %v604_v24  ;;  %v2714_v22 = vld [vmem:[%s3266_s8 + $0xa8] sm:$0xff]   ;;  %v2724_v24 = vld [vmem:[%s3266_s8 + $0xe0] sm:$0xff]  }
 0x226   : > { %v2186_v27 = vpop.eup %2185  ;;  %2195 = vrsqrt.f32 %v617_v21  ;;  %v2162_v21 = vld [vmem:[%s3266_s8 + $0x28] sm:$0xff]   ;;  %3312 = vst [vmem:[#allocation17_spill] sm:$0xff] %v2714_v22  ;;  %3313 = vst [vmem:[#allocation18_spill] sm:$0xff] %v2724_v24 }
 0x227   : > { %v629_v31 = vmul.f32 %v2186_v27, %v2522_v62  ;;  %v620_v33 = vadd.f32 1e-05, %v612_v25  ;;  %v2166_v25 = vld [vmem:[%s3266_s8 + $0x20] sm:$0xff]  }
 0x228   : > { %v2732_v27 = vld [vmem:[%s3266_s8 + $0xa0] sm:$0xff]  }
 0x229   : > { %v644_v39 = vmul.f32 %v1850_v32, %v629_v31  ;;  %2197 = vrsqrt.f32 %v620_v33  ;;  %3314 = vst [vmem:[#allocation19_spill] sm:$0xff] %v2732_v27  ;;  %v2742_v31 = vld [vmem:[%s3266_s8 + $0xd8] sm:$0xff]  }
 0x22a   : > { %v2188_v35 = vpop.eup %2187  ;;  %2199 = vrsqrt.f32 %v619_v36  ;;  %3315 = vst [vmem:[#allocation20_spill] sm:$0xff] %v2742_v31  ;;  %v2750_v33 = vld [vmem:[%s3266_s8 + $0x98] sm:$0xff]   ;;  %v2760_v36 = vld [vmem:[%s3266_s8 + $0xd0] sm:$0xff]  }
 0x22b   : > { %v630_v38 = vmul.f32 %v2188_v35, %v2530_v4  ;;  %v2190_v40 = vpop.eup %2189  ;;  %v659_v62 = vadd.f32 %v1851_v41, %v644_v39  ;;  %3316 = vst [vmem:[#allocation21_spill] sm:$0xff] %v2750_v33  ;;  %v2173_v35 = vld [vmem:[%s3266_s8 + $0x50] sm:$0xff]   ;;  %3317 = vst [vmem:[#allocation22_spill] sm:$0xff] %v2760_v36 }
 0x22c   : > { %v631_v46 = vmul.f32 %v2190_v40, %v2525_v0  ;;  %v2768_v39 = vld [vmem:[%s3266_s8 + $0x90] sm:$0xff]   ;;  %v2177_v40 = vld [vmem:[%s3266_s8 + $0x48] sm:$0xff]  }
 0x22d   : > { %v645_v42 = vmul.f32 %v1850_v32, %v630_v38  ;;  %v2174_v38 = vld [vmem:[%s3266_s8 + $0x10] sm:$0xff]   ;;  %3318 = vst [vmem:[#allocation23_spill] sm:$0xff] %v2768_v39 }
 0x22e   : > { %v2192_v43 = vpop.eup %2191  ;;  %v646_v4 = vmul.f32 %v1850_v32, %v631_v46  ;;  %v2182_v46 = vld [vmem:[%s3266_s8] sm:$0xff]  }
 0x22f   : > { %v660_v45 = vadd.f32 %v1851_v41, %v645_v42  ;;  %v632_v48 = vmul.f32 %v2192_v43, %v2533_v6  ;;  %v2178_v42 = vld [vmem:[%s3266_s8 + $0x8] sm:$0xff]  }
 0x230   : > { %v661_v57 = vadd.f32 %v1851_v41, %v646_v4  ;;  %v2786_v43 = vld [vmem:[%s3266_s8 + $0x88] sm:$0xff]  }
 0x231   : > { %v667_v49 = vpack.c.bf16 %v660_v45, %v659_v62  ;;  %v647_v51 = vmul.f32 %v1850_v32, %v632_v48  ;;  %3320 = vst [vmem:[#allocation25_spill] sm:$0xff] %v2786_v43  ;;  %v2181_v62 = vld [vmem:[%s3266_s8 + $0x40] sm:$0xff]  }
 0x232   : > { %v2194_v53 = vpop.eup %2193  ;;  %v2796_v45 = vld [vmem:[%s3266_s8 + $0xc0] sm:$0xff]  }
 0x233   : > { %918 = vmatmul.mubr.bf16.vlgmr.msra.gmra.mxu1 %v667_v49  ;;  %991 = vmatmul.mubr.bf16.vlgmr.msra.gmra.mxu0 %v667_v49  ;;  %v2196_v54 = vpop.eup %2195  ;;  %v662_v55 = vadd.f32 %v1851_v41, %v647_v51  ;;  %v634_v56 = vmul.f32 %v2194_v53, %v2547_v17  ;;  %3321 = vst [vmem:[#allocation26_spill] sm:$0xff] %v2796_v45  ;;  %v2804_v48 = vld [vmem:[%s3266_s8 + $0x80] sm:$0xff]   ;;  %v705_v49 = vlaneseq }
 0x234   : > { %927 = vmatprep.mubr.bf16.mxu1 %v2327_v59  ;;  %1000 = vmatprep.mubr.bf16.mxu0 %v2327_v59  ;;  %v633_v58 = vmul.f32 %v2196_v54, %v2540_v10  ;;  %3322 = vst [vmem:[#allocation27_spill] sm:$0xff] %v2804_v48  ;;  %v703_v54 = vld [vmem:[%s3265_s7] sm:$0xf] }
 0x235   : > { %v668_v0 = vpack.c.bf16 %v662_v55, %v661_v57  ;;  %v649_v60 = vmul.f32 %v1850_v32, %v634_v56  ;;  %v706_v51 = vshrl.u32 %v705_v49, 7 }
 0x236   : > { %v2198_v6 = vpop.eup %2197  ;;  %v648_v63 = vmul.f32 %v1850_v32, %v633_v58 }
 0x237   : > { %v2200_v61 = vpop.eup %2199  ;;  %v664_v1 = vadd.f32 %v1851_v41, %v649_v60  ;;  %v636_v2 = vmul.f32 %v2198_v6, %v2569_v28  ;;  %v2153_v28 = vld [vmem:[%s3266_s8 + $0x78] sm:$0xff]   ;;  %v707_v53 = vsub.s32 0, %v706_v51  ;;  %v715_v4 = vsub.s32 2, %v706_v51 }
 0x238   : > { %v663_v3 = vadd.f32 %v1851_v41, %v648_v63  ;;  %v635_v17 = vmul.f32 %v2200_v61, %v2550_v18  ;;  %v2155_v18 = vld [vmem:[%s3266_s8 + $0xf8] sm:$0xff]   ;;  %1935 = vmatprep.subr.bf16.mxu1 %v2153_v28  ;;  %v711_v57 = vsub.s32 1, %v706_v51  ;;  %v719_v58 = vsub.s32 3, %v706_v51 }
 0x239   : > { %v651_v7 = vmul.f32 %v1850_v32, %v636_v2  ;;  %1975 = vmatprep.subr.bf16.mxu0 %v2155_v18  ;;  %1936 = vmatpush3.bf16.msra.mxu1 %v2154_v12  ;;  %v2811_v55 = vrot.slane %v703_v54, %v707_v53  ;;  %v2813_v56 = vrot.slane %v703_v54, %v715_v4 }
 0x23a   : > { %v669_v5 = vpack.c.bf16 %v664_v1, %v663_v3  ;;  %v650_v10 = vmul.f32 %v1850_v32, %v635_v17  ;;  %1937 = vmatprep.subr.bf16.mxu1 %v2157_v13  ;;  %v2170_v32 = vld [vmem:[%s3266_s8 + $0x18] sm:$0xff]   ;;  %v2817_v63 = vrot.slane %v703_v54, %v711_v57 }
 0x23b   : > { %928 = vmatmul.mubr.bf16.gmra.mxu1 %v668_v0  ;;  %1001 = vmatmul.mubr.bf16.gmra.mxu0 %v668_v0  ;;  %v666_v8 = vadd.f32 %v1851_v41, %v651_v7 }
 0x23c   : > { %937 = vmatprep.mubr.bf16.mxu1 %v2327_v59  ;;  %1010 = vmatprep.mubr.bf16.mxu0 %v2327_v59  ;;  %v665_v9 = vadd.f32 %v1851_v41, %v650_v10  ;;  %v2778_v41 = vld [vmem:[%s3266_s8 + $0xc8] sm:$0xff]  }
 0x23d   : > { %1938 = vmatpush3.bf16.msra.mxu1 %v2158_v15  ;;  %3319 = vst [vmem:[#allocation24_spill] sm:$0xff] %v2778_v41 }
 0x23e   : > { %v670_v11 = vpack.c.bf16 %v666_v8, %v665_v9  ;;  %1939 = vmatprep.subr.bf16.mxu1 %v2161_v19 }
 0x241   : > { %1940 = vmatpush3.bf16.msra.mxu1 %v2162_v21 }
 0x242   : > { %1941 = vmatprep.subr.bf16.mxu1 %v2165_v23 }
 0x243   : > { %938 = vmatmul.mubr.bf16.gmra.mxu1 %v669_v5  ;;  %1011 = vmatmul.mubr.bf16.gmra.mxu0 %v669_v5  ;;  %v2819_v5 = vrot.slane %v703_v54, %v719_v58 }
 0x244   : > { %947 = vmatprep.mubr.bf16.mxu1 %v2327_v59  ;;  %1020 = vmatprep.mubr.bf16.mxu0 %v2327_v59  ;;  %v2679_v59 = vld [vmem:[%s3266_s8 + $0xb8] sm:$0xff]  }
 0x245   : > { %3308 = vst [vmem:[#allocation13_spill] sm:$0xff] %v2679_v59  ;;  %1976 = vmatpush3.bf16.msra.mxu0 %v2679_v59  ;;  %1942 = vmatpush3.bf16.msra.mxu1 %v2166_v25 }
 0x246   : > { %1977 = vmatprep.subr.bf16.mxu0 %v2688_v14  ;;  %1943 = vmatprep.subr.bf16.mxu1 %v2169_v29 }
 0x249   : > { %1978 = vmatpush3.bf16.msra.mxu0 %v2696_v16  ;;  %1944 = vmatpush3.bf16.msra.mxu1 %v2170_v32 }
 0x24a   : > { %1979 = vmatprep.subr.bf16.mxu0 %v2706_v20  ;;  %1945 = vmatprep.subr.bf16.mxu1 %v2173_v35 }
 0x24b   : > { %948 = vmatmul.mubr.bf16.gmra.mxu1 %v670_v11  ;;  %1021 = vmatmul.mubr.bf16.gmra.mxu0 %v670_v11 }
 0x24d   : > { %1980 = vmatpush3.bf16.msra.mxu0 %v2714_v22  ;;  %1946 = vmatpush3.bf16.msra.mxu1 %v2174_v38 }
 0x24e   : > { %1981 = vmatprep.subr.bf16.mxu0 %v2724_v24  ;;  %1947 = vmatprep.subr.bf16.mxu1 %v2177_v40 }
 0x251   : > { %1982 = vmatpush3.bf16.msra.mxu0 %v2732_v27  ;;  %1948 = vmatpush3.bf16.msra.mxu1 %v2178_v42 }
 0x252   : > { %1983 = vmatprep.subr.bf16.mxu0 %v2742_v31  ;;  %1949 = vmatprep.subr.bf16.mxu1 %v2181_v62 }
 0x255   : > { %1984 = vmatpush3.bf16.msra.mxu0 %v2750_v33  ;;  %1950 = vmatpush3.bf16.msra.mxu1 %v2182_v46 }
 0x256   : > { %1985 = vmatprep.subr.bf16.mxu0 %v2760_v36  ;;  %2039 = vmatprep.subr.bf16.mxu1 %v2155_v18 }
 0x259   : > { %1986 = vmatpush3.bf16.msra.mxu0 %v2768_v39 }
 0x25a   : > { %1987 = vmatprep.subr.bf16.mxu0 %v2778_v41 }
 0x25d   : > { %1988 = vmatpush3.bf16.msra.mxu0 %v2786_v43 }
 0x25e   : > { %1989 = vmatprep.subr.bf16.mxu0 %v2796_v45 }
 0x261   : > { %1990 = vmatpush3.bf16.msra.mxu0 %v2804_v48 }
 0x2f3   : > { %v919_v0 = vpop.f32.mrf.mxu1  ;;  %v992_v60 = vpop.f32.mrf.mxu0 }
 0x2f4   : > { %v920_v6 = vadd.f32 %v919_v0, %v2811_v55  ;;  %v993_v61 = vadd.f32 %v992_v60, %v2813_v56 }
 0x2f5   : > { %v921_v1 = vpop.f32.mrf.mxu1  ;;  %v994_v2 = vpop.f32.mrf.mxu0 }
 0x2f6   : > { %v1063_v3 = vmul.f32 0.044715, %v920_v6  ;;  %v1065_v17 = vmul.f32 0.044715, %v993_v61  ;;  %v2824_v18 = vadd.f32 %v921_v1, %v2817_v63  ;;  %v2827_v19 = vadd.f32 %v994_v2, %v2819_v5 }
 0x2f7   : > { %v923_v7 = vpop.f32.mrf.mxu1  ;;  %v996_v10 = vpop.f32.mrf.mxu0  ;;  %v2837_v60 = vmul.f32 0.5, %v920_v6  ;;  %v2839_v1 = vmul.f32 0.5, %v993_v61 }
 0x2f8   : > { %v1095_v8 = vmul.f32 %v1063_v3, %v920_v6  ;;  %v1097_v9 = vmul.f32 %v1065_v17, %v993_v61  ;;  %v924_v11 = vadd.f32 %v923_v7, %v2811_v55  ;;  %v997_v28 = vadd.f32 %v996_v10, %v2813_v56 }
 0x2f9   : > { %v925_v12 = vpop.f32.mrf.mxu1  ;;  %v998_v13 = vpop.f32.mrf.mxu0  ;;  %v1064_v40 = vmul.f32 0.044715, %v2824_v18  ;;  %v1066_v53 = vmul.f32 0.044715, %v2827_v19  ;;  %v2843_v3 = vmul.f32 0.5, %v2824_v18 }
 0x2fa   : > { %v1127_v15 = vmul.f32 %v1095_v8, %v920_v6  ;;  %v1067_v21 = vmul.f32 0.044715, %v924_v11  ;;  %v1129_v23 = vmul.f32 %v1097_v9, %v993_v61  ;;  %v1069_v25 = vmul.f32 0.044715, %v997_v28 }
 0x2fb   : > { %v929_v29 = vpop.f32.mrf.mxu1  ;;  %v1002_v32 = vpop.f32.mrf.mxu0  ;;  %v2830_v38 = vadd.f32 %v925_v12, %v2817_v63  ;;  %v2834_v62 = vadd.f32 %v998_v13, %v2819_v5  ;;  %3323 = vst [vmem:[#allocation28_spill] sm:$0xff] %v2843_v3  ;;  %v1096_v17 = vmul.f32 %v1064_v40, %v2824_v18 }
 0x2fc   : > { %v1099_v35 = vmul.f32 %v1067_v21, %v924_v11  ;;  %v1101_v42 = vmul.f32 %v1069_v25, %v997_v28  ;;  %v1159_v51 = vadd.f32 %v1127_v15, %v920_v6  ;;  %v1161_v54 = vadd.f32 %v1129_v23, %v993_v61 }
 0x2fd   : > { %v931_v46 = vpop.f32.mrf.mxu1  ;;  %v1004_v49 = vpop.f32.mrf.mxu0  ;;  %v1068_v2 = vmul.f32 0.044715, %v2830_v38  ;;  %v1070_v10 = vmul.f32 0.044715, %v2834_v62  ;;  %v2848_v8 = vadd.f32 %v929_v29, %v2811_v55  ;;  %v1098_v6 = vmul.f32 %v1066_v53, %v2827_v19 }
 0x2fe   : > { %v1131_v4 = vmul.f32 %v1099_v35, %v924_v11  ;;  %v1133_v57 = vmul.f32 %v1101_v42, %v997_v28  ;;  %v1191_v13 = vmul.f32 0.7978846, %v1159_v51  ;;  %v2852_v61 = vadd.f32 %v1002_v32, %v2813_v56 }
 0x2ff   : > { %v933_v58 = vpop.f32.mrf.mxu1  ;;  %v1006_v0 = vpop.f32.mrf.mxu0  ;;  %v2855_v15 = vmul.f32 0.5, %v2827_v19  ;;  %v1193_v21 = vmul.f32 0.7978846, %v1161_v54  ;;  %v2857_v23 = vmul.f32 0.5, %v924_v11  ;;  %v2860_v35 = vadd.f32 %v931_v46, %v2817_v63 }
 0x300   : > { %v1163_v7 = vadd.f32 %v1131_v4, %v924_v11  ;;  %v1165_v25 = vadd.f32 %v1133_v57, %v997_v28  ;;  %v2862_v42 = vmul.f32 0.5, %v997_v28  ;;  %v1100_v51 = vmul.f32 %v1068_v2, %v2830_v38 }
 0x301   : > { %v935_v9 = vpop.f32.mrf.mxu1  ;;  %v1008_v12 = vpop.f32.mrf.mxu0  ;;  %3324 = vst [vmem:[#allocation29_spill] sm:$0xff] %v2855_v15  ;;  %v2866_v53 = vadd.f32 %v1004_v49, %v2819_v5  ;;  %v2869_v32 = vadd.f32 %v933_v58, %v2811_v55  ;;  %v2872_v4 = vmul.f32 %v1096_v17, %v2824_v18  ;;  %v1102_v54 = vmul.f32 %v1070_v10, %v2834_v62 }
 0x302   : > { %3325 = vst [vmem:[#allocation30_spill] sm:$0xff] %v2862_v42  ;;  %v1195_v11 = vmul.f32 0.7978846, %v1163_v7  ;;  %v1071_v46 = vmul.f32 0.044715, %v2848_v8  ;;  %2201 = vtanh.f32 %v1191_v13  ;;  %v2877_v28 = vmul.f32 %v1098_v6, %v2827_v19 }
 0x303   : > { %v939_v29 = vpop.f32.mrf.mxu1  ;;  %v1012_v40 = vpop.f32.mrf.mxu0  ;;  %v1073_v49 = vmul.f32 0.044715, %v2852_v61  ;;  %v2881_v2 = vadd.f32 %v1006_v0, %v2813_v56  ;;  %2203 = vtanh.f32 %v1193_v21  ;;  %v1197_v58 = vmul.f32 0.7978846, %v1165_v25 }
 0x304   : > { %v1072_v17 = vmul.f32 0.044715, %v2860_v35  ;;  %v2885_v7 = vadd.f32 %v935_v9, %v2817_v63  ;;  %v2888_v50 = vmul.f32 %v1100_v51, %v2830_v38  ;;  %v1074_v13 = vmul.f32 0.044715, %v2866_v53 }
 0x305   : > { %v941_v57 = vpop.f32.mrf.mxu1  ;;  %v1014_v52 = vpop.f32.mrf.mxu0  ;;  %v1075_v6 = vmul.f32 0.044715, %v2869_v32  ;;  %v2893_v44 = vadd.f32 %v1012_v40, %v2813_v56  ;;  %2205 = vtanh.f32 %v1195_v11  ;;  %v2896_v0 = vmul.f32 %v1102_v54, %v2834_v62 }
 0x306   : > { %v1103_v21 = vmul.f32 %v1071_v46, %v2848_v8  ;;  %v2900_v9 = vadd.f32 %v1008_v12, %v2819_v5  ;;  %v1105_v51 = vmul.f32 %v1073_v49, %v2852_v61  ;;  %v1077_v26 = vmul.f32 0.044715, %v2881_v2 }
 0x307   : > { %v943_v10 = vpop.f32.mrf.mxu1  ;;  %v1016_v47 = vpop.f32.mrf.mxu0  ;;  %3326 = vst [vmem:[#allocation31_spill] sm:$0xff] %v2893_v44  ;;  %v2905_v37 = vadd.f32 %v939_v29, %v2811_v55  ;;  %v1081_v40 = vmul.f32 0.044715, %v2893_v44  ;;  %2207 = vtanh.f32 %v1197_v58  ;;  %v1104_v11 = vmul.f32 %v1072_v17, %v2860_v35 }
 0x308   : > { %v1076_v54 = vmul.f32 0.044715, %v2885_v7  ;;  %v2911_v46 = vadd.f32 %v941_v57, %v2817_v63  ;;  %v1106_v48 = vmul.f32 %v1074_v13, %v2866_v53  ;;  %v1107_v49 = vmul.f32 %v1075_v6, %v2869_v32 }
 0x309   : > { %v945_v25 = vpop.f32.mrf.mxu1  ;;  %v1018_v34 = vpop.f32.mrf.mxu0  ;;  %v1113_v45 = vmul.f32 %v1081_v40, %v2893_v44  ;;  %v2917_v29 = vadd.f32 %v1014_v52, %v2819_v5  ;;  %v2920_v58 = vmul.f32 %v1103_v21, %v2848_v8  ;;  %v1078_v17 = vmul.f32 0.044715, %v2900_v9 }
 0x30a   : > { %v2924_v43 = vadd.f32 %v943_v10, %v2811_v55  ;;  %v2927_v57 = vadd.f32 %v1016_v47, %v2813_v56  ;;  %v1109_v13 = vmul.f32 %v1077_v26, %v2881_v2  ;;  %v1079_v6 = vmul.f32 0.044715, %v2905_v37 }
 0x30b   : > { %v949_v12 = vpop.f32.mrf.mxu1  ;;  %v1022_v30 = vpop.f32.mrf.mxu0  ;;  %3327 = vst [vmem:[#allocation32_spill] sm:$0xff] %v2917_v29  ;;  %v1145_v40 = vmul.f32 %v1113_v45, %v2893_v44  ;;  %v2933_v52 = vadd.f32 %v945_v25, %v2817_v63  ;;  %v2936_v39 = vmul.f32 %v1105_v51, %v2852_v61  ;;  %v1108_v10 = vmul.f32 %v1076_v54, %v2885_v7 }
 0x30c   : > { %3328 = vst [vmem:[#allocation33_spill] sm:$0xff] %v2924_v43  ;;  %3329 = vst [vmem:[#allocation34_spill] sm:$0xff] %v2927_v57  ;;  %v1080_v36 = vmul.f32 0.044715, %v2911_v46  ;;  %v1085_v47 = vmul.f32 0.044715, %v2927_v57  ;;  %v2942_v33 = vmul.f32 %v1104_v11, %v2860_v35  ;;  %v2945_v26 = vmul.f32 %v1106_v48, %v2866_v53 }
 0x30d   : > { %v951_v41 = vpop.f32.mrf.mxu1  ;;  %v1024_v21 = vpop.f32.mrf.mxu0  ;;  %v2948_v45 = vmul.f32 %v1107_v49, %v2869_v32  ;;  %v1082_v25 = vmul.f32 0.044715, %v2917_v29  ;;  %v1110_v51 = vmul.f32 %v1078_v17, %v2900_v9  ;;  %v1083_v54 = vmul.f32 0.044715, %v2924_v43 }
 0x30e   : > { %v1117_v27 = vmul.f32 %v1085_v47, %v2927_v57  ;;  %v2955_v24 = vadd.f32 %v1018_v34, %v2819_v5  ;;  %v2958_v11 = vmul.f32 %v1109_v13, %v2881_v2  ;;  %v1111_v48 = vmul.f32 %v1079_v6, %v2905_v37 }
 0x30f   : > { %v953_v31 = vpop.f32.mrf.mxu1  ;;  %v1177_v49 = vadd.f32 %v1145_v40, %v2893_v44  ;;  %v1084_v22 = vmul.f32 0.044715, %v2933_v52  ;;  %v1026_v20 = vpop.f32.mrf.mxu0  ;;  %v2966_v17 = vmul.f32 %v1108_v10, %v2885_v7  ;;  %v1112_v47 = vmul.f32 %v1080_v36, %v2911_v46 }
 0x310   : > { %v2963_v16 = vpop.eup %2201  ;;  %v1149_v34 = vmul.f32 %v1117_v27, %v2927_v57  ;;  %v2971_v14 = vadd.f32 %v949_v12, %v2811_v55  ;;  %v1114_v6 = vmul.f32 %v1082_v25, %v2917_v29  ;;  %v2977_v40 = vadd.f32 %v1022_v30, %v2813_v56 }
 0x311   : > { %v2973_v13 = vpop.eup %2203  ;;  %v2980_v44 = vadd.f32 %v951_v41, %v2817_v63  ;;  %v2983_v10 = vadd.f32 %v1024_v21, %v2819_v5  ;;  %v955_v59 = vpop.f32.mrf.mxu1  ;;  %v2986_v36 = vmul.f32 %v1110_v51, %v2900_v9  ;;  %v1115_v27 = vmul.f32 %v1083_v54, %v2924_v43 }
 0x312   : > { %v1181_v12 = vadd.f32 %v1149_v34, %v2927_v57  ;;  %v1086_v15 = vmul.f32 0.044715, %v2955_v24  ;;  %v2206_v25 = vpop.eup %2205  ;;  %v1209_v3 = vmul.f32 0.7978846, %v1177_v49  ;;  %v1116_v30 = vmul.f32 %v1084_v22, %v2933_v52  ;;  %v1028_v42 = vpop.f32.mrf.mxu0 }
 0x313   : > { %v2993_v41 = vadd.f32 %v953_v31, %v2811_v55  ;;  %v2996_v21 = vadd.f32 %v1026_v20, %v2813_v56  ;;  %v2999_v51 = vmul.f32 %v1111_v48, %v2905_v37  ;;  %v3002_v54 = vmul.f32 %v1112_v47, %v2911_v46 }
 0x314   : > { %v1087_v34 = vmul.f32 0.044715, %v2971_v14  ;;  %v3006_v57 = vadd.f32 %v955_v59, %v2817_v63  ;;  %v2208_v49 = vpop.eup %2207  ;;  %v3009_v22 = vmul.f32 %v1114_v6, %v2917_v29  ;;  %v1089_v31 = vmul.f32 0.044715, %v2977_v40 }
 0x315   : > { %3330 = vst [vmem:[#allocation35_spill] sm:$0xff] %v2999_v51  ;;  %v1088_v20 = vmul.f32 0.044715, %v2980_v44  ;;  %v1090_v55 = vmul.f32 0.044715, %v2983_v10  ;;  %v3015_v56 = vmul.f32 %v1115_v27, %v2924_v43  ;;  %v1118_v47 = vmul.f32 %v1086_v15, %v2955_v24 }
 0x316   : > { %3331 = vst [vmem:[#allocation36_spill] sm:$0xff] %v3009_v22  ;;  %v1213_v48 = vmul.f32 0.7978846, %v1181_v12  ;;  %v3019_v51 = vadd.f32 %v1028_v42, %v2819_v5  ;;  %2209 = vtanh.f32 %v1209_v3  ;;  %v3022_v59 = vmul.f32 %v1116_v30, %v2933_v52 }
 0x317   : > { %3332 = vst [vmem:[#allocation37_spill] sm:$0xff] %v3015_v56  ;;  %v1091_v63 = vmul.f32 0.044715, %v2993_v41  ;;  %v1093_v6 = vmul.f32 0.044715, %v2996_v21  ;;  %v1119_v22 = vmul.f32 %v1087_v34, %v2971_v14  ;;  %v1160_v27 = vadd.f32 %v2872_v4, %v2824_v18 }
 0x318   : > { %v1092_v29 = vmul.f32 0.044715, %v3006_v57  ;;  %v1164_v15 = vadd.f32 %v2888_v50, %v2830_v38  ;;  %v1121_v5 = vmul.f32 %v1089_v31, %v2977_v40  ;;  %v1120_v3 = vmul.f32 %v1088_v20, %v2980_v44 }
 0x319   : > { %v1122_v42 = vmul.f32 %v1090_v55, %v2983_v10  ;;  %v1162_v12 = vadd.f32 %v2877_v28, %v2827_v19  ;;  %2211 = vtanh.f32 %v1213_v48  ;;  %v1094_v30 = vmul.f32 0.044715, %v3019_v51 }
 0x31a   : > { %v1192_v34 = vmul.f32 0.7978846, %v1160_v27  ;;  %v1196_v56 = vmul.f32 0.7978846, %v1164_v15  ;;  %v1123_v43 = vmul.f32 %v1091_v63, %v2993_v41  ;;  %v1125_v18 = vmul.f32 %v1093_v6, %v2996_v21 }
 0x31b   : > { %v1166_v50 = vadd.f32 %v2896_v0, %v2834_v62  ;;  %v1194_v4 = vmul.f32 0.7978846, %v1162_v12  ;;  %v3043_v31 = vmul.f32 %v1118_v47, %v2955_v24  ;;  %v3046_v20 = vmul.f32 %v1119_v22, %v2971_v14 }
 0x31c   : > { %v1124_v19 = vmul.f32 %v1092_v29, %v3006_v57  ;;  %2213 = vtanh.f32 %v1192_v34  ;;  %v3050_v28 = vmul.f32 %v1121_v5, %v2977_v40  ;;  %v3053_v55 = vmul.f32 0.5, %v2830_v38 }
 0x31d   : > { %2215 = vtanh.f32 %v1196_v56  ;;  %v1198_v48 = vmul.f32 0.7978846, %v1166_v50  ;;  %v1152_v0 = vmul.f32 %v1120_v3, %v2980_v44  ;;  %v3057_v63 = vmul.f32 %v1122_v42, %v2983_v10 }
 0x31e   : > { %v1126_v47 = vmul.f32 %v1094_v30, %v3019_v51  ;;  %2217 = vtanh.f32 %v1194_v4  ;;  %v3061_v22 = vmul.f32 %v1123_v43, %v2993_v41  ;;  %v3064_v29 = vmul.f32 %v1125_v18, %v2996_v21 }
 0x31f   : > { %2219 = vtanh.f32 %v1198_v48  ;;  %v1168_v38 = vadd.f32 %v2942_v33, %v2860_v35  ;;  %v1156_v56 = vmul.f32 %v1124_v19, %v3006_v57  ;;  %v3070_v6 = vmul.f32 0.5, %v2834_v62 }
 0x320   : > { %v1255_v27 = vadd.f32 1.0, %v2963_v16  ;;  %v1172_v15 = vadd.f32 %v2966_v17, %v2885_v7  ;;  %v1259_v5 = vadd.f32 1.0, %v2206_v25  ;;  %v1170_v3 = vadd.f32 %v2945_v26, %v2866_v53 }
 0x321   : > { %v1200_v43 = vmul.f32 0.7978846, %v1168_v38  ;;  %v1174_v42 = vadd.f32 %v2986_v36, %v2900_v9  ;;  %v3080_v33 = vmul.f32 %v1126_v47, %v3019_v51  ;;  %v1167_v62 = vadd.f32 %v2920_v58, %v2848_v8  ;;  %v3333_v47 = vld [vmem:[#allocation30_spill] sm:$0xff] }
 0x322   : > { %v1204_v12 = vmul.f32 0.7978846, %v1172_v15  ;;  %v1171_v16 = vadd.f32 %v2948_v45, %v2869_v32  ;;  %v1257_v17 = vadd.f32 1.0, %v2973_v13  ;;  %v1202_v25 = vmul.f32 0.7978846, %v1170_v3 }
 0x323   : > { %2221 = vtanh.f32 %v1200_v43  ;;  %v1206_v30 = vmul.f32 0.7978846, %v1174_v42  ;;  %v3087_v34 = vpop.eup %2209  ;;  %v1261_v26 = vadd.f32 1.0, %v2208_v49  ;;  %v1199_v36 = vmul.f32 0.7978846, %v1167_v62  ;;  %v3336_v43 = vld [vmem:[#allocation37_spill] sm:$0xff] }
 0x324   : > { %2223 = vtanh.f32 %v1204_v12  ;;  %v1203_v18 = vmul.f32 0.7978846, %v1171_v16  ;;  %v1287_v50 = vmul.f32 %v1255_v27, %v2837_v60  ;;  %v1169_v58 = vadd.f32 %v2936_v39, %v2852_v61 }
 0x325   : > { %2225 = vtanh.f32 %v1202_v25  ;;  %v1173_v45 = vadd.f32 %v2958_v11, %v2881_v2  ;;  %v1291_v13 = vmul.f32 %v1259_v5, %v2857_v23  ;;  %v1176_v4 = vadd.f32 %v3002_v54, %v2911_v46  ;;  %v3334_v54 = vld [vmem:[#allocation35_spill] sm:$0xff]  ;;  %v3335_v5 = vld [vmem:[#allocation33_spill] sm:$0xff] }
 0x326   : > { %2227 = vtanh.f32 %v1206_v30  ;;  %v1180_v49 = vadd.f32 %v3022_v59, %v2933_v52  ;;  %v3099_v19 = vpop.eup %2211  ;;  %v3102_v60 = vmul.f32 %v1257_v17, %v2839_v1  ;;  %v1201_v48 = vmul.f32 0.7978846, %v1169_v58 }
 0x327   : > { %2229 = vtanh.f32 %v1199_v36  ;;  %v1205_v39 = vmul.f32 0.7978846, %v1173_v45  ;;  %v1293_v38 = vmul.f32 %v1261_v26, %v3333_v47  ;;  %v1208_v11 = vmul.f32 0.7978846, %v1176_v4 }
 0x328   : > { %2231 = vtanh.f32 %v1203_v18  ;;  %v1212_v23 = vmul.f32 0.7978846, %v1180_v49  ;;  %v1040_v15 = vmul.f32 0.5, %v2860_v35  ;;  %v1175_v59 = vadd.f32 %v3334_v54, %v2905_v37  ;;  %v3337_v35 = vld [vmem:[#allocation28_spill] sm:$0xff] }
 0x329   : > { %v2214_v27 = vpop.eup %2213  ;;  %2233 = vtanh.f32 %v1201_v48  ;;  %v1179_v3 = vadd.f32 %v3336_v43, %v3335_v5  ;;  %v1319_v12 = vpack.c.bf16 %v1291_v13, %v1287_v50  ;;  %v1184_v62 = vadd.f32 %v1152_v0, %v2980_v44  ;;  %v3340_v43 = vld [vmem:[#allocation36_spill] sm:$0xff] }
 0x32a   : > { %v2216_v1 = vpop.eup %2215  ;;  %v1256_v42 = vadd.f32 1.0, %v2214_v27  ;;  %2235 = vtanh.f32 %v1205_v39  ;;  %v1207_v25 = vmul.f32 0.7978846, %v1175_v59  ;;  %v1188_v58 = vadd.f32 %v1156_v56, %v3006_v57  ;;  %v3338_v39 = vld [vmem:[#allocation29_spill] sm:$0xff]  ;;  %v3339_v59 = vld [vmem:[#allocation32_spill] sm:$0xff] }
 0x32b   : > { %v2218_v16 = vpop.eup %2217  ;;  %v1260_v17 = vadd.f32 1.0, %v2216_v1  ;;  %2237 = vtanh.f32 %v1208_v11  ;;  %v1211_v30 = vmul.f32 0.7978846, %v1179_v3  ;;  %v1216_v50 = vmul.f32 0.7978846, %v1184_v62 }
 0x32c   : > { %v2220_v26 = vpop.eup %2219  ;;  %v1288_v36 = vmul.f32 %v1256_v42, %v3337_v35  ;;  %v1258_v18 = vadd.f32 1.0, %v2218_v16  ;;  %2239 = vtanh.f32 %v1212_v23  ;;  %v1321_v13 = vpack.c.bf16 %v1293_v38, %v3102_v60 }
 0x32d   : > { %v1292_v45 = vmul.f32 %v1260_v17, %v3053_v55  ;;  %v1262_v4 = vadd.f32 1.0, %v2220_v26  ;;  %2241 = vtanh.f32 %v1207_v25  ;;  %v1044_v0 = vmul.f32 0.5, %v2885_v7  ;;  %v3342_v26 = vld [vmem:[#allocation14_spill] sm:$0xff] }
 0x32e   : > { %2243 = vtanh.f32 %v1211_v30  ;;  %v1220_v49 = vmul.f32 0.7978846, %v1188_v58  ;;  %v1290_v47 = vmul.f32 %v1258_v18, %v3338_v39  ;;  %v1042_v56 = vmul.f32 0.5, %v2866_v53 }
 0x32f   : > { %v1320_v48 = vpack.c.bf16 %v1292_v45, %v1288_v36  ;;  %v1294_v11 = vmul.f32 %v1262_v4, %v3070_v6  ;;  %2245 = vtanh.f32 %v1216_v50  ;;  %v1183_v55 = vadd.f32 %v3046_v20, %v2971_v14 }
 0x330   : > { %v2222_v23 = vpop.eup %2221  ;;  %2247 = vtanh.f32 %v1220_v49  ;;  %v1187_v60 = vadd.f32 %v3061_v22, %v2993_v41  ;;  %v1046_v54 = vmul.f32 0.5, %v2900_v9  ;;  %v1178_v6 = vadd.f32 %v3340_v43, %v3339_v59  ;;  %v3341_v22 = vld [vmem:[#allocation13_spill] sm:$0xff] }
 0x331   : > { %v2224_v38 = vpop.eup %2223  ;;  %1630 = vmatprep.mubr.bf16.mxu1 %v1320_v48  ;;  %v1322_v7 = vpack.c.bf16 %v1294_v11, %v1290_v47  ;;  %v1264_v27 = vadd.f32 1.0, %v2222_v23  ;;  %v1215_v53 = vmul.f32 0.7978846, %v1183_v55  ;;  %v1182_v20 = vadd.f32 %v3043_v31, %v2955_v24  ;;  %v3343_v48 = vld [vmem:[#allocation15_spill] sm:$0xff]  ;;  %v3344_v11 = vld [vmem:[#allocation16_spill] sm:$0xff] }
 0x332   : > { %v2226_v3 = vpop.eup %2225  ;;  %1631 = vmatmul.mubr.bf16.vlgmr.msra.gmra.mxu1 %v1319_v12  ;;  %v1268_v1 = vadd.f32 1.0, %v2224_v38  ;;  %v1219_v42 = vmul.f32 0.7978846, %v1187_v60  ;;  %v1039_v25 = vmul.f32 0.5, %v2848_v8  ;;  %v1210_v9 = vmul.f32 0.7978846, %v1178_v6 }
 0x333   : > { %v2228_v62 = vpop.eup %2227  ;;  %1695 = vmatprep.mubr.bf16.mxu0 %v1322_v7  ;;  %2047 = vmatpush3.bf16.msra.mxu1 %v3341_v22  ;;  %v1296_v16 = vmul.f32 %v1264_v27, %v1040_v15  ;;  %v1266_v17 = vadd.f32 1.0, %v2226_v3  ;;  %2249 = vtanh.f32 %v1215_v53  ;;  %v1214_v36 = vmul.f32 0.7978846, %v1182_v20  ;;  %v3345_v53 = vld [vmem:[#allocation17_spill] sm:$0xff]  ;;  %v3346_v22 = vld [vmem:[#allocation18_spill] sm:$0xff] }
 0x334   : > { %v2230_v30 = vpop.eup %2229  ;;  %1696 = vmatmul.mubr.bf16.vlgmr.msra.gmra.mxu0 %v1321_v13  ;;  %2040 = vmatprep.subr.bf16.mxu1 %v3342_v26  ;;  %v1300_v12 = vmul.f32 %v1268_v1, %v1044_v0  ;;  %v1270_v35 = vadd.f32 1.0, %v2228_v62  ;;  %v1043_v31 = vmul.f32 0.5, %v2869_v32  ;;  %2251 = vtanh.f32 %v1219_v42 }
 0x335   : > { %v2232_v18 = vpop.eup %2231  ;;  %v1298_v58 = vmul.f32 %v1266_v17, %v1042_v56  ;;  %v1263_v45 = vadd.f32 1.0, %v2230_v30  ;;  %2253 = vtanh.f32 %v1210_v9  ;;  %v1041_v13 = vmul.f32 0.5, %v2852_v61 }
 0x336   : > { %v2234_v4 = vpop.eup %2233  ;;  %v1324_v15 = vpack.c.bf16 %v1300_v12, %v1296_v16  ;;  %v1302_v50 = vmul.f32 %v1270_v35, %v1046_v54  ;;  %v1267_v49 = vadd.f32 1.0, %v2232_v18  ;;  %v1045_v0 = vmul.f32 0.5, %v2881_v2  ;;  %v3347_v18 = vld [vmem:[#allocation19_spill] sm:$0xff] }
 0x337   : > { %v2236_v8 = vpop.eup %2235  ;;  %2048 = vmatpush3.bf16.msra.mxu1 %v3343_v48  ;;  %v1265_v39 = vadd.f32 1.0, %v2234_v4  ;;  %2255 = vtanh.f32 %v1214_v36  ;;  %v1295_v23 = vmul.f32 %v1263_v45, %v1039_v25  ;;  %v1048_v38 = vmul.f32 0.5, %v2911_v46 }
 0x338   : > { %v2238_v47 = vpop.eup %2237  ;;  %1638 = vmatprep.mubr.bf16.mxu1 %v1324_v15  ;;  %2041 = vmatprep.subr.bf16.mxu1 %v3344_v11  ;;  %v1326_v32 = vpack.c.bf16 %v1302_v50, %v1298_v58  ;;  %v1299_v56 = vmul.f32 %v1267_v49, %v1043_v31  ;;  %v1269_v55 = vadd.f32 1.0, %v2236_v8  ;;  %v1052_v7 = vmul.f32 0.5, %v2933_v52 }
 0x339   : > { %v2240_v60 = vpop.eup %2239  ;;  %v1272_v27 = vadd.f32 1.0, %v2238_v47  ;;  %v1047_v61 = vmul.f32 0.5, %v2905_v37  ;;  %v1297_v43 = vmul.f32 %v1265_v39, %v1041_v13  ;;  %v1051_v20 = vmul.f32 0.5, %v3335_v5  ;;  %v3349_v39 = vld [vmem:[#allocation21_spill] sm:$0xff] }
 0x33a   : > { %v2242_v54 = vpop.eup %2241  ;;  %1703 = vmatprep.mubr.bf16.mxu0 %v1326_v32  ;;  %v1323_v2 = vpack.c.bf16 %v1299_v56, %v1295_v23  ;;  %v1301_v6 = vmul.f32 %v1269_v55, %v1045_v0  ;;  %v1276_v3 = vadd.f32 1.0, %v2240_v60  ;;  %v1186_v46 = vadd.f32 %v3057_v63, %v2983_v10 }
 0x33b   : > { %v2244_v1 = vpop.eup %2243  ;;  %2049 = vmatpush3.bf16.msra.mxu1 %v3345_v53  ;;  %v1304_v42 = vmul.f32 %v1272_v27, %v1048_v38  ;;  %v1190_v52 = vadd.f32 %v3080_v33, %v3019_v51  ;;  %v1271_v17 = vadd.f32 1.0, %v2242_v54  ;;  %v1056_v30 = vmul.f32 0.5, %v2980_v44  ;;  %v3348_v44 = vld [vmem:[#allocation20_spill] sm:$0xff]  ;;  %v3354_v53 = vld [vmem:[#allocation34_spill] sm:$0xff] }
 0x33c   : > { %v2246_v62 = vpop.eup %2245  ;;  %1639 = vmatmul.mubr.bf16.gmra.mxu1 %v1323_v2  ;;  %v1325_v37 = vpack.c.bf16 %v1301_v6, %v1297_v43  ;;  %2042 = vmatprep.subr.bf16.mxu1 %v3346_v22  ;;  %v1308_v16 = vmul.f32 %v1276_v3, %v1052_v7  ;;  %v1275_v25 = vadd.f32 1.0, %v2244_v1  ;;  %v1218_v12 = vmul.f32 0.7978846, %v1186_v46  ;;  %v3351_v7 = vld [vmem:[#allocation23_spill] sm:$0xff]  ;;  %v3352_v54 = vld [vmem:[#allocation24_spill] sm:$0xff]  ;;  %v3353_v3 = vld [vmem:[#allocation25_spill] sm:$0xff] }
 0x33d   : > { %v2248_v9 = vpop.eup %2247  ;;  %v1280_v26 = vadd.f32 1.0, %v2246_v62  ;;  %v1222_v5 = vmul.f32 0.7978846, %v1190_v52  ;;  %v1060_v36 = vmul.f32 0.5, %v3006_v57  ;;  %v1185_v58 = vadd.f32 %v3050_v28, %v2977_v40  ;;  %v3356_v52 = vld [vmem:[#allocation31_spill] sm:$0xff] }
 0x33e   : > { %1704 = vmatmul.mubr.bf16.gmra.mxu0 %v1325_v37  ;;  %v1328_v35 = vpack.c.bf16 %v1308_v16, %v1304_v42  ;;  %v1307_v63 = vmul.f32 %v1275_v25, %v1051_v20  ;;  %v1284_v33 = vadd.f32 1.0, %v2248_v9  ;;  %2257 = vtanh.f32 %v1218_v12  ;;  %v3357_v16 = vld [vmem:[#allocation27_spill] sm:$0xff] }
 0x33f   : > { %2050 = vmatpush3.bf16.msra.mxu1 %v3347_v18  ;;  %v1189_v31 = vadd.f32 %v3064_v29, %v2996_v21  ;;  %v1303_v45 = vmul.f32 %v1271_v17, %v1047_v61  ;;  %v1312_v4 = vmul.f32 %v1280_v26, %v1056_v30  ;;  %2259 = vtanh.f32 %v1222_v5  ;;  %v3350_v29 = vld [vmem:[#allocation22_spill] sm:$0xff] }
 0x340   : > { %1646 = vmatprep.mubr.bf16.mxu1 %v1328_v35  ;;  %2043 = vmatprep.subr.bf16.mxu1 %v3348_v44  ;;  %v1316_v15 = vmul.f32 %v1284_v33, %v1060_v36  ;;  %v2250_v50 = vpop.eup %2249  ;;  %v1217_v49 = vmul.f32 0.7978846, %v1185_v58  ;;  %v1059_v11 = vmul.f32 0.5, %v2993_v41  ;;  %v1054_v23 = vmul.f32 0.5, %v2955_v24  ;;  %v3176_v44 = vld [vmem:[%s3267_s9] ss:$0 sm:$0xff] }
 0x341   : > { %v1221_v57 = vmul.f32 0.7978846, %v1189_v31  ;;  %v2252_v8 = vpop.eup %2251  ;;  %v1327_v48 = vpack.c.bf16 %v1307_v63, %v1303_v45  ;;  %v1279_v32 = vadd.f32 1.0, %v2250_v50  ;;  %v1055_v60 = vmul.f32 0.5, %v2971_v14  ;;  %v3355_v14 = vld [vmem:[#allocation26_spill] sm:$0xff] }
 0x342   : > { %v1332_v13 = vpack.c.bf16 %v1316_v15, %v1312_v4  ;;  %v2254_v0 = vpop.eup %2253  ;;  %v1283_v28 = vadd.f32 1.0, %v2252_v8  ;;  %2261 = vtanh.f32 %v1217_v49  ;;  %v1050_v27 = vmul.f32 0.5, %v3339_v59 }
 0x343   : > { %2051 = vmatpush3.bf16.msra.mxu1 %v3349_v39  ;;  %2263 = vtanh.f32 %v1221_v57  ;;  %v1274_v56 = vadd.f32 1.0, %v2254_v0  ;;  %v1311_v2 = vmul.f32 %v1279_v32, %v1055_v60  ;;  %v1277_v6 = vadd.f32 1.0, %v3099_v19  ;;  %v3358_v0 = vld [vmem:[#allocation6_spill] sm:$0xff] }
 0x344   : > { %v2256_v47 = vpop.eup %2255  ;;  %1647 = vmatmul.mubr.bf16.gmra.mxu1 %v1327_v48  ;;  %2044 = vmatprep.subr.bf16.mxu1 %v3350_v29  ;;  %v1315_v38 = vmul.f32 %v1283_v28, %v1059_v11  ;;  %v1053_v42 = vmul.f32 0.5, %v3354_v53  ;;  %v1273_v20 = vadd.f32 1.0, %v3087_v34  ;;  %v1049_v62 = vmul.f32 0.5, %v3356_v52 }
 0x345   : > { %1654 = vmatprep.mubr.bf16.mxu1 %v1332_v13  ;;  %v1278_v55 = vadd.f32 1.0, %v2256_v47  ;;  %v1306_v43 = vmul.f32 %v1274_v56, %v1050_v27  ;;  %v1062_v22 = vmul.f32 0.5, %v3019_v51  ;;  %v1058_v17 = vmul.f32 0.5, %v2983_v10  ;;  %v3359_v56 = vld [vmem:[#allocation8_spill] sm:$0xff] }
 0x346   : > { %v1331_v41 = vpack.c.bf16 %v1315_v38, %v1311_v2  ;;  %v1309_v37 = vmul.f32 %v1277_v6, %v1053_v42  ;;  %v1305_v9 = vmul.f32 %v1273_v20, %v1049_v62  ;;  %v1061_v63 = vmul.f32 0.5, %v2996_v21 }
 0x347   : > { %2052 = vmatpush3.bf16.msra.mxu1 %v3351_v7  ;;  %v1310_v61 = vmul.f32 %v1278_v55, %v1054_v23  ;;  %v1057_v51 = vmul.f32 0.5, %v2977_v40 }
 0x348   : > { %2045 = vmatprep.subr.bf16.mxu1 %v3352_v54  ;;  %v1329_v5 = vpack.c.bf16 %v1309_v37, %v1305_v9 }
 0x349   : > { %v1330_v24 = vpack.c.bf16 %v1310_v61, %v1306_v43 }
 0x34b   : > { %2053 = vmatpush3.bf16.msra.mxu1 %v3353_v3  ;;  %v2258_v1 = vpop.eup %2257 }
 0x34c   : > { %1655 = vmatmul.mubr.bf16.gmra.mxu1 %v1331_v41  ;;  %2046 = vmatprep.subr.bf16.mxu1 %v3355_v14  ;;  %v2260_v59 = vpop.eup %2259  ;;  %v1282_v46 = vadd.f32 1.0, %v2258_v1 }
 0x34d   : > { %1711 = vmatprep.mubr.bf16.mxu1 %v1330_v24  ;;  %v1286_v19 = vadd.f32 1.0, %v2260_v59  ;;  %v3360_v24 = vld [vmem:[#allocation5_spill] sm:$0xff] }
 0x34e   : > { %v1314_v12 = vmul.f32 %v1282_v46, %v1058_v17  ;;  %v3361_v46 = vld [vmem:[#allocation7_spill] sm:$0xff] }
 0x34f   : > { %2054 = vmatpush3.bf16.msra.mxu1 %v3357_v16  ;;  %v2262_v25 = vpop.eup %2261  ;;  %v1318_v30 = vmul.f32 %v1286_v19, %v1062_v22 }
 0x350   : > { %v2264_v26 = vpop.eup %2263  ;;  %v1281_v36 = vadd.f32 1.0, %v2262_v25 }
 0x351   : > { %v1285_v34 = vadd.f32 1.0, %v2264_v26  ;;  %v1334_v35 = vpack.c.bf16 %v1318_v30, %v1314_v12 }
 0x352   : > { %v1313_v18 = vmul.f32 %v1281_v36, %v1057_v51  ;;  %v3362_v51 = vld [vmem:[#allocation9_spill] sm:$0xff] }
 0x353   : > { %v1317_v33 = vmul.f32 %v1285_v34, %v1061_v63 }
 0x354   : > { %1712 = vmatmul.mubr.bf16.vlgmr.msra.gmra.mxu1 %v1329_v5 }
 0x355   : > { %1719 = vmatprep.mubr.bf16.mxu1 %v1334_v35  ;;  %v1333_v10 = vpack.c.bf16 %v1317_v33, %v1313_v18 }
 0x35c   : > { %1720 = vmatmul.mubr.bf16.gmra.mxu1 %v1333_v10 }
 0x3f2   : > { %v1951_v58 = vpop.f32.mrf.mxu1 }
 0x3f4   : > { %v1991_v31 = vpop.f32.mrf.mxu0  ;;  %v1952_v45 = vpop.f32.mrf.mxu1 }
 0x3f5   : > { %v1953_v4 = vadd.f32 %v1952_v45, %v1951_v58 }
 0x3f6   : > { %v1992_v21 = vpop.f32.mrf.mxu0  ;;  %v1954_v15 = vpop.f32.mrf.mxu1 }
 0x3f7   : > { %v1633_v50 = vadd.f32 %v1953_v4, %v3176_v44  ;;  %v1993_v40 = vadd.f32 %v1992_v21, %v1991_v31  ;;  %v3363_v21 = vld [vmem:[#allocation11_spill] sm:$0xff] }
 0x3f8   : > { %v1994_v49 = vpop.f32.mrf.mxu0  ;;  %v1955_v57 = vpop.f32.mrf.mxu1 }
 0x3f9   : > { %v1698_v8 = vadd.f32 %v1993_v40, %v1633_v50  ;;  %v1956_v48 = vadd.f32 %v1955_v57, %v1954_v15 }
 0x3fa   : > { %v1995_v13 = vpop.f32.mrf.mxu0 }
 0x3fb   : > { %v1728_v39 = vadd.f32 %v1698_v8, %v3358_v0  ;;  %v1636_v28 = vadd.f32 %v1956_v48, %v3176_v44  ;;  %v1996_v47 = vadd.f32 %v1995_v13, %v1994_v49  ;;  %v3364_v48 = vld [vmem:[#allocation10_spill] sm:$0xff] }
 0x3fc   : > { %v1957_v29 = vpop.f32.mrf.mxu1 }
 0x3fd   : > { %1736 = vst [vmem:[%s3184_s28] sm:$0xff] %v1728_v39  ;;  %v1701_v11 = vadd.f32 %v1996_v47, %v1636_v28  ;;  %v3365_v28 = vld [vmem:[#allocation12_spill] sm:$0xff] }
 0x3fe   : > { %v1997_v32 = vpop.f32.mrf.mxu0  ;;  %v1958_v23 = vpop.f32.mrf.mxu1 }
 0x3ff   : > { %v1729_v55 = vadd.f32 %v1701_v11, %v3359_v56  ;;  %v1959_v60 = vadd.f32 %v1958_v23, %v1957_v29 }
 0x400   : > { %v1998_v38 = vpop.f32.mrf.mxu0  ;;  %v1960_v7 = vpop.f32.mrf.mxu1 }
 0x401   : > { %1737 = vst [vmem:[%s3184_s28 + $0x8] sm:$0xff] %v1729_v55  ;;  %v1641_v27 = vadd.f32 %v1959_v60, %v3176_v44  ;;  %v1999_v61 = vadd.f32 %v1998_v38, %v1997_v32 }
 0x402   : > { %v2000_v54 = vpop.f32.mrf.mxu0  ;;  %v1961_v2 = vpop.f32.mrf.mxu1 }
 0x403   : > { %v1706_v43 = vadd.f32 %v1999_v61, %v1641_v27  ;;  %v1962_v41 = vadd.f32 %v1961_v2, %v1960_v7 }
 0x404   : > { %v2001_v6 = vpop.f32.mrf.mxu0  ;;  %v1963_v3 = vpop.f32.mrf.mxu1 }
 0x405   : > { %v1730_v1 = vadd.f32 %v1706_v43, %v3360_v24  ;;  %v1644_v53 = vadd.f32 %v1962_v41, %v3176_v44  ;;  %v2002_v42 = vadd.f32 %v2001_v6, %v2000_v54 }
 0x406   : > { %v1964_v14 = vpop.f32.mrf.mxu1 }
 0x407   : > { %1738 = vst [vmem:[%s3184_s28 + $0x10] sm:$0xff] %v1730_v1  ;;  %v1709_v20 = vadd.f32 %v2002_v42, %v1644_v53  ;;  %v1965_v17 = vadd.f32 %v1964_v14, %v1963_v3 }
 0x408   : > { %v1966_v59 = vpop.f32.mrf.mxu1 }
 0x409   : > { %v1731_v52 = vadd.f32 %v1709_v20, %v3361_v46  ;;  %v1649_v30 = vadd.f32 %v1965_v17, %v3176_v44 }
 0x40a   : > { %v1967_v62 = vpop.f32.mrf.mxu1 }
 0x40b   : > { %1739 = vst [vmem:[%s3184_s28 + $0x18] sm:$0xff] %v1731_v52  ;;  %v1968_v26 = vadd.f32 %v1967_v62, %v1966_v59 }
 0x40c   : > { %v1969_v37 = vpop.f32.mrf.mxu1 }
 0x40d   : > { %v1652_v63 = vadd.f32 %v1968_v26, %v3176_v44 }
 0x40e   : > { %v1970_v22 = vpop.f32.mrf.mxu1 }
 0x40f   : > { %v1971_v36 = vadd.f32 %v1970_v22, %v1969_v37 }
 0x410   : > { %v1972_v19 = vpop.f32.mrf.mxu1 }
 0x411   : > { %v1657_v45 = vadd.f32 %v1971_v36, %v3176_v44 }
 0x412   : > { %v1973_v16 = vpop.f32.mrf.mxu1 }
 0x413   : > { %v1974_v4 = vadd.f32 %v1973_v16, %v1972_v19 }
 0x414   : > { %v2003_v25 = vpop.f32.mrf.mxu1 }
 0x415   : > { %v1660_v8 = vadd.f32 %v1974_v4, %v3176_v44 }
 0x416   : > { %v2004_v9 = vpop.f32.mrf.mxu1 }
 0x417   : > { %v2005_v12 = vadd.f32 %v2004_v9, %v2003_v25 }
 0x418   : > { %v2006_v5 = vpop.f32.mrf.mxu1 }
 0x419   : > { %v1714_v34 = vadd.f32 %v2005_v12, %v1649_v30 }
 0x41a   : > { %v2007_v35 = vpop.f32.mrf.mxu1 }
 0x41b   : > { %v1732_v33 = vadd.f32 %v1714_v34, %v3362_v51  ;;  %v2008_v18 = vadd.f32 %v2007_v35, %v2006_v5 }
 0x41c   : > { %v2009_v10 = vpop.f32.mrf.mxu1 }
 0x41d   : > { %1740 = vst [vmem:[%s3184_s28 + $0x20] sm:$0xff] %v1732_v33  ;;  %v1717_v58 = vadd.f32 %v2008_v18, %v1652_v63 }
 0x41e   : > { %v2010_v31 = vpop.f32.mrf.mxu1 }
 0x41f   : > { %v1733_v15 = vadd.f32 %v1717_v58, %v3363_v21  ;;  %v2011_v50 = vadd.f32 %v2010_v31, %v2009_v10 }
 0x420   : > { %v2012_v40 = vpop.f32.mrf.mxu1 }
 0x421   : > { %1741 = vst [vmem:[%s3184_s28 + $0x28] sm:$0xff] %v1733_v15  ;;  %v1722_v49 = vadd.f32 %v2011_v50, %v1657_v45 }
 0x422   : > { %v2013_v57 = vpop.f32.mrf.mxu1 }
 0x423   : > { %v1734_v13 = vadd.f32 %v1722_v49, %v3364_v48  ;;  %v2014_v0 = vadd.f32 %v2013_v57, %v2012_v40 }
 0x425   : > { %1742 = vst [vmem:[%s3184_s28 + $0x30] sm:$0xff] %v1734_v13  ;;  %v1725_v39 = vadd.f32 %v2014_v0, %v1660_v8 }
 0x427   : > { %v1735_v47 = vadd.f32 %v1725_v39, %v3365_v28 }
 0x429   : > { %1743 = vst [vmem:[%s3184_s28 + $0x38] sm:$0xff] %v1735_v47 }
 0x42a   : > { %2278 = shalt.err (!%p2275_p3)
}
 0x42b   : > { %s2279_s25 = scalar_lea.hbm %s3210_s27, 1024  ;;  %s2283_s11 = scalar_lea.hbm %s3268_s10, 2048 }
 0x42c   : > { %p2280_p4 = scmp.ne.s32.totalorder %s3210_s27, %s2279_s25  ;;  %p2284_p9 = scmp.lt.s32.totalorder %s3210_s27, %s3268_s10 }
 0x42d   : > { %p2285_p10 = scmp.lt.s32.totalorder %s2283_s11, %s2279_s25 }
 0x42e   : > { %p2281_p7 = pnand %p2280_p4, %p2424_p5 }
 0x42f   : > { %p2286_p11 = por %p2285_p10, %p2284_p9 }
 0x430   : > { %p2282_p8 = pneg %p2281_p7 }
 0x432   : > { %p2287_p12 = pnand %p2286_p11, %p2282_p8 }
 0x434   : > { %2290 = shalt.err (!%p2287_p12)
}
 0x435   : > { %s2329_s17 = smov 128   ;;  %s2330_s20 = smov 8  }
 0x436   : > { %2055 = dma.vmem_to_hbm [thread:$0]  (%p2424_p5), %s3212_s30, 1024, %s3210_s27, %s3218_s12, %s2329_s17, %s2329_s17, %s2330_s20  }
 0x437 PF: > { %p2061_p13 = scmp.ge.s32.totalorder %s2325_s16, 2  ;;  %s1773_s26 = sand.u32 1, %s2313_s13  }
 0x438   : > { %s1774_s25 = scalar_lea.sflag [#allocation3], %s1773_s26 }
 0x439   : > { %p2058_p0 = pnand %p2061_p13, %p2428_p6 }
 0x43b   : > { %p2059_p1 = pneg %p2058_p0 }
 0x43d   : > { %2308 = dma.done.wait (%p2059_p1), %s1774_s25, 1024  }
 0x43e   : > { %2310 = vsyncadd (%p2059_p1), %s1774_s25, 4294966272  ;;  %p20_p2 = scmp.ge.s32.totalorder %s2411_s19, 4   ;;  %s3366_s13 = smov %s2317_s14 }
 0x43f   : > { %s3367_s14 = smov %s2321_s15  ;;  %s3368_s15 = smov %s2422_s22 }
 0x440   : > { %s3369_s16 = smov %s2411_s19  ;;  %22 = sbr.rel (!%p20_p2) target bundleno = 3 (0x3), region = 98 }
 0x445   :  { %1779 = vsyncpa [#allocation3], 1 }
 0x446   :  { %1781 = vsyncpa [#allocation3 + $0x1], 1 }

</bundles_post_ra>
